<compile_context>
chip_gen: v6e
topology: v6e:2x2x1
jax: 0.10.0
libtpu: 0.0.40
codegen_flags: <defaults>
</compile_context>

<pallas_src>
import functools

import jax
import jax.numpy as jnp
from jax.experimental import pallas as pl
from jax.experimental.pallas import tpu as pltpu


def _round_up(x, m):
    return ((x + m - 1) // m) * m


def _detector_head_kernel(xb_ref, wa_ref, ba_ref, wb_ref, bb_ref, *out_refs,
                          th, wp, return_logit):
    # xb_ref : (1, 1, Mb, Cinp) bf16  haloed, flattened padded-NHWC rows
    # wa_ref : (9, Cinp, 256)   bf16  convPa weights, one (Cin,256) slab per tap
    # ba_ref : (1, 256)         f32   convPa bias
    # wb_ref : (256, Cp)        bf16  convPb weights with BNPa+BNPb folded in
    # bb_ref : (1, Cp)          f32   folded bias; padded lanes hold -1e30
    # out    : optional logit, then prob, each (1, 1, th*wp, Cp)
    m = th * wp
    cmid = ba_ref.shape[-1]

    # 3x3 conv (stride 1, pad 1) = 9 shifted (m,Cin)@(Cin,256) MXU matmuls, f32 acc.
    # Output flat row p maps to padded position (1 + p//wp, p%wp); tap (dy,dx) reads
    # flat row p + dy*wp + dx - 1, and the leading guard row absorbs the -1, so the
    # tap slice start is the static offset dy*wp + dx.
    acc = jnp.zeros((m, cmid), jnp.float32)
    for t in range(9):
        dy, dx = t // 3, t % 3
        start = dy * wp + dx
        xs = xb_ref[0, 0, pl.ds(start, m), :]
        acc = acc + jnp.dot(xs, wa_ref[t, :, :], preferred_element_type=jnp.float32)

    h = jnp.maximum(acc + ba_ref[...], 0.0)                    # conv bias + ReLU

    # convPb (1x1) with BNPa scale/shift and BNPb already folded into wb / bb.
    z = jnp.dot(h.astype(wb_ref.dtype), wb_ref[...],
                preferred_element_type=jnp.float32) + bb_ref[...]

    # softmax over channels (torch dim=1 -> lane axis here). Padded lanes carry
    # -1e30 so their exp() underflows to exactly 0 and never wins the max.
    zmax = jnp.max(z, axis=-1, keepdims=True)
    e = jnp.exp(z - zmax)
    p = e * pl.reciprocal(jnp.sum(e, axis=-1, keepdims=True), approx=True)

    if return_logit:
        logit_ref, prob_ref = out_refs
        logit_ref[0, 0] = z.astype(logit_ref.dtype)
    else:
        (prob_ref,) = out_refs
    prob_ref[0, 0] = p.astype(prob_ref.dtype)


def init_params(key, in_channels, grid_size):
    """Deterministic synthetic parameters (shapes match the torch module).

    wa is stored as (3, 3, Cin, 256) == (dy, dx, cin, cout); a torch Conv2d weight
    of shape (256, Cin, 3, 3) maps onto it via transpose(2, 3, 1, 0).
    """
    cmid = 256
    cout = grid_size * grid_size + 1
    ks = jax.random.split(key, 12)
    return dict(
        wa=0.1 * jax.random.normal(ks[0], (3, 3, in_channels, cmid), jnp.float32),
        ba=0.1 * jax.random.normal(ks[1], (cmid,), jnp.float32),
        gamma_a=1.0 + 0.05 * jax.random.normal(ks[2], (cmid,), jnp.float32),
        beta_a=0.05 * jax.random.normal(ks[3], (cmid,), jnp.float32),
        mean_a=0.05 * jax.random.normal(ks[4], (cmid,), jnp.float32),
        var_a=1.0 + 0.1 * jax.random.uniform(ks[5], (cmid,), jnp.float32),
        wb=0.1 * jax.random.normal(ks[6], (cmid, cout), jnp.float32),
        bb=0.1 * jax.random.normal(ks[7], (cout,), jnp.float32),
        gamma_b=1.0 + 0.05 * jax.random.normal(ks[8], (cout,), jnp.float32),
        beta_b=0.05 * jax.random.normal(ks[9], (cout,), jnp.float32),
        mean_b=0.05 * jax.random.normal(ks[10], (cout,), jnp.float32),
        var_b=1.0 + 0.1 * jax.random.uniform(ks[11], (cout,), jnp.float32),
    )


def detector_head_forward(x_nchw, params, grid_size, *, row_tile=2048,
                          return_logit=True, logit_dtype=jnp.float32):
    eps = 1e-5
    N, Cin, H, W = x_nchw.shape
    r = grid_size
    cmid = 256
    cout = r * r + 1
    cp = _round_up(cout, 128)        # softmax channels padded to the lane width
    cin_p = _round_up(Cin, 128)      # K per tap padded to lanes (SuperPoint Cin=128 -> no pad)
    wp = W + 2                       # padded width (1px zero border each side)

    # Row-block tiling: th image rows per grid step, 1-padded-row halo on each side.
    # row_tile ~ 2048 positions amortizes the ~0.35us/grid-step overhead while
    # keeping the tile small enough for v7x's 64 MiB VMEM (and v5e's 16 MiB scoped).
    th = max(1, min(H, row_tile // wp))
    nb = pl.cdiv(H, th)
    hp = nb * th
    m = th * wp
    mb = (th + 2) * wp + 2           # +2 guard rows -> every tap slice stays in bounds

    # ---- glue (data movement only): NCHW -> bf16 NHWC, pad, haloed row blocks ----
    x = jnp.transpose(x_nchw, (0, 2, 3, 1)).astype(jnp.bfloat16)           # (N,H,W,Cin)
    xp = jnp.pad(x, ((0, 0), (1, 1 + hp - H), (1, 1), (0, cin_p - Cin)))    # (N,hp+2,wp,cinp)
    blocks = [xp[:, i * th:i * th + th + 2] for i in range(nb)]             # 2-row overlap
    xb = jnp.stack(blocks, axis=1).reshape(N, nb, (th + 2) * wp, cin_p)
    xb = jnp.pad(xb, ((0, 0), (0, 0), (1, 1), (0, 0)))                      # (N,nb,mb,cinp)

    # ---- glue: fold conv biases and both BatchNorms (eval mode, running stats) ----
    # TODO(synk): training-mode BatchNorm (batch statistics) would need a
    # cross-batch reduction pass and is not folded here.
    sa = params['gamma_a'] / jnp.sqrt(params['var_a'] + eps)                # (256,)
    sha = params['beta_a'] - params['mean_a'] * sa                          # (256,)
    sb = params['gamma_b'] / jnp.sqrt(params['var_b'] + eps)                # (cout,)
    wb2 = params['wb'] * sb[None, :]                                        # BNPb into convPb
    bb2 = (params['bb'] - params['mean_b']) * sb + params['beta_b']
    # Module order is conv -> ReLU -> BNPa -> convPb, so the per-channel BNPa affine
    # folds exactly into the linear 1x1 conv:
    #   (h*sa + sha) @ wb2 + bb2 == h @ (sa*wb2) + (sha@wb2 + bb2)
    wb3 = sa[:, None] * wb2                                                 # (256, cout)
    bb3 = sha @ wb2 + bb2                                                   # (cout,)

    wa9 = params['wa'].reshape(9, Cin, cmid)                                # tap = dy*3+dx
    wa9 = jnp.pad(wa9, ((0, 0), (0, cin_p - Cin), (0, 0))).astype(jnp.bfloat16)
    ba2 = params['ba'].reshape(1, cmid).astype(jnp.float32)
    wbp = jnp.zeros((cmid, cp), jnp.float32).at[:, :cout].set(wb3).astype(jnp.bfloat16)
    bbp = jnp.full((1, cp), -1e30, jnp.float32).at[0, :cout].set(bb3)

    out_shapes, out_specs = [], []
    out_bytes = 0
    if return_logit:
        out_shapes.append(jax.ShapeDtypeStruct((N, nb, m, cp), logit_dtype))
        out_specs.append(pl.BlockSpec((1, 1, m, cp), lambda n, i: (n, i, 0, 0)))
        out_bytes += N * nb * m * cp * jnp.dtype(logit_dtype).itemsize
    out_shapes.append(jax.ShapeDtypeStruct((N, nb, m, cp), jnp.bfloat16))   # prob in bf16
    out_specs.append(pl.BlockSpec((1, 1, m, cp), lambda n, i: (n, i, 0, 0)))
    out_bytes += N * nb * m * cp * 2

    in_bytes = xb.size * 2 + wa9.size * 2 + wbp.size * 2 + ba2.size * 4 + bbp.size * 4
    cost = pl.CostEstimate(
        flops=2 * N * nb * m * (9 * cin_p * cmid + cmid * cp),
        transcendentals=N * nb * m * cp,
        bytes_accessed=int(in_bytes + out_bytes))

    kernel = functools.partial(_detector_head_kernel, th=th, wp=wp,
                               return_logit=return_logit)

    outs = pl.pallas_call(
        kernel,
        out_shape=tuple(out_shapes),
        grid_spec=pltpu.PrefetchScalarGridSpec(
            num_scalar_prefetch=0,
            grid=(N, nb),
            in_specs=[
                pl.BlockSpec((1, 1, mb, cin_p), lambda n, i: (n, i, 0, 0)),
                pl.BlockSpec((9, cin_p, cmid), lambda n, i: (0, 0, 0)),  # resident weights
                pl.BlockSpec((1, cmid), lambda n, i: (0, 0)),
                pl.BlockSpec((cmid, cp), lambda n, i: (0, 0)),
                pl.BlockSpec((1, cp), lambda n, i: (0, 0)),
            ],
            out_specs=tuple(out_specs),
        ),
        compiler_params=pltpu.CompilerParams(
            dimension_semantics=("parallel", "parallel"),
            vmem_limit_bytes=48 * 1024 * 1024),
        cost_estimate=cost,
    )(xb, wa9, ba2, wbp, bbp)

    # ---- glue: drop halo/pad columns, rows and lanes, back to torch conventions ----
    def unblock(y):                                   # (N, nb, th*wp, cp) -> (N, H, W, cp)
        y = y.reshape(N, nb * th, wp, cp)
        return y[:, :H, 1:1 + W, :]

    result = {}
    if return_logit:
        logit_p, prob_p = outs
        result['logit'] = jnp.transpose(unblock(logit_p)[..., :cout], (0, 3, 1, 2))
    else:
        (prob_p,) = outs
    prob = unblock(prob_p)[..., :r * r]
    # TODO(synk): the pixel-shuffle / NCHW transposes below are still separate XLA
    # passes; they could be folded into the kernel store when W*r % 128 == 0.
    prob = prob.reshape(N, H, W, r, r).transpose(0, 1, 3, 2, 4).reshape(N, H * r, W * r)
    result['prob'] = prob
    return result


def _reference_forward(x_nchw, params, grid_size, eps=1e-5):
    """Pure-JAX f32 reference matching the torch module semantics."""
    r = grid_size
    x = jnp.transpose(x_nchw, (0, 2, 3, 1)).astype(jnp.float32)
    h = jax.lax.conv_general_dilated(
        x, params['wa'], window_strides=(1, 1), padding='SAME',
        dimension_numbers=('NHWC', 'HWIO', 'NHWC')) + params['ba']
    h = jnp.maximum(h, 0.0)
    sa = params['gamma_a'] / jnp.sqrt(params['var_a'] + eps)
    h = h * sa + (params['beta_a'] - params['mean_a'] * sa)
    z = jnp.einsum('nhwc,cd->nhwd', h, params['wb']) + params['bb']
    sb = params['gamma_b'] / jnp.sqrt(params['var_b'] + eps)
    z = z * sb + (params['beta_b'] - params['mean_b'] * sb)
    p = jax.nn.softmax(z, axis=-1)[..., :r * r]
    N, H, W, _ = x.shape
    prob = p.reshape(N, H, W, r, r).transpose(0, 1, 3, 2, 4).reshape(N, H * r, W * r)
    logit = jnp.transpose(z, (0, 3, 1, 2))
    return logit, prob


if __name__ == "__main__":
    key = jax.random.PRNGKey(0)
    kx, kp_ = jax.random.split(key)
    N, Cin, H, W = 2, 4, 16, 16
    grid_size = 8
    x = jax.random.normal(kx, (N, Cin, H, W), jnp.float32)
    params = init_params(kp_, Cin, grid_size)

    # row_tile=144 -> 8 image rows per tile -> 2 row-tiles per image, exercising the
    # halo handling across tile boundaries at this toy size. For real SuperPoint
    # shapes keep the default row_tile ~ 2048.
    fwd = jax.jit(lambda inp: detector_head_forward(inp, params, grid_size,
                                                    row_tile=144))
    out = fwd(x)
    jax.block_until_ready(out)

    assert out['logit'].shape == (N, grid_size ** 2 + 1, H, W)
    assert out['prob'].shape == (N, H * grid_size, W * grid_size)
    assert bool(jnp.all(jnp.isfinite(out['logit'])))
    assert bool(jnp.all(jnp.isfinite(out['prob'].astype(jnp.float32))))
    assert bool(jnp.all(out['prob'] >= 0))

    # Loose numeric check vs a pure-JAX reference (kernel uses bf16 matmul operands,
    # bf16 prob storage and an approx-reciprocal softmax denominator).
    logit_ref, prob_ref = _reference_forward(x, params, grid_size)
    logit_err = float(jnp.max(jnp.abs(out['logit'] - logit_ref)))
    prob_err = float(jnp.max(jnp.abs(out['prob'].astype(jnp.float32) - prob_ref)))
    assert logit_err < 0.15, f"logit max abs err {logit_err}"
    assert prob_err < 0.02, f"prob max abs err {prob_err}"

    print("KERNEL_OK")
</pallas_src>

<mosaic_0001>
module attributes {stable_mosaic.version = 11 : i64} {
  func.func @_detector_head_kernel(%arg0: i32, %arg1: i32, %arg2: memref<1x1x182x128xbf16, #tpu.memory_space<vmem>>, %arg3: memref<9x128x256xbf16, #tpu.memory_space<vmem>>, %arg4: memref<1x256xf32, #tpu.memory_space<vmem>>, %arg5: memref<256x128xbf16, #tpu.memory_space<vmem>>, %arg6: memref<1x128xf32, #tpu.memory_space<vmem>>, %arg7: memref<1x1x144x128xf32, #tpu.memory_space<vmem>>, %arg8: memref<1x1x144x128xbf16, #tpu.memory_space<vmem>>) attributes {dimension_semantics = [#tpu.dimension_semantics<parallel>, #tpu.dimension_semantics<parallel>], iteration_bounds = array<i64: 2, 2>, scalar_prefetch = 0 : i64, scratch_operands = 0 : i64, tpu.core_type = #tpu.core_type<tc>, window_params = [{transform_indices = @transform_0, window_bounds = array<i64: 1, 1, 182, 128>}, {pipeline_mode = #tpu.pipeline_mode<synchronous>, transform_indices = @transform_1, window_bounds = array<i64: 9, 128, 256>}, {pipeline_mode = #tpu.pipeline_mode<synchronous>, transform_indices = @transform_2, window_bounds = array<i64: 1, 256>}, {pipeline_mode = #tpu.pipeline_mode<synchronous>, transform_indices = @transform_3, window_bounds = array<i64: 256, 128>}, {pipeline_mode = #tpu.pipeline_mode<synchronous>, transform_indices = @transform_4, window_bounds = array<i64: 1, 128>}, {transform_indices = @transform_5, window_bounds = array<i64: 1, 1, 144, 128>}, {transform_indices = @transform_6, window_bounds = array<i64: 1, 1, 144, 128>}]} {
    %cst = arith.constant 0.000000e+00 : f32
    %0 = vector.broadcast %cst : f32 to vector<144x256xf32>
    %c0 = arith.constant 0 : index
    %c0_0 = arith.constant 0 : index
    %c0_1 = arith.constant 0 : index
    %c0_2 = arith.constant 0 : index
    %1 = vector.load %arg2[%c0, %c0_0, %c0_1, %c0_2] : memref<1x1x182x128xbf16, #tpu.memory_space<vmem>>, vector<1x1x144x128xbf16>
    %2 = vector.shape_cast %1 : vector<1x1x144x128xbf16> to vector<144x128xbf16>
    %c0_3 = arith.constant 0 : index
    %c0_4 = arith.constant 0 : index
    %c0_5 = arith.constant 0 : index
    %3 = vector.load %arg3[%c0_3, %c0_4, %c0_5] : memref<9x128x256xbf16, #tpu.memory_space<vmem>>, vector<1x128x256xbf16>
    %4 = vector.shape_cast %3 : vector<1x128x256xbf16> to vector<128x256xbf16>
    %cst_6 = arith.constant dense<0.000000e+00> : vector<144x256xf32>
    %5 = tpu.matmul %2, %4, %cst_6 {dimension_numbers = #tpu.dot_dimension_numbers<[1], [0], [0], [1], [0, 0, 1, 1], [], []>} : vector<144x128xbf16>, vector<128x256xbf16>, vector<144x256xf32> -> vector<144x256xf32>
    %6 = arith.addf %0, %5 : vector<144x256xf32>
    %c0_7 = arith.constant 0 : index
    %c0_8 = arith.constant 0 : index
    %c1 = arith.constant 1 : index
    %c0_9 = arith.constant 0 : index
    %7 = vector.load %arg2[%c0_7, %c0_8, %c1, %c0_9] : memref<1x1x182x128xbf16, #tpu.memory_space<vmem>>, vector<1x1x144x128xbf16>
    %8 = vector.shape_cast %7 : vector<1x1x144x128xbf16> to vector<144x128xbf16>
    %c1_10 = arith.constant 1 : index
    %c0_11 = arith.constant 0 : index
    %c0_12 = arith.constant 0 : index
    %9 = vector.load %arg3[%c1_10, %c0_11, %c0_12] : memref<9x128x256xbf16, #tpu.memory_space<vmem>>, vector<1x128x256xbf16>
    %10 = vector.shape_cast %9 : vector<1x128x256xbf16> to vector<128x256xbf16>
    %cst_13 = arith.constant dense<0.000000e+00> : vector<144x256xf32>
    %11 = tpu.matmul %8, %10, %cst_13 {dimension_numbers = #tpu.dot_dimension_numbers<[1], [0], [0], [1], [0, 0, 1, 1], [], []>} : vector<144x128xbf16>, vector<128x256xbf16>, vector<144x256xf32> -> vector<144x256xf32>
    %12 = arith.addf %6, %11 : vector<144x256xf32>
    %c0_14 = arith.constant 0 : index
    %c0_15 = arith.constant 0 : index
    %c2 = arith.constant 2 : index
    %c0_16 = arith.constant 0 : index
    %13 = vector.load %arg2[%c0_14, %c0_15, %c2, %c0_16] : memref<1x1x182x128xbf16, #tpu.memory_space<vmem>>, vector<1x1x144x128xbf16>
    %14 = vector.shape_cast %13 : vector<1x1x144x128xbf16> to vector<144x128xbf16>
    %c2_17 = arith.constant 2 : index
    %c0_18 = arith.constant 0 : index
    %c0_19 = arith.constant 0 : index
    %15 = vector.load %arg3[%c2_17, %c0_18, %c0_19] : memref<9x128x256xbf16, #tpu.memory_space<vmem>>, vector<1x128x256xbf16>
    %16 = vector.shape_cast %15 : vector<1x128x256xbf16> to vector<128x256xbf16>
    %cst_20 = arith.constant dense<0.000000e+00> : vector<144x256xf32>
    %17 = tpu.matmul %14, %16, %cst_20 {dimension_numbers = #tpu.dot_dimension_numbers<[1], [0], [0], [1], [0, 0, 1, 1], [], []>} : vector<144x128xbf16>, vector<128x256xbf16>, vector<144x256xf32> -> vector<144x256xf32>
    %18 = arith.addf %12, %17 : vector<144x256xf32>
    %c0_21 = arith.constant 0 : index
    %c0_22 = arith.constant 0 : index
    %c18 = arith.constant 18 : index
    %c0_23 = arith.constant 0 : index
    %19 = vector.load %arg2[%c0_21, %c0_22, %c18, %c0_23] : memref<1x1x182x128xbf16, #tpu.memory_space<vmem>>, vector<1x1x144x128xbf16>
    %20 = vector.shape_cast %19 : vector<1x1x144x128xbf16> to vector<144x128xbf16>
    %c3 = arith.constant 3 : index
    %c0_24 = arith.constant 0 : index
    %c0_25 = arith.constant 0 : index
    %21 = vector.load %arg3[%c3, %c0_24, %c0_25] : memref<9x128x256xbf16, #tpu.memory_space<vmem>>, vector<1x128x256xbf16>
    %22 = vector.shape_cast %21 : vector<1x128x256xbf16> to vector<128x256xbf16>
    %cst_26 = arith.constant dense<0.000000e+00> : vector<144x256xf32>
    %23 = tpu.matmul %20, %22, %cst_26 {dimension_numbers = #tpu.dot_dimension_numbers<[1], [0], [0], [1], [0, 0, 1, 1], [], []>} : vector<144x128xbf16>, vector<128x256xbf16>, vector<144x256xf32> -> vector<144x256xf32>
    %24 = arith.addf %18, %23 : vector<144x256xf32>
    %c0_27 = arith.constant 0 : index
    %c0_28 = arith.constant 0 : index
    %c19 = arith.constant 19 : index
    %c0_29 = arith.constant 0 : index
    %25 = vector.load %arg2[%c0_27, %c0_28, %c19, %c0_29] : memref<1x1x182x128xbf16, #tpu.memory_space<vmem>>, vector<1x1x144x128xbf16>
    %26 = vector.shape_cast %25 : vector<1x1x144x128xbf16> to vector<144x128xbf16>
    %c4 = arith.constant 4 : index
    %c0_30 = arith.constant 0 : index
    %c0_31 = arith.constant 0 : index
    %27 = vector.load %arg3[%c4, %c0_30, %c0_31] : memref<9x128x256xbf16, #tpu.memory_space<vmem>>, vector<1x128x256xbf16>
    %28 = vector.shape_cast %27 : vector<1x128x256xbf16> to vector<128x256xbf16>
    %cst_32 = arith.constant dense<0.000000e+00> : vector<144x256xf32>
    %29 = tpu.matmul %26, %28, %cst_32 {dimension_numbers = #tpu.dot_dimension_numbers<[1], [0], [0], [1], [0, 0, 1, 1], [], []>} : vector<144x128xbf16>, vector<128x256xbf16>, vector<144x256xf32> -> vector<144x256xf32>
    %30 = arith.addf %24, %29 : vector<144x256xf32>
    %c0_33 = arith.constant 0 : index
    %c0_34 = arith.constant 0 : index
    %c20 = arith.constant 20 : index
    %c0_35 = arith.constant 0 : index
    %31 = vector.load %arg2[%c0_33, %c0_34, %c20, %c0_35] : memref<1x1x182x128xbf16, #tpu.memory_space<vmem>>, vector<1x1x144x128xbf16>
    %32 = vector.shape_cast %31 : vector<1x1x144x128xbf16> to vector<144x128xbf16>
    %c5 = arith.constant 5 : index
    %c0_36 = arith.constant 0 : index
    %c0_37 = arith.constant 0 : index
    %33 = vector.load %arg3[%c5, %c0_36, %c0_37] : memref<9x128x256xbf16, #tpu.memory_space<vmem>>, vector<1x128x256xbf16>
    %34 = vector.shape_cast %33 : vector<1x128x256xbf16> to vector<128x256xbf16>
    %cst_38 = arith.constant dense<0.000000e+00> : vector<144x256xf32>
    %35 = tpu.matmul %32, %34, %cst_38 {dimension_numbers = #tpu.dot_dimension_numbers<[1], [0], [0], [1], [0, 0, 1, 1], [], []>} : vector<144x128xbf16>, vector<128x256xbf16>, vector<144x256xf32> -> vector<144x256xf32>
    %36 = arith.addf %30, %35 : vector<144x256xf32>
    %c0_39 = arith.constant 0 : index
    %c0_40 = arith.constant 0 : index
    %c36 = arith.constant 36 : index
    %c0_41 = arith.constant 0 : index
    %37 = vector.load %arg2[%c0_39, %c0_40, %c36, %c0_41] : memref<1x1x182x128xbf16, #tpu.memory_space<vmem>>, vector<1x1x144x128xbf16>
    %38 = vector.shape_cast %37 : vector<1x1x144x128xbf16> to vector<144x128xbf16>
    %c6 = arith.constant 6 : index
    %c0_42 = arith.constant 0 : index
    %c0_43 = arith.constant 0 : index
    %39 = vector.load %arg3[%c6, %c0_42, %c0_43] : memref<9x128x256xbf16, #tpu.memory_space<vmem>>, vector<1x128x256xbf16>
    %40 = vector.shape_cast %39 : vector<1x128x256xbf16> to vector<128x256xbf16>
    %cst_44 = arith.constant dense<0.000000e+00> : vector<144x256xf32>
    %41 = tpu.matmul %38, %40, %cst_44 {dimension_numbers = #tpu.dot_dimension_numbers<[1], [0], [0], [1], [0, 0, 1, 1], [], []>} : vector<144x128xbf16>, vector<128x256xbf16>, vector<144x256xf32> -> vector<144x256xf32>
    %42 = arith.addf %36, %41 : vector<144x256xf32>
    %c0_45 = arith.constant 0 : index
    %c0_46 = arith.constant 0 : index
    %c37 = arith.constant 37 : index
    %c0_47 = arith.constant 0 : index
    %43 = vector.load %arg2[%c0_45, %c0_46, %c37, %c0_47] : memref<1x1x182x128xbf16, #tpu.memory_space<vmem>>, vector<1x1x144x128xbf16>
    %44 = vector.shape_cast %43 : vector<1x1x144x128xbf16> to vector<144x128xbf16>
    %c7 = arith.constant 7 : index
    %c0_48 = arith.constant 0 : index
    %c0_49 = arith.constant 0 : index
    %45 = vector.load %arg3[%c7, %c0_48, %c0_49] : memref<9x128x256xbf16, #tpu.memory_space<vmem>>, vector<1x128x256xbf16>
    %46 = vector.shape_cast %45 : vector<1x128x256xbf16> to vector<128x256xbf16>
    %cst_50 = arith.constant dense<0.000000e+00> : vector<144x256xf32>
    %47 = tpu.matmul %44, %46, %cst_50 {dimension_numbers = #tpu.dot_dimension_numbers<[1], [0], [0], [1], [0, 0, 1, 1], [], []>} : vector<144x128xbf16>, vector<128x256xbf16>, vector<144x256xf32> -> vector<144x256xf32>
    %48 = arith.addf %42, %47 : vector<144x256xf32>
    %c0_51 = arith.constant 0 : index
    %c0_52 = arith.constant 0 : index
    %c38 = arith.constant 38 : index
    %c0_53 = arith.constant 0 : index
    %49 = vector.load %arg2[%c0_51, %c0_52, %c38, %c0_53] : memref<1x1x182x128xbf16, #tpu.memory_space<vmem>>, vector<1x1x144x128xbf16>
    %50 = vector.shape_cast %49 : vector<1x1x144x128xbf16> to vector<144x128xbf16>
    %c8 = arith.constant 8 : index
    %c0_54 = arith.constant 0 : index
    %c0_55 = arith.constant 0 : index
    %51 = vector.load %arg3[%c8, %c0_54, %c0_55] : memref<9x128x256xbf16, #tpu.memory_space<vmem>>, vector<1x128x256xbf16>
    %52 = vector.shape_cast %51 : vector<1x128x256xbf16> to vector<128x256xbf16>
    %cst_56 = arith.constant dense<0.000000e+00> : vector<144x256xf32>
    %53 = tpu.matmul %50, %52, %cst_56 {dimension_numbers = #tpu.dot_dimension_numbers<[1], [0], [0], [1], [0, 0, 1, 1], [], []>} : vector<144x128xbf16>, vector<128x256xbf16>, vector<144x256xf32> -> vector<144x256xf32>
    %54 = arith.addf %48, %53 : vector<144x256xf32>
    %c0_57 = arith.constant 0 : index
    %c0_58 = arith.constant 0 : index
    %55 = vector.load %arg4[%c0_57, %c0_58] : memref<1x256xf32, #tpu.memory_space<vmem>>, vector<1x256xf32>
    %56 = vector.broadcast %55 : vector<1x256xf32> to vector<144x256xf32>
    %57 = arith.addf %54, %56 : vector<144x256xf32>
    %cst_59 = arith.constant 0.000000e+00 : f32
    %58 = vector.broadcast %cst_59 : f32 to vector<144x256xf32>
    %59 = arith.maximumf %57, %58 : vector<144x256xf32>
    %60 = arith.truncf %59 : vector<144x256xf32> to vector<144x256xbf16>
    %c0_60 = arith.constant 0 : index
    %c0_61 = arith.constant 0 : index
    %61 = vector.load %arg5[%c0_60, %c0_61] : memref<256x128xbf16, #tpu.memory_space<vmem>>, vector<256x128xbf16>
    %cst_62 = arith.constant dense<0.000000e+00> : vector<144x128xf32>
    %62 = tpu.matmul %60, %61, %cst_62 {dimension_numbers = #tpu.dot_dimension_numbers<[1], [0], [0], [1], [0, 0, 1, 1], [], []>} : vector<144x256xbf16>, vector<256x128xbf16>, vector<144x128xf32> -> vector<144x128xf32>
    %c0_63 = arith.constant 0 : index
    %c0_64 = arith.constant 0 : index
    %63 = vector.load %arg6[%c0_63, %c0_64] : memref<1x128xf32, #tpu.memory_space<vmem>>, vector<1x128xf32>
    %64 = vector.broadcast %63 : vector<1x128xf32> to vector<144x128xf32>
    %65 = arith.addf %62, %64 : vector<144x128xf32>
    %cst_65 = arith.constant dense<0xFF800000> : vector<144xf32>
    %66 = vector.multi_reduction <maximumf>, %65, %cst_65 [1] : vector<144x128xf32> to vector<144xf32>
    %67 = vector.shape_cast %66 : vector<144xf32> to vector<144x1xf32>
    %68 = vector.broadcast %67 : vector<144x1xf32> to vector<144x128xf32>
    %69 = arith.subf %65, %68 : vector<144x128xf32>
    %70 = math.exp %69 : vector<144x128xf32>
    %cst_66 = arith.constant dense<0.000000e+00> : vector<144xf32>
    %71 = vector.multi_reduction <add>, %70, %cst_66 [1] : vector<144x128xf32> to vector<144xf32>
    %72 = vector.shape_cast %71 : vector<144xf32> to vector<144x1xf32>
    %73 = tpu.reciprocal %72 {approx = true} : vector<144x1xf32> -> vector<144x1xf32>
    %74 = vector.broadcast %73 : vector<144x1xf32> to vector<144x128xf32>
    %75 = arith.mulf %70, %74 : vector<144x128xf32>
    %c0_67 = arith.constant 0 : index
    %c0_68 = arith.constant 0 : index
    %c0_69 = arith.constant 0 : index
    %c0_70 = arith.constant 0 : index
    %76 = vector.load %arg7[%c0_67, %c0_68, %c0_69, %c0_70] : memref<1x1x144x128xf32, #tpu.memory_space<vmem>>, vector<1x1x144x128xf32>
    %77 = vector.shape_cast %76 : vector<1x1x144x128xf32> to vector<144x128xf32>
    %78 = vector.shape_cast %65 : vector<144x128xf32> to vector<1x1x144x128xf32>
    tpu.vector_store %arg7[%c0_67, %c0_68, %c0_69, %c0_70], %78 {strides = array<i32>} : memref<1x1x144x128xf32, #tpu.memory_space<vmem>>, vector<1x1x144x128xf32>,
    %79 = arith.truncf %75 : vector<144x128xf32> to vector<144x128xbf16>
    %c0_71 = arith.constant 0 : index
    %c0_72 = arith.constant 0 : index
    %c0_73 = arith.constant 0 : index
    %c0_74 = arith.constant 0 : index
    %80 = vector.load %arg8[%c0_71, %c0_72, %c0_73, %c0_74] : memref<1x1x144x128xbf16, #tpu.memory_space<vmem>>, vector<1x1x144x128xbf16>
    %81 = vector.shape_cast %80 : vector<1x1x144x128xbf16> to vector<144x128xbf16>
    %82 = vector.shape_cast %79 : vector<144x128xbf16> to vector<1x1x144x128xbf16>
    tpu.vector_store %arg8[%c0_71, %c0_72, %c0_73, %c0_74], %82 {strides = array<i32>} : memref<1x1x144x128xbf16, #tpu.memory_space<vmem>>, vector<1x1x144x128xbf16>,
    return
  }
  func.func @transform_0(%arg0: i32, %arg1: i32) -> (i32, i32, i32, i32) {
    %c0_i32 = arith.constant 0 : i32
    %c0_i32_0 = arith.constant 0 : i32
    %c0_i32_1 = arith.constant 0 : i32
    return %arg0, %arg1, %c0_i32, %c0_i32_0 : i32, i32, i32, i32
  }
  func.func @transform_1(%arg0: i32, %arg1: i32) -> (i32, i32, i32) {
    %c0_i32 = arith.constant 0 : i32
    %c0_i32_0 = arith.constant 0 : i32
    %c0_i32_1 = arith.constant 0 : i32
    %c0_i32_2 = arith.constant 0 : i32
    return %c0_i32, %c0_i32_0, %c0_i32_1 : i32, i32, i32
  }
  func.func @transform_2(%arg0: i32, %arg1: i32) -> (i32, i32) {
    %c0_i32 = arith.constant 0 : i32
    %c0_i32_0 = arith.constant 0 : i32
    %c0_i32_1 = arith.constant 0 : i32
    return %c0_i32, %c0_i32_0 : i32, i32
  }
  func.func @transform_3(%arg0: i32, %arg1: i32) -> (i32, i32) {
    %c0_i32 = arith.constant 0 : i32
    %c0_i32_0 = arith.constant 0 : i32
    %c0_i32_1 = arith.constant 0 : i32
    return %c0_i32, %c0_i32_0 : i32, i32
  }
  func.func @transform_4(%arg0: i32, %arg1: i32) -> (i32, i32) {
    %c0_i32 = arith.constant 0 : i32
    %c0_i32_0 = arith.constant 0 : i32
    %c0_i32_1 = arith.constant 0 : i32
    return %c0_i32, %c0_i32_0 : i32, i32
  }
  func.func @transform_5(%arg0: i32, %arg1: i32) -> (i32, i32, i32, i32) {
    %c0_i32 = arith.constant 0 : i32
    %c0_i32_0 = arith.constant 0 : i32
    %c0_i32_1 = arith.constant 0 : i32
    return %arg0, %arg1, %c0_i32, %c0_i32_0 : i32, i32, i32, i32
  }
  func.func @transform_6(%arg0: i32, %arg1: i32) -> (i32, i32, i32, i32) {
    %c0_i32 = arith.constant 0 : i32
    %c0_i32_0 = arith.constant 0 : i32
    %c0_i32_1 = arith.constant 0 : i32
    return %arg0, %arg1, %c0_i32, %c0_i32_0 : i32, i32, i32, i32
  }
}

</mosaic_0001>

<bundles_post_ra>
// kernel: _lambda_.1
= control target key start
LH: loop header
LB: loop body
LE: loop exit
PB: predicated region body
PF: predicated region fallthrough
CT: control target
= control target key end

     0   :  { %s4913_s21 = smov 0   ;;  %s4915_s22 = smov 0   ;;  %s6720_s0 = inlined_call_operand.vmem [shape: bf16[2,2,182,128], index: 0, kind: input, shape index: {}]   ;;  %s6721_s1 = inlined_call_operand.vmem [shape: bf16[9,128,256], index: 1, kind: input, shape index: {}]   ;;  %s6722_s2 = inlined_call_operand.vmem [shape: f32[1,256], index: 2, kind: input, shape index: {}]   ;;  %s6723_s3 = inlined_call_operand.vmem [shape: bf16[256,128], index: 3, kind: input, shape index: {}]   ;;  %s6724_s4 = inlined_call_operand.vmem [shape: f32[1,128], index: 4, kind: input, shape index: {}]   ;;  %s6725_s5 = inlined_call_operand.vmem [shape: f32[2,2,144,128], index: 5, kind: output, shape index: {0}]   ;;  %s6726_s6 = inlined_call_operand.vmem [shape: bf16[2,2,144,128], index: 6, kind: output, shape index: {1}]  }
   0x1   :  { %s4917_s23 = smov 0   ;;  %s4919_s24 = smov 0  }
   0x2   :  { %s4921_s25 = smov 0  }
   0x3 LB: > { %s26_s26 = sadd.s32 1, %s4867_s23  ;;  %s29_s27 = sadd.s32 1, %s4871_s24  ;;  %s4875_s25 = sphi %s4921_s25, %s17_s25   ;;  %s4871_s24 = sphi %s4919_s24, %s6759_s24   ;;  %s4867_s23 = sphi %s4917_s23, %s6758_s23   ;;  %s4863_s22 = sphi %s4915_s22, %s6757_s22   ;;  %s4859_s21 = sphi %s4913_s21, %s6756_s21  }
   0x4   : > { %p27_p0 = scmp.ge.s32.totalorder %s26_s26, 2  ;;  %p3964_p1 = scmp.ge.s32.totalorder %s4875_s25, 1 }
   0x5   : > { %p237_p2 = scmp.lt.s32.totalorder %s4875_s25, 5 }
   0x6   : > { %s6761_s26 = smov (%p27_p0, %s26_s26), 0  ;;  %s6763_s27 = smov (!%p27_p0, %s29_s27), %s4871_s24 }
   0x7   : > { %p238_p3 = pnand %p3964_p1, %p237_p2  ;;  %p31_p4 = scmp.ge.s32.totalorder %s6763_s27, 2 }
   0x9   : > { %s6765_s27 = smov (%p31_p4, %s6763_s27), 0  ;;  %241 = sbr.rel (%p238_p3) target bundleno = 1124 (0x464), region = 40 }
   0xe   : > { %v4498_v0 = vld [vmem:[%s6721_s1 + $0xf4] ss:$8 sps:$4 sm:$0xff]   ;;  %p284_p5 = scmp.lt.s32.totalorder %s4863_s22, 1  ;;  %v6727_v2 = vmov 0   ;;  %p286_p6 = scmp.lt.s32.totalorder %s4859_s21, 1  ;;  %vm934_vm1 = vcmask 1046528  }
   0xf   : > { %v4500_v1 = vld [vmem:[%s6721_s1 + $0x74] ss:$8 sps:$4 sm:$0xff]   ;;  %610 = vmatprep.mubr.bf16.mxu0 %v6727_v2  ;;  %822 = vmatprep.mubr.bf16.mxu1 %v6727_v2  ;;  %v4502_v3 = vld [vmem:[%s6721_s1 + $0xf0] ss:$8 sps:$4 sm:$0xff]   ;;  %v4504_v5 = vld [vmem:[%s6721_s1 + $0xe4] ss:$8 sps:$4 sm:$0xff]  }
  0x10   : > { %578 = vmatprep.subr.bf16.mxu0 %v4498_v0  ;;  %v4503_v4 = vld [vmem:[%s6721_s1 + $0x70] ss:$8 sps:$4 sm:$0xff]   ;;  %s6767_s22 = smov (!%p284_p5, %s4863_s22), 1  ;;  %790 = vmatprep.subr.bf16.mxu1 %v4500_v1  ;;  %v4506_v6 = vld [vmem:[%s6721_s1 + $0x64] ss:$8 sps:$4 sm:$0xff]   ;;  %s6769_s21 = smov (!%p286_p6, %s4859_s21), 1 }
  0x11   : > { %579 = vmatpush1.bf16.msra.mxu0 %v4502_v3  ;;  %791 = vmatpush1.bf16.msra.mxu1 %v4503_v4  ;;  %v4508_v7 = vld [vmem:[%s6721_s1 + $0xe0] ss:$8 sps:$4 sm:$0xff]   ;;  %v4510_v9 = vld [vmem:[%s6721_s1 + $0xd4] ss:$8 sps:$4 sm:$0xff]   ;;  %s4454_s29 = smul.u32 46, %s6767_s22  ;;  %vm1933_vm3 = vcmask 1045504  }
  0x12   : > { %580 = vmatprep.subr.bf16.mxu0 %v4504_v5  ;;  %v4509_v8 = vld [vmem:[%s6721_s1 + $0x60] ss:$8 sps:$4 sm:$0xff]   ;;  %792 = vmatprep.subr.bf16.mxu1 %v4506_v6  ;;  %v4512_v10 = vld [vmem:[%s6721_s1 + $0x54] ss:$8 sps:$4 sm:$0xff]   ;;  %v4514_v11 = vld [vmem:[%s6721_s1 + $0xd0] ss:$8 sps:$4 sm:$0xff]  }
  0x13   : > { %v4515_v12 = vld [vmem:[%s6721_s1 + $0x50] ss:$8 sps:$4 sm:$0xff]   ;;  %v4516_v13 = vld [vmem:[%s6721_s1 + $0xc4] ss:$8 sps:$4 sm:$0xff]   ;;  %s4453_s14 = smul.u32 23, %s6769_s21  ;;  %vm2932_vm5 = vcmask 1044480  }
  0x14   : > { %v4518_v14 = vld [vmem:[%s6721_s1 + $0x44] ss:$8 sps:$4 sm:$0xff]   ;;  %v4520_v15 = vld [vmem:[%s6721_s1 + $0xc0] ss:$8 sps:$4 sm:$0xff]   ;;  %v4522_v17 = vld [vmem:[%s6721_s1 + $0xb4] ss:$8 sps:$4 sm:$0xff]  }
  0x15   : > { %581 = vmatpush1.bf16.msra.mxu0 %v4508_v7  ;;  %793 = vmatpush1.bf16.msra.mxu1 %v4509_v8  ;;  %v4521_v16 = vld [vmem:[%s6721_s1 + $0x40] ss:$8 sps:$4 sm:$0xff]   ;;  %s290_s7 = sadd.s32 %s4454_s29, %s4453_s14  ;;  %v4524_v18 = vld [vmem:[%s6721_s1 + $0x34] ss:$8 sps:$4 sm:$0xff]   ;;  %v4526_v19 = vld [vmem:[%s6721_s1 + $0xb0] ss:$8 sps:$4 sm:$0xff]  }
  0x16   : > { %582 = vmatprep.subr.bf16.mxu0 %v4510_v9  ;;  %794 = vmatprep.subr.bf16.mxu1 %v4512_v10  ;;  %v4527_v20 = vld [vmem:[%s6721_s1 + $0x30] ss:$8 sps:$4 sm:$0xff]   ;;  %s3965_s15 = sshll.u32 %s290_s7, 2  ;;  %v4528_v21 = vld [vmem:[%s6721_s1 + $0xa4] ss:$8 sps:$4 sm:$0xff]   ;;  %s4456_s9 = smul.u32 36, %s6767_s22 }
  0x17   : > { %v4530_v22 = vld [vmem:[%s6721_s1 + $0x24] ss:$8 sps:$4 sm:$0xff]   ;;  %s5024_s20 = scalar_lea.vmem %s6720_s0, %s3965_s15  ;;  %v4532_v23 = vld [vmem:[%s6721_s1 + $0xa0] ss:$8 sps:$4 sm:$0xff]   ;;  %v4534_v25 = vld [vmem:[%s6721_s1 + $0x94] ss:$8 sps:$4 sm:$0xff]  }
  0x18   : > { %v4533_v24 = vld [vmem:[%s6721_s1 + $0x20] ss:$8 sps:$4 sm:$0xff]   ;;  %v4536_v26 = vld [vmem:[%s6721_s1 + $0x14] ss:$8 sps:$4 sm:$0xff]   ;;  %v5040_v28 = vld [vmem:[%s5024_s20 + $0x4] sm:$0xf] }
  0x19   : > { %583 = vmatpush1.bf16.msra.mxu0 %v4514_v11  ;;  %795 = vmatpush1.bf16.msra.mxu1 %v4515_v12  ;;  %v312_v27 = vld [vmem:[%s5024_s20] sm:$0xf]  ;;  %v4538_v29 = vld [vmem:[%s6721_s1 + $0x90] ss:$8 sps:$4 sm:$0xff]   ;;  %v5050_v32 = vld [vmem:[%s5024_s20 + $0x8] sm:$0xff]  }
  0x1a   : > { %584 = vmatprep.subr.bf16.mxu0 %v4516_v13  ;;  %796 = vmatprep.subr.bf16.mxu1 %v4518_v14  ;;  %v4539_v30 = vld [vmem:[%s6721_s1 + $0x10] ss:$8 sps:$4 sm:$0xff]   ;;  %v3984_v31 = vcombine.low %v312_v27, %v5040_v28  ;;  %v4540_v33 = vld [vmem:[%s6721_s1 + $0x84] ss:$8 sps:$4 sm:$0xff]   ;;  %v421_v37 = vshll.u32 %v5050_v32, 16  ;;  %v425_v47 = vshrl.u32 %v5050_v32, 16 }
  0x1b   : > { %v4542_v34 = vld [vmem:[%s6721_s1 + $0x4] ss:$8 sps:$4 sm:$0xff]   ;;  %v4544_v38 = vld [vmem:[%s6721_s1 + $0x80] ss:$8 sps:$4 sm:$0xff]   ;;  %v5066_v43 = vld [vmem:[%s5024_s20 + $0x10] sm:$0xff]   ;;  %v936_v50 = vrot.slane %v5050_v32, 1 }
  0x1c   : > { %v414_v35 = vshrl.u32 %v3984_v31, 16  ;;  %v416_v36 = vshll.u32 %v3984_v31, 16  ;;  %v4545_v40 = vld [vmem:[%s6721_s1] ss:$8 sps:$4 sm:$0xff]   ;;  %v423_v42 = vrot.slane %v421_v37, 1  ;;  %v429_v48 = vshll.u32 %v5066_v43, 16 }
  0x1d   : > { %585 = vmatpush1.bf16.msra.mxu0 %v4520_v15  ;;  %797 = vmatpush1.bf16.msra.mxu1 %v4521_v16  ;;  %vm412_vm0 = vsmask.f32 7424  ;;  %v4550_v44 = vld [vmem:[%s6721_s1 + $0x174] ss:$8 sps:$4 sm:$0xff]   ;;  %v4548_v45 = vld [vmem:[%s6721_s1 + $0x170] ss:$8 sps:$4 sm:$0xff]  }
  0x1e   : > { %586 = vmatprep.subr.bf16.mxu0 %v4522_v17  ;;  %798 = vmatprep.subr.bf16.mxu1 %v4524_v18  ;;  %v418_v39 = vrot.slane %v416_v36, 1  ;;  %v4554_v49 = vld [vmem:[%s6721_s1 + $0x164] ss:$8 sps:$4 sm:$0xff]   ;;  %v938_v51 = vrot.slane %v5066_v43, 1  ;;  %v4552_v52 = vld [vmem:[%s6721_s1 + $0x160] ss:$8 sps:$4 sm:$0xff]   ;;  %v427_v57 = vor.u32 %v425_v47, %v423_v42 }
  0x1f   : > { %v5086_v53 = vld [vmem:[%s5024_s20 + $0x18] sm:$0xff]   ;;  %v5092_v55 = vld [vmem:[%s5024_s20 + $0x20] sm:$0xff]   ;;  %v431_v58 = vrot.slane %v429_v48, 1  ;;  %v433_v62 = vshrl.u32 %v5066_v43, 16  ;;  %v5110_v63 = vld [vmem:[%s5024_s20 + $0x28] sm:$0xff]  }
  0x20   : > { %v419_v41 = vor.u32 %v418_v39, %v414_v35  ;;  %v4558_v54 = vld [vmem:[%s6721_s1 + $0x154] ss:$8 sps:$4 sm:$0xff]   ;;  %v5097_v56 = vsel %vm934_vm1, %v936_v50, %v938_v51  ;;  %v4568_v59 = vld [vmem:[%s6721_s1 + $0x1f0] ss:$8 sps:$4 sm:$0xff]   ;;  %v940_v61 = vrot.slane %v5086_v53, 1  ;;  %v942_v6 = vrot.slane %v5092_v55, 1 }
  0x21   : > { %587 = vmatpush1.bf16.msra.mxu0 %v4526_v19  ;;  %799 = vmatpush1.bf16.msra.mxu1 %v4527_v20  ;;  %v4570_v60 = vld [vmem:[%s6721_s1 + $0x1f4] ss:$8 sps:$4 sm:$0xff]   ;;  %v4556_v1 = vld [vmem:[%s6721_s1 + $0x150] ss:$8 sps:$4 sm:$0xff]   ;;  %v4574_v3 = vld [vmem:[%s6721_s1 + $0x1e0] ss:$8 sps:$4 sm:$0xff]   ;;  %v432_v7 = vsel %vm412_vm0, %v427_v57, %v431_v58  ;;  %v435_v19 = vor.u32 %v433_v62, %v431_v58 }
  0x22   : > { %588 = vmatprep.subr.bf16.mxu0 %v4528_v21  ;;  %800 = vmatprep.subr.bf16.mxu1 %v4530_v22  ;;  %v424_v46 = vsel %vm412_vm0, %v419_v41, %v423_v42  ;;  %v5113_v0 = vld [vmem:[%s5024_s20 + $0x30] sm:$0xff]   ;;  %v4576_v4 = vld [vmem:[%s6721_s1 + $0x1e4] ss:$8 sps:$4 sm:$0xff]   ;;  %v5125_v5 = vsel %vm934_vm1, %v938_v51, %v940_v61  ;;  %v437_v8 = vshll.u32 %v5086_v53, 16  ;;  %v944_v10 = vrot.slane %v5110_v63, 1  ;;  %v5135_v11 = vld [vmem:[%s5024_s20 + $0x38] sm:$0xff]  }
  0x23   : > { %v4562_v9 = vld [vmem:[%s6721_s1 + $0x144] ss:$8 sps:$4 sm:$0xff]   ;;  %v5138_v12 = vsel %vm934_vm1, %v940_v61, %v942_v6  ;;  %v946_v13 = vrot.slane %v5113_v0, 1  ;;  %v4580_v14 = vld [vmem:[%s6721_s1 + $0x1d4] ss:$8 sps:$4 sm:$0xff]   ;;  %v948_v18 = vrot.slane %v5135_v11, 1 }
  0x24   : > { %v5145_v15 = vsel %vm934_vm1, %v942_v6, %v944_v10  ;;  %v4560_v16 = vld [vmem:[%s6721_s1 + $0x140] ss:$8 sps:$4 sm:$0xff]   ;;  %v439_v20 = vrot.slane %v437_v8, 1  ;;  %v4566_v21 = vld [vmem:[%s6721_s1 + $0x134] ss:$8 sps:$4 sm:$0xff]   ;;  %v445_v27 = vshll.u32 %v5092_v55, 16 }
  0x25   : > { %589 = vmatpush1.bf16.msra.mxu0 %v4532_v23  ;;  %801 = vmatpush1.bf16.msra.mxu1 %v4533_v24  ;;  %v5152_v17 = vsel %vm934_vm1, %v944_v10, %v946_v13  ;;  %v4578_v22 = vld [vmem:[%s6721_s1 + $0x1d0] ss:$8 sps:$4 sm:$0xff]   ;;  %v4586_v23 = vld [vmem:[%s6721_s1 + $0x1c4] ss:$8 sps:$4 sm:$0xff]   ;;  %v5167_v24 = vsel %vm934_vm1, %v946_v13, %v948_v18  ;;  %v4590_v35 = vld [vmem:[%s6721_s1 + $0x1b4] ss:$8 sps:$4 sm:$0xff]  }
  0x26   : > { %590 = vmatprep.subr.bf16.mxu0 %v4534_v25  ;;  %802 = vmatprep.subr.bf16.mxu1 %v4536_v26  ;;  %v5170_v25 = vld [vmem:[%s5024_s20 + $0x40] sm:$0xff]   ;;  %v441_v26 = vshrl.u32 %v5086_v53, 16  ;;  %v5189_v36 = vld [vmem:[%s5024_s20 + $0x48] ss:$0 sps:$4 sm:$0x11]   ;;  %v447_v39 = vrot.slane %v445_v27, 1 }
  0x27   : > { %v952_v41 = vrot.slane %v5189_v36, 1  ;;  %v449_v42 = vshrl.u32 %v5092_v55, 16  ;;  %v4593_v47 = vld [vmem:[%s6721_s1 + $0x1a4] ss:$8 sps:$4 sm:$0xff]   ;;  %v1202_v51 = vld [vmem:[%s5024_s20 + $0x8] sm:$0xe] }
  0x28   : > { %v4581_v57 = vld [vmem:[%s6721_s1 + $0x110] ss:$8 sps:$4 sm:$0xff]   ;;  %v457_v10 = vshrl.u32 %v5110_v63, 16  ;;  %v461_v13 = vshll.u32 %v5113_v0, 16  ;;  %vm1574_vm2 = vsmask.f32 6400 }
  0x29   : > { %591 = vmatpush1.bf16.msra.mxu0 %v4538_v29  ;;  %803 = vmatpush1.bf16.msra.mxu1 %v4539_v30  ;;  %v440_v29 = vsel %vm412_vm0, %v435_v19, %v439_v20  ;;  %v4564_v30 = vld [vmem:[%s6721_s1 + $0x130] ss:$8 sps:$4 sm:$0xff]   ;;  %v4601_v19 = vld [vmem:[%s6721_s1 + $0x180] ss:$8 sps:$4 sm:$0xff]   ;;  %vm2573_vm4 = vsmask.f32 5376 }
  0x2a   : > { %592 = vmatprep.subr.bf16.mxu0 %v4540_v33  ;;  %804 = vmatprep.subr.bf16.mxu1 %v4542_v34  ;;  %v950_v33 = vrot.slane %v5170_v25, 1  ;;  %v4584_v34 = vld [vmem:[%s6721_s1 + $0x1c0] ss:$8 sps:$4 sm:$0xff]  }
  0x2c   : > { %v5192_v37 = vsel %vm934_vm1, %v948_v18, %v950_v33 }
  0x2d   : > { %593 = vmatpush1.bf16.msra.mxu0 %v4544_v38  ;;  %805 = vmatpush1.bf16.msra.mxu1 %v4545_v40  ;;  %v443_v38 = vor.u32 %v441_v26, %v439_v20  ;;  %v4571_v40 = vld [vmem:[%s6721_s1 + $0x120] ss:$8 sps:$4 sm:$0xff]   ;;  %v463_v26 = vrot.slane %v461_v13, 1 }
  0x2e   : > { %1043 = vmatprep.subr.bf16.mxu0 %v4550_v44  ;;  %1394 = vmatprep.subr.bf16.mxu1 %v4570_v60  ;;  %v913_v44 = vld [vmem:[%s5024_s20] sm:$0xe]  ;;  %v4600_v60 = vld [vmem:[%s6721_s1 + $0x194] ss:$8 sps:$4 sm:$0xff]  }
  0x2f   : > { %v4042_v48 = vcombine.low %v913_v44, %v5040_v28  ;;  %v4591_v28 = vld [vmem:[%s6721_s1 + $0x1a0] ss:$8 sps:$4 sm:$0xff]  }
  0x30   : > { %611 = vmatmul.mubr.bf16.vlgmr.msra.gmra.mxu0 %v424_v46  ;;  %823 = vmatmul.mubr.bf16.vlgmr.msra.gmra.mxu1 %v3984_v31  ;;  %v4573_v31 = vld [vmem:[%s6721_s1 + $0x124] ss:$8 sps:$4 sm:$0xff]   ;;  %v4583_v46 = vld [vmem:[%s6721_s1 + $0x114] ss:$8 sps:$4 sm:$0xff]  }
  0x31   : > { %1044 = vmatpush1.bf16.msra.mxu0 %v4548_v45  ;;  %620 = vmatprep.mubr.bf16.mxu0 %v6727_v2  ;;  %v453_v45 = vshll.u32 %v5110_v63, 16  ;;  %v935_v58 = vrot.slane %v4042_v48, 1 }
  0x32   : > { %832 = vmatprep.mubr.bf16.mxu1 %v6727_v2  ;;  %1045 = vmatprep.subr.bf16.mxu0 %v4554_v49  ;;  %v5215_v49 = vsel %vm934_vm1, %v950_v33, %v952_v41  ;;  %v469_v41 = vshll.u32 %v5135_v11, 16 }
  0x33   : > { %1395 = vmatpush1.bf16.msra.mxu1 %v4568_v59  ;;  %v4596_v59 = vld [vmem:[%s6721_s1 + $0x104] ss:$8 sps:$4 sm:$0xff]   ;;  %v5237_v61 = vsel %vm934_vm1, %v935_v58, %v936_v50  ;;  %v4598_v50 = vld [vmem:[%s6721_s1 + $0x190] ss:$8 sps:$4 sm:$0xff]  }
  0x34   : > { %1396 = vmatprep.subr.bf16.mxu1 %v4576_v4  ;;  %v455_v4 = vrot.slane %v453_v45, 1 }
  0x35   : > { %1046 = vmatpush1.bf16.msra.mxu0 %v4552_v52  ;;  %v5219_v52 = vld [vmem:[%s5024_s20 + $0xc] sm:$0xf] }
  0x36   : > { %1047 = vmatprep.subr.bf16.mxu0 %v4558_v54  ;;  %v448_v54 = vsel %vm412_vm0, %v443_v38, %v447_v39  ;;  %v5240_v62 = vcombine.low %v1202_v51, %v5219_v52 }
  0x37   : > { %1397 = vmatpush1.bf16.msra.mxu1 %v4574_v3  ;;  %v5247_v3 = vld [vmem:[%s5024_s20 + $0x10] sm:$0xff]  }
  0x38   : > { %621 = vmatmul.mubr.bf16.gmra.mxu0 %v432_v7  ;;  %833 = vmatmul.mubr.bf16.gmra.mxu1 %v5050_v32  ;;  %v451_v32 = vor.u32 %v449_v42, %v447_v39  ;;  %v1576_v6 = vshrl.u32 %v5240_v62, 16  ;;  %v4607_v7 = vld [vmem:[%s6721_s1 + $0x274] ss:$8 sps:$4 sm:$0xff]   ;;  %v1579_v8 = vshll.u32 %v5240_v62, 16 }
  0x39   : > { %630 = vmatprep.mubr.bf16.mxu0 %v6727_v2  ;;  %842 = vmatprep.mubr.bf16.mxu1 %v6727_v2 }
  0x3a   : > { %1048 = vmatpush1.bf16.msra.mxu0 %v4556_v1  ;;  %1398 = vmatprep.subr.bf16.mxu1 %v4580_v14  ;;  %v4594_v1 = vld [vmem:[%s6721_s1 + $0x100] ss:$8 sps:$4 sm:$0xff]   ;;  %v1587_v14 = vshll.u32 %v5247_v3, 16  ;;  %v1578_v18 = vrot.slane %v1576_v6, 1  ;;  %v1581_v20 = vrot.slane %v1579_v8, 2  ;;  %v473_v6 = vshrl.u32 %v5135_v11, 16 }
  0x3b   : > { %1049 = vmatprep.subr.bf16.mxu0 %v4562_v9  ;;  %1399 = vmatpush1.bf16.msra.mxu1 %v4578_v22  ;;  %v1584_v9 = vshrl.u32 %v5247_v3, 16  ;;  %v5271_v22 = vld [vmem:[%s5024_s20 + $0x18] sm:$0xff]  }
  0x3c   : > { %1400 = vmatprep.subr.bf16.mxu1 %v4586_v23  ;;  %v459_v23 = vor.u32 %v457_v10, %v455_v4  ;;  %v1582_v27 = vor.u32 %v1581_v20, %v1578_v18  ;;  %v1596_v38 = vshll.u32 %v5271_v22, 16  ;;  %v1937_v39 = vrot.slane %v5271_v22, 2 }
  0x3e   : > { %1050 = vmatpush1.bf16.msra.mxu0 %v4560_v16  ;;  %v456_v16 = vsel %vm412_vm0, %v451_v32, %v455_v4  ;;  %v1598_v44 = vrot.slane %v1596_v38, 2 }
  0x3f   : > { %1051 = vmatprep.subr.bf16.mxu0 %v4566_v21  ;;  %1401 = vmatpush1.bf16.msra.mxu1 %v4584_v34  ;;  %v1586_v21 = vrot.slane %v1584_v9, 1  ;;  %v1593_v34 = vshrl.u32 %v5271_v22, 16  ;;  %v477_v9 = vshll.u32 %v5170_v25, 16 }
  0x40   : > { %631 = vmatmul.mubr.bf16.gmra.mxu0 %v440_v29  ;;  %843 = vmatmul.mubr.bf16.gmra.mxu1 %v5066_v43  ;;  %v4588_v43 = vld [vmem:[%s6721_s1 + $0x1b0] ss:$8 sps:$4 sm:$0xff]   ;;  %v1589_v29 = vrot.slane %v1587_v14, 2 }
  0x41   : > { %640 = vmatprep.mubr.bf16.mxu0 %v6727_v2  ;;  %852 = vmatprep.mubr.bf16.mxu1 %v6727_v2 }
  0x42   : > { %1052 = vmatpush1.bf16.msra.mxu0 %v4564_v30  ;;  %1402 = vmatprep.subr.bf16.mxu1 %v4590_v35  ;;  %v4629_v30 = vld [vmem:[%s6721_s1 + $0x2f4] ss:$8 sps:$4 sm:$0xff]   ;;  %v1590_v33 = vor.u32 %v1589_v29, %v1586_v21  ;;  %v1935_v35 = vrot.slane %v5247_v3, 2 }
  0x43   : > { %1053 = vmatprep.subr.bf16.mxu0 %v4573_v31  ;;  %1403 = vmatpush1.bf16.msra.mxu1 %v4588_v43  ;;  %v465_v31 = vshrl.u32 %v5113_v0, 16  ;;  %v1595_v43 = vrot.slane %v1593_v34, 1 }
  0x44   : > { %1404 = vmatprep.subr.bf16.mxu1 %v4593_v47  ;;  %v5290_v42 = vsel %vm1574_vm2, %v1582_v27, %v1590_v33  ;;  %v5295_v45 = vsel %vm1933_vm3, %v1935_v35, %v1937_v39 }
  0x45   : > { %v1599_v48 = vor.u32 %v1598_v44, %v1595_v43  ;;  %v467_v51 = vor.u32 %v465_v31, %v463_v26 }
  0x46   : > { %1054 = vmatpush1.bf16.msra.mxu0 %v4571_v40  ;;  %v464_v40 = vsel %vm412_vm0, %v459_v23, %v463_v26  ;;  %v479_v23 = vrot.slane %v477_v9, 1  ;;  %v5333_v26 = vld [vmem:[%s5024_s20 + $0x38] sm:$0xff]  }
  0x47   : > { %1055 = vmatprep.subr.bf16.mxu0 %v4583_v46  ;;  %1405 = vmatpush1.bf16.msra.mxu1 %v4591_v28 }
  0x48   : > { %641 = vmatmul.mubr.bf16.gmra.mxu0 %v448_v54  ;;  %853 = vmatmul.mubr.bf16.gmra.mxu1 %v5086_v53  ;;  %v4603_v53 = vld [vmem:[%s6721_s1 + $0x184] ss:$8 sps:$4 sm:$0xff]   ;;  %v471_v54 = vrot.slane %v469_v41, 1  ;;  %v485_v41 = vshll.u32 %v5189_v36, 16 }
  0x49   : > { %650 = vmatprep.mubr.bf16.mxu0 %v6727_v2  ;;  %862 = vmatprep.mubr.bf16.mxu1 %v6727_v2 }
  0x4a   : > { %1056 = vmatpush1.bf16.msra.mxu0 %v4581_v57  ;;  %1406 = vmatprep.subr.bf16.mxu1 %v4600_v60  ;;  %v5301_v57 = vld [vmem:[%s5024_s20 + $0x28] sm:$0xff]   ;;  %v475_v21 = vor.u32 %v473_v6, %v471_v54 }
  0x4b   : > { %1057 = vmatprep.subr.bf16.mxu0 %v4596_v59  ;;  %1407 = vmatpush1.bf16.msra.mxu1 %v4598_v50  ;;  %v5306_v59 = vsel %vm1574_vm2, %v1590_v33, %v1599_v48  ;;  %v1611_v32 = vshrl.u32 %v5301_v57, 16  ;;  %v1941_v4 = vrot.slane %v5301_v57, 2  ;;  %v472_v50 = vsel %vm412_vm0, %v467_v51, %v471_v54  ;;  %v5353_v51 = vld [vmem:[%s5024_s20 + $0x40] sm:$0xff]  }
  0x4c   : > { %1408 = vmatprep.subr.bf16.mxu1 %v4603_v53  ;;  %v5315_v53 = vld [vmem:[%s5024_s20 + $0x30] sm:$0xff]   ;;  %v481_v33 = vshrl.u32 %v5170_v25, 16  ;;  %v1947_v9 = vrot.slane %v5353_v51, 2 }
  0x4d   : > { %v1613_v10 = vrot.slane %v1611_v32, 1  ;;  %v1623_v20 = vshll.u32 %v5315_v53, 16  ;;  %v1943_v31 = vrot.slane %v5315_v53, 2 }
  0x4e   : > { %1058 = vmatpush1.bf16.msra.mxu0 %v4594_v1 }
  0x4f   : > { %1753 = vmatprep.subr.bf16.mxu0 %v4607_v7  ;;  %1409 = vmatpush1.bf16.msra.mxu1 %v4601_v19  ;;  %v1625_v29 = vrot.slane %v1623_v20, 2  ;;  %v5347_v43 = vsel %vm1933_vm3, %v1941_v4, %v1943_v31 }
  0x50   : > { %651 = vmatmul.mubr.bf16.gmra.mxu0 %v456_v16  ;;  %863 = vmatmul.mubr.bf16.gmra.mxu1 %v5092_v55  ;;  %v5282_v55 = vld [vmem:[%s5024_s20 + $0x20] sm:$0xff]   ;;  %v1620_v16 = vshrl.u32 %v5315_v53, 16 }
  0x51   : > { %660 = vmatprep.mubr.bf16.mxu0 %v6727_v2  ;;  %872 = vmatprep.mubr.bf16.mxu1 %v6727_v2  ;;  %v1602_v46 = vshrl.u32 %v5282_v55, 16  ;;  %v1605_v47 = vshll.u32 %v5282_v55, 16  ;;  %v1939_v1 = vrot.slane %v5282_v55, 2 }
  0x52   : > { %2042 = vmatprep.subr.bf16.mxu1 %v4629_v30  ;;  %v1622_v19 = vrot.slane %v1620_v16, 1  ;;  %v1912_v30 = vld [vmem:[%s5024_s20 + $0x8] sm:$0xc]  ;;  %v1287_v16 = vrot.slane %v5247_v3, 1  ;;  %v4612_v3 = vld [vmem:[%s6721_s1 + $0x264] ss:$8 sps:$4 sm:$0xff]  }
  0x53   : > { %v1604_v58 = vrot.slane %v1602_v46, 1  ;;  %v1607_v28 = vrot.slane %v1605_v47, 2  ;;  %v5321_v8 = vsel %vm1933_vm3, %v1937_v39, %v1939_v1  ;;  %v5325_v14 = vsel %vm1933_vm3, %v1939_v1, %v1941_v4 }
  0x54   : > { %v4150_v34 = vcombine.low %v1912_v30, %v5219_v52  ;;  %v1626_v38 = vor.u32 %v1625_v29, %v1622_v19  ;;  %v1632_v39 = vshll.u32 %v5333_v26, 16  ;;  %v1945_v52 = vrot.slane %v5333_v26, 2  ;;  %v4610_v30 = vld [vmem:[%s6721_s1 + $0x260] ss:$8 sps:$4 sm:$0xff]  }
  0x55   : > { %v1608_v60 = vor.u32 %v1607_v28, %v1604_v58  ;;  %v483_v58 = vor.u32 %v481_v33, %v479_v23  ;;  %v487_v28 = vrot.slane %v485_v41, 1  ;;  %v1638_v1 = vshrl.u32 %v5353_v51, 16 }
  0x56   : > { %v1934_v46 = vrot.slane %v4150_v34, 2 }
  0x57   : > { %v5318_v7 = vsel %vm1574_vm2, %v1599_v48, %v1608_v60  ;;  %v1634_v48 = vrot.slane %v1632_v39, 2  ;;  %v488_v4 = vsel %vm412_vm0, %v483_v58, %v487_v28  ;;  %v5416_v39 = vld [vmem:[%s5024_s20 + $0x50] ss:$0 sps:$4 sm:$0x33]   ;;  %v4639_v58 = vld [vmem:[%s6721_s1 + $0x2d4] ss:$8 sps:$4 sm:$0xff]  }
  0x58   : > { %661 = vmatmul.mubr.bf16.gmra.mxu0 %v464_v40  ;;  %873 = vmatmul.mubr.bf16.gmra.mxu1 %v5110_v63  ;;  %v1614_v63 = vshll.u32 %v5301_v57, 16  ;;  %v480_v40 = vsel %vm412_vm0, %v475_v21, %v479_v23  ;;  %v5360_v36 = vsel %vm1933_vm3, %v1934_v46, %v1935_v35  ;;  %v1656_v41 = vshrl.u32 %v5416_v39, 16  ;;  %v4615_v46 = vld [vmem:[%s6721_s1 + $0x250] ss:$8 sps:$4 sm:$0xff]  }
  0x59   : > { %670 = vmatprep.mubr.bf16.mxu0 %v6727_v2  ;;  %882 = vmatprep.mubr.bf16.mxu1 %v6727_v2 }
  0x5a   : > { %v1616_v13 = vrot.slane %v1614_v63, 2  ;;  %v1640_v63 = vrot.slane %v1638_v1, 1  ;;  %v4621_v1 = vld [vmem:[%s6721_s1 + $0x244] ss:$8 sps:$4 sm:$0xff]  }
  0x5c   : > { %v1617_v18 = vor.u32 %v1616_v13, %v1613_v10  ;;  %v1286_v10 = vrot.slane %v5240_v62, 1  ;;  %v4605_v62 = vld [vmem:[%s6721_s1 + $0x270] ss:$8 sps:$4 sm:$0xff]  }
  0x5e   : > { %v5336_v27 = vsel %vm1574_vm2, %v1608_v60, %v1617_v18  ;;  %v5350_v47 = vsel %vm1574_vm2, %v1617_v18, %v1626_v38  ;;  %v5365_v60 = vsel %vm1933_vm3, %v1943_v31, %v1945_v52  ;;  %v5386_v18 = vsel %vm1933_vm3, %v1945_v52, %v1947_v9 }
  0x5f   : > { %v1288_v23 = vsel %vm934_vm1, %v1286_v10, %v1287_v16  ;;  %v1289_v31 = vrot.slane %v5271_v22, 1  ;;  %v4635_v22 = vld [vmem:[%s6721_s1 + $0x2e4] ss:$8 sps:$4 sm:$0xff]  }
  0x60   : > { %671 = vmatmul.mubr.bf16.gmra.mxu0 %v472_v50  ;;  %883 = vmatmul.mubr.bf16.gmra.mxu1 %v5113_v0  ;;  %v1629_v0 = vshrl.u32 %v5333_v26, 16  ;;  %v5374_v50 = vld [vmem:[%s5024_s20 + $0x48] sm:$0xff]  }
  0x61   : > { %680 = vmatprep.mubr.bf16.mxu0 %v6727_v2  ;;  %892 = vmatprep.mubr.bf16.mxu1 %v6727_v2  ;;  %v1647_v19 = vshrl.u32 %v5374_v50, 16  ;;  %v1650_v20 = vshll.u32 %v5374_v50, 16  ;;  %v1949_v34 = vrot.slane %v5374_v50, 2 }
  0x62   : > { %v1631_v44 = vrot.slane %v1629_v0, 1  ;;  %v4627_v0 = vld [vmem:[%s6721_s1 + $0x2f0] ss:$8 sps:$4 sm:$0xff]  }
  0x63   : > { %v1652_v21 = vrot.slane %v1650_v20, 2  ;;  %v4649_v20 = vld [vmem:[%s6721_s1 + $0x2b4] ss:$8 sps:$4 sm:$0xff]  }
  0x64   : > { %v1635_v54 = vor.u32 %v1634_v48, %v1631_v44  ;;  %v1659_v44 = vshll.u32 %v5416_v39, 16  ;;  %v1658_v48 = vrot.slane %v1656_v41, 1 }
  0x66   : > { %v5369_v32 = vsel %vm1574_vm2, %v1626_v38, %v1635_v54  ;;  %v4617_v38 = vld [vmem:[%s6721_s1 + $0x254] ss:$8 sps:$4 sm:$0xff]   ;;  %v1661_v52 = vrot.slane %v1659_v44, 2  ;;  %v1297_v44 = vrot.slane %v5333_v26, 1  ;;  %v1301_v26 = vrot.slane %v5374_v50, 1 }
  0x68   : > { %681 = vmatmul.mubr.bf16.gmra.mxu0 %v480_v40  ;;  %893 = vmatmul.mubr.bf16.gmra.mxu1 %v5135_v11  ;;  %v1641_v11 = vshll.u32 %v5353_v51, 16  ;;  %v4633_v40 = vld [vmem:[%s6721_s1 + $0x2e0] ss:$8 sps:$4 sm:$0xff]   ;;  %v1662_v28 = vor.u32 %v1661_v52, %v1658_v48  ;;  %v4656_v52 = vld [vmem:[%s5024_s20 + $0x50] ss:$0 sps:$4 sm:$0x11]  }
  0x69   : > { %690 = vmatprep.mubr.bf16.mxu0 %v6727_v2  ;;  %902 = vmatprep.mubr.bf16.mxu1 %v6727_v2 }
  0x6a   : > { %v1643_v35 = vrot.slane %v1641_v11, 2  ;;  %v4637_v11 = vld [vmem:[%s6721_s1 + $0x2d0] ss:$8 sps:$4 sm:$0xff]  }
  0x6c   : > { %v1644_v6 = vor.u32 %v1643_v35, %v1640_v63  ;;  %v4645_v63 = vld [vmem:[%s6721_s1 + $0x2c4] ss:$8 sps:$4 sm:$0xff]  }
  0x6e   : > { %v5380_v13 = vsel %vm1574_vm2, %v1635_v54, %v1644_v6  ;;  %v1290_v54 = vsel %vm934_vm1, %v1287_v16, %v1289_v31  ;;  %v4632_v16 = vld [vmem:[%s6721_s1 + $0x224] ss:$8 sps:$4 sm:$0xff]  }
  0x70   : > { %691 = vmatmul.mubr.bf16.gmra.mxu0 %v488_v4  ;;  %903 = vmatmul.mubr.bf16.gmra.mxu1 %v5170_v25  ;;  %v1649_v25 = vrot.slane %v1647_v19, 1  ;;  %v1291_v4 = vrot.slane %v5282_v55, 1  ;;  %v4623_v55 = vld [vmem:[%s6721_s1 + $0x230] ss:$8 sps:$4 sm:$0xff]  }
  0x71   : > { %1075 = vmatprep.mubr.bf16.mxu0 %v6727_v2  ;;  %1426 = vmatprep.mubr.bf16.mxu1 %v6727_v2  ;;  %v4647_v19 = vld [vmem:[%s6721_s1 + $0x2b0] ss:$8 sps:$4 sm:$0xff]  }
  0x72   : > { %v1653_v29 = vor.u32 %v1652_v21, %v1649_v25  ;;  %v1292_v10 = vsel %vm934_vm1, %v1289_v31, %v1291_v4  ;;  %v4652_v25 = vld [vmem:[%s6721_s1 + $0x2a4] ss:$8 sps:$4 sm:$0xff]   ;;  %v1293_v21 = vrot.slane %v5301_v57, 1  ;;  %v4640_v57 = vld [vmem:[%s6721_s1 + $0x210] ss:$8 sps:$4 sm:$0xff]  }
  0x73   : > { %v4659_v31 = vld [vmem:[%s6721_s1 + $0x294] ss:$8 sps:$4 sm:$0xff]  }
  0x74   : > { %v5405_v33 = vsel %vm1574_vm2, %v1644_v6, %v1653_v29  ;;  %v5448_v35 = vsel %vm1574_vm2, %v1653_v29, %v1662_v28  ;;  %v4619_v6 = vld [vmem:[%s6721_s1 + $0x240] ss:$8 sps:$4 sm:$0xff]   ;;  %v4655_v29 = vld [vmem:[%s6721_s1 + $0x204] ss:$8 sps:$4 sm:$0xff]  }
  0x75   : > { %v4667_v28 = vld [vmem:[%s6721_s1 + $0x360] ss:$8 sps:$4 sm:$0xff]  }
  0x78   : > { %1076 = vmatmul.mubr.bf16.vlgmr.msra.gmra.mxu0 %v5237_v61  ;;  %1427 = vmatmul.mubr.bf16.vlgmr.msra.gmra.mxu1 %v1288_v23  ;;  %v5425_v61 = vsel %vm1933_vm3, %v1947_v9, %v1949_v34  ;;  %v4643_v9 = vld [vmem:[%s6721_s1 + $0x2c0] ss:$8 sps:$4 sm:$0xff]   ;;  %v4642_v23 = vld [vmem:[%s6721_s1 + $0x214] ss:$8 sps:$4 sm:$0xff]  }
  0x79   : > { %1754 = vmatpush1.bf16.msra.mxu0 %v4605_v62  ;;  %1085 = vmatprep.mubr.bf16.mxu0 %v6727_v2  ;;  %v4630_v62 = vld [vmem:[%s6721_s1 + $0x220] ss:$8 sps:$4 sm:$0xff]  }
  0x7a   : > { %1436 = vmatprep.mubr.bf16.mxu1 %v6727_v2  ;;  %1755 = vmatprep.subr.bf16.mxu0 %v4612_v3  ;;  %v1294_v3 = vsel %vm934_vm1, %v1291_v4, %v1293_v21  ;;  %v4688_v4 = vld [vmem:[%s6721_s1 + $0x3d0] ss:$8 sps:$4 sm:$0xff]  }
  0x7b   : > { %2043 = vmatpush1.bf16.msra.mxu1 %v4627_v0  ;;  %v4662_v0 = vld [vmem:[%s6721_s1 + $0x284] ss:$8 sps:$4 sm:$0xff]  }
  0x7c   : > { %2044 = vmatprep.subr.bf16.mxu1 %v4635_v22  ;;  %v4653_v22 = vld [vmem:[%s6721_s1 + $0x200] ss:$8 sps:$4 sm:$0xff]  }
  0x7d   : > { %1756 = vmatpush1.bf16.msra.mxu0 %v4610_v30  ;;  %v4657_v30 = vld [vmem:[%s6721_s1 + $0x290] ss:$8 sps:$4 sm:$0xff]  }
  0x7e   : > { %1757 = vmatprep.subr.bf16.mxu0 %v4617_v38  ;;  %v1295_v38 = vrot.slane %v5315_v53, 1  ;;  %v4681_v53 = vld [vmem:[%s6721_s1 + $0x3f4] ss:$8 sps:$4 sm:$0xff]  }
  0x7f   : > { %2045 = vmatpush1.bf16.msra.mxu1 %v4633_v40  ;;  %v4660_v40 = vld [vmem:[%s6721_s1 + $0x280] ss:$8 sps:$4 sm:$0xff]  }
  0x80   : > { %1086 = vmatmul.mubr.bf16.gmra.mxu0 %v5097_v56  ;;  %1437 = vmatmul.mubr.bf16.gmra.mxu1 %v1290_v54  ;;  %v4625_v56 = vld [vmem:[%s6721_s1 + $0x234] ss:$8 sps:$4 sm:$0xff]   ;;  %v1296_v41 = vsel %vm934_vm1, %v1293_v21, %v1295_v38  ;;  %v4663_v54 = vld [vmem:[%s6721_s1 + $0x370] ss:$8 sps:$4 sm:$0xff]  }
  0x81   : > { %1095 = vmatprep.mubr.bf16.mxu0 %v6727_v2  ;;  %1446 = vmatprep.mubr.bf16.mxu1 %v6727_v2  ;;  %v4709_v21 = vld [vmem:[%s6721_s1 + $0x394] ss:$8 sps:$4 sm:$0xff]  }
  0x82   : > { %1758 = vmatpush1.bf16.msra.mxu0 %v4615_v46  ;;  %2046 = vmatprep.subr.bf16.mxu1 %v4639_v58  ;;  %v1298_v46 = vsel %vm934_vm1, %v1295_v38, %v1297_v44  ;;  %v4679_v58 = vld [vmem:[%s6721_s1 + $0x3f0] ss:$8 sps:$4 sm:$0xff]  }
  0x83   : > { %1759 = vmatprep.subr.bf16.mxu0 %v4621_v1  ;;  %2047 = vmatpush1.bf16.msra.mxu1 %v4637_v11  ;;  %v4670_v1 = vld [vmem:[%s6721_s1 + $0x350] ss:$8 sps:$4 sm:$0xff]   ;;  %v4690_v11 = vld [vmem:[%s6721_s1 + $0x3d4] ss:$8 sps:$4 sm:$0xff]  }
  0x84   : > { %2048 = vmatprep.subr.bf16.mxu1 %v4645_v63  ;;  %v4675_v63 = vld [vmem:[%s6721_s1 + $0x344] ss:$8 sps:$4 sm:$0xff]  }
  0x86   : > { %1760 = vmatpush1.bf16.msra.mxu0 %v4619_v6  ;;  %v4696_v6 = vld [vmem:[%s6721_s1 + $0x3c4] ss:$8 sps:$4 sm:$0xff]  }
  0x87   : > { %1761 = vmatprep.subr.bf16.mxu0 %v4625_v56  ;;  %2049 = vmatpush1.bf16.msra.mxu1 %v4643_v9  ;;  %v4673_v56 = vld [vmem:[%s6721_s1 + $0x340] ss:$8 sps:$4 sm:$0xff]   ;;  %v4676_v9 = vld [vmem:[%s6721_s1 + $0x330] ss:$8 sps:$4 sm:$0xff]  }
  0x88   : > { %1096 = vmatmul.mubr.bf16.gmra.mxu0 %v5125_v5  ;;  %1447 = vmatmul.mubr.bf16.gmra.mxu1 %v1292_v10  ;;  %v4650_v5 = vld [vmem:[%s6721_s1 + $0x2a0] ss:$8 sps:$4 sm:$0xff]   ;;  %v4699_v10 = vld [vmem:[%s6721_s1 + $0x3b4] ss:$8 sps:$4 sm:$0xff]  }
  0x89   : > { %1105 = vmatprep.mubr.bf16.mxu0 %v6727_v2  ;;  %1456 = vmatprep.mubr.bf16.mxu1 %v6727_v2 }
  0x8a   : > { %1762 = vmatpush1.bf16.msra.mxu0 %v4623_v55  ;;  %2050 = vmatprep.subr.bf16.mxu1 %v4649_v20  ;;  %v4684_v55 = vld [vmem:[%s6721_s1 + $0x324] ss:$8 sps:$4 sm:$0xff]   ;;  %v4682_v20 = vld [vmem:[%s6721_s1 + $0x320] ss:$8 sps:$4 sm:$0xff]  }
  0x8b   : > { %1763 = vmatprep.subr.bf16.mxu0 %v4632_v16  ;;  %2051 = vmatpush1.bf16.msra.mxu1 %v4647_v19  ;;  %v4697_v16 = vld [vmem:[%s6721_s1 + $0x3b0] ss:$8 sps:$4 sm:$0xff]   ;;  %v4702_v19 = vld [vmem:[%s6721_s1 + $0x3a4] ss:$8 sps:$4 sm:$0xff]  }
  0x8c   : > { %2052 = vmatprep.subr.bf16.mxu1 %v4652_v25  ;;  %v4691_v25 = vld [vmem:[%s6721_s1 + $0x310] ss:$8 sps:$4 sm:$0xff]  }
  0x8e   : > { %1764 = vmatpush1.bf16.msra.mxu0 %v4630_v62  ;;  %v4705_v62 = vld [vmem:[%s6721_s1 + $0x304] ss:$8 sps:$4 sm:$0xff]  }
  0x8f   : > { %1765 = vmatprep.subr.bf16.mxu0 %v4642_v23  ;;  %2053 = vmatpush1.bf16.msra.mxu1 %v4650_v5  ;;  %v4707_v23 = vld [vmem:[%s6721_s1 + $0x390] ss:$8 sps:$4 sm:$0xff]   ;;  %v4712_v5 = vld [vmem:[%s6721_s1 + $0x384] ss:$8 sps:$4 sm:$0xff]  }
  0x90   : > { %1106 = vmatmul.mubr.bf16.gmra.mxu0 %v5138_v12  ;;  %1457 = vmatmul.mubr.bf16.gmra.mxu1 %v1294_v3  ;;  %v4665_v12 = vld [vmem:[%s6721_s1 + $0x374] ss:$8 sps:$4 sm:$0xff]  }
  0x91   : > { %1115 = vmatprep.mubr.bf16.mxu0 %v6727_v2  ;;  %1466 = vmatprep.mubr.bf16.mxu1 %v6727_v2 }
  0x92   : > { %1766 = vmatpush1.bf16.msra.mxu0 %v4640_v57  ;;  %2054 = vmatprep.subr.bf16.mxu1 %v4659_v31  ;;  %v4703_v57 = vld [vmem:[%s6721_s1 + $0x300] ss:$8 sps:$4 sm:$0xff]  }
  0x93   : > { %1767 = vmatprep.subr.bf16.mxu0 %v4655_v29  ;;  %2055 = vmatpush1.bf16.msra.mxu1 %v4657_v30 }
  0x94   : > { %2056 = vmatprep.subr.bf16.mxu1 %v4662_v0 }
  0x96   : > { %1768 = vmatpush1.bf16.msra.mxu0 %v4653_v22 }
  0x97   : > { %2057 = vmatpush1.bf16.msra.mxu1 %v4660_v40  ;;  %2393 = vmatprep.subr.bf16.mxu0 %v4665_v12 }
  0x98   : > { %1116 = vmatmul.mubr.bf16.gmra.mxu0 %v5145_v15  ;;  %1467 = vmatmul.mubr.bf16.gmra.mxu1 %v1296_v41  ;;  %v1299_v15 = vrot.slane %v5353_v51, 1  ;;  %v1303_v51 = vrot.slane %v4656_v52, 1 }
  0x99   : > { %1125 = vmatprep.mubr.bf16.mxu0 %v6727_v2  ;;  %1476 = vmatprep.mubr.bf16.mxu1 %v6727_v2 }
  0x9a   : > { %2752 = vmatprep.subr.bf16.mxu1 %v4681_v53  ;;  %v1300_v48 = vsel %vm934_vm1, %v1297_v44, %v1299_v15 }
  0xa0   : > { %1126 = vmatmul.mubr.bf16.gmra.mxu0 %v5152_v17  ;;  %1477 = vmatmul.mubr.bf16.gmra.mxu1 %v1298_v46  ;;  %v1302_v17 = vsel %vm934_vm1, %v1299_v15, %v1301_v26 }
  0xa1   : > { %1135 = vmatprep.mubr.bf16.mxu0 %v6727_v2  ;;  %1486 = vmatprep.mubr.bf16.mxu1 %v6727_v2 }
  0xa8   : > { %1136 = vmatmul.mubr.bf16.gmra.mxu0 %v5167_v24  ;;  %1487 = vmatmul.mubr.bf16.gmra.mxu1 %v1300_v48  ;;  %v1304_v24 = vsel %vm934_vm1, %v1301_v26, %v1303_v51  ;;  %v1951_v26 = vrot.slane %v5416_v39, 2 }
  0xa9   : > { %1145 = vmatprep.mubr.bf16.mxu0 %v6727_v2  ;;  %1496 = vmatprep.mubr.bf16.mxu1 %v6727_v2 }
  0xb0   : > { %1146 = vmatmul.mubr.bf16.gmra.mxu0 %v5192_v37  ;;  %1497 = vmatmul.mubr.bf16.gmra.mxu1 %v1302_v17  ;;  %v4669_v37 = vld [vmem:[%s6721_s1 + $0x364] ss:$8 sps:$4 sm:$0xff]  }
  0xb1   : > { %1155 = vmatprep.mubr.bf16.mxu0 %v6727_v2  ;;  %1506 = vmatprep.mubr.bf16.mxu1 %v6727_v2 }
  0xb8   : > { %1156 = vmatmul.mubr.bf16.gmra.mxu0 %v5215_v49  ;;  %1507 = vmatmul.mubr.bf16.gmra.mxu1 %v1304_v24  ;;  %v4687_v49 = vld [vmem:[%s6721_s1 + $0x3e4] ss:$8 sps:$4 sm:$0xff]  }
  0xb9   : > { %1785 = vmatprep.mubr.bf16.mxu0 %v6727_v2  ;;  %2074 = vmatprep.mubr.bf16.mxu1 %v6727_v2 }
  0xc0   : > { %1786 = vmatmul.mubr.bf16.vlgmr.msra.gmra.mxu0 %v5290_v42  ;;  %2075 = vmatmul.mubr.bf16.vlgmr.msra.gmra.mxu1 %v5360_v36  ;;  %v4672_v42 = vld [vmem:[%s6721_s1 + $0x354] ss:$8 sps:$4 sm:$0xff]   ;;  %v4685_v36 = vld [vmem:[%s6721_s1 + $0x3e0] ss:$8 sps:$4 sm:$0xff]  }
  0xc1   : > { %2394 = vmatpush1.bf16.msra.mxu0 %v4663_v54  ;;  %1795 = vmatprep.mubr.bf16.mxu0 %v6727_v2 }
  0xc2   : > { %2084 = vmatprep.mubr.bf16.mxu1 %v6727_v2  ;;  %2395 = vmatprep.subr.bf16.mxu0 %v4669_v37 }
  0xc3   : > { %2753 = vmatpush1.bf16.msra.mxu1 %v4679_v58 }
  0xc4   : > { %2754 = vmatprep.subr.bf16.mxu1 %v4687_v49 }
  0xc5   : > { %2396 = vmatpush1.bf16.msra.mxu0 %v4667_v28  ;;  %v1952_v28 = vsel %vm1933_vm3, %v1949_v34, %v1951_v26 }
  0xc6   : > { %2397 = vmatprep.subr.bf16.mxu0 %v4672_v42 }
  0xc7   : > { %2755 = vmatpush1.bf16.msra.mxu1 %v4685_v36  ;;  %v5701_v36 = vld [vmem:[%s5024_s20 + $0x20] sm:$0xff]  }
  0xc8   : > { %1796 = vmatmul.mubr.bf16.gmra.mxu0 %v5306_v59  ;;  %2085 = vmatmul.mubr.bf16.gmra.mxu1 %v5295_v45  ;;  %v4678_v59 = vld [vmem:[%s6721_s1 + $0x334] ss:$8 sps:$4 sm:$0xff]   ;;  %v4694_v45 = vld [vmem:[%s6721_s1 + $0x3c0] ss:$8 sps:$4 sm:$0xff]  }
  0xc9   : > { %1805 = vmatprep.mubr.bf16.mxu0 %v6727_v2  ;;  %2094 = vmatprep.mubr.bf16.mxu1 %v6727_v2 }
  0xca   : > { %2398 = vmatpush1.bf16.msra.mxu0 %v4670_v1  ;;  %2756 = vmatprep.subr.bf16.mxu1 %v4690_v11 }
  0xcb   : > { %2399 = vmatprep.subr.bf16.mxu0 %v4675_v63  ;;  %2757 = vmatpush1.bf16.msra.mxu1 %v4688_v4 }
  0xcc   : > { %2758 = vmatprep.subr.bf16.mxu1 %v4696_v6 }
  0xce   : > { %2400 = vmatpush1.bf16.msra.mxu0 %v4673_v56 }
  0xcf   : > { %2401 = vmatprep.subr.bf16.mxu0 %v4678_v59  ;;  %2759 = vmatpush1.bf16.msra.mxu1 %v4694_v45 }
  0xd0   : > { %1806 = vmatmul.mubr.bf16.gmra.mxu0 %v5318_v7  ;;  %2095 = vmatmul.mubr.bf16.gmra.mxu1 %v5321_v8  ;;  %v4693_v7 = vld [vmem:[%s6721_s1 + $0x314] ss:$8 sps:$4 sm:$0xff]   ;;  %v4700_v8 = vld [vmem:[%s6721_s1 + $0x3a0] ss:$8 sps:$4 sm:$0xff]  }
  0xd1   : > { %1815 = vmatprep.mubr.bf16.mxu0 %v6727_v2  ;;  %2104 = vmatprep.mubr.bf16.mxu1 %v6727_v2 }
  0xd2   : > { %2402 = vmatpush1.bf16.msra.mxu0 %v4676_v9  ;;  %2760 = vmatprep.subr.bf16.mxu1 %v4699_v10  ;;  %v2592_v9 = vshrl.u32 %v5701_v36, 16  ;;  %v2595_v10 = vshll.u32 %v5701_v36, 16 }
  0xd3   : > { %2403 = vmatprep.subr.bf16.mxu0 %v4684_v55  ;;  %2761 = vmatpush1.bf16.msra.mxu1 %v4697_v16 }
  0xd4   : > { %2762 = vmatprep.subr.bf16.mxu1 %v4702_v19 }
  0xd6   : > { %2404 = vmatpush1.bf16.msra.mxu0 %v4682_v20 }
  0xd7   : > { %2405 = vmatprep.subr.bf16.mxu0 %v4693_v7  ;;  %2763 = vmatpush1.bf16.msra.mxu1 %v4700_v8 }
  0xd8   : > { %1816 = vmatmul.mubr.bf16.gmra.mxu0 %v5336_v27  ;;  %2105 = vmatmul.mubr.bf16.gmra.mxu1 %v5325_v14  ;;  %v4710_v14 = vld [vmem:[%s6721_s1 + $0x380] ss:$8 sps:$4 sm:$0xff]   ;;  %v4717_v27 = vld [vmem:[%s6721_s1 + $0x474] ss:$8 sps:$4 sm:$0xff]  }
  0xd9   : > { %1825 = vmatprep.mubr.bf16.mxu0 %v6727_v2  ;;  %2114 = vmatprep.mubr.bf16.mxu1 %v6727_v2 }
  0xda   : > { %2406 = vmatpush1.bf16.msra.mxu0 %v4691_v25  ;;  %2764 = vmatprep.subr.bf16.mxu1 %v4709_v21  ;;  %v4715_v25 = vld [vmem:[%s6721_s1 + $0x470] ss:$8 sps:$4 sm:$0xff]  }
  0xdb   : > { %2407 = vmatprep.subr.bf16.mxu0 %v4705_v62  ;;  %2765 = vmatpush1.bf16.msra.mxu1 %v4707_v23  ;;  %v2594_v62 = vrot.slane %v2592_v9, 2  ;;  %v2597_v23 = vrot.slane %v2595_v10, 3  ;;  %v4727_v10 = vld [vmem:[%s6721_s1 + $0x440] ss:$8 sps:$4 sm:$0xff]  }
  0xdc   : > { %2766 = vmatprep.subr.bf16.mxu1 %v4712_v5  ;;  %v5723_v5 = vld [vmem:[%s5024_s20 + $0x28] sm:$0xff]  }
  0xde   : > { %2408 = vmatpush1.bf16.msra.mxu0 %v4703_v57 }
  0xdf   : > { %2767 = vmatpush1.bf16.msra.mxu1 %v4710_v14  ;;  %3041 = vmatprep.subr.bf16.mxu0 %v4717_v27  ;;  %v4721_v27 = vld [vmem:[%s6721_s1 + $0x464] ss:$8 sps:$4 sm:$0xff]  }
  0xe0   : > { %1826 = vmatmul.mubr.bf16.gmra.mxu0 %v5350_v47  ;;  %2115 = vmatmul.mubr.bf16.gmra.mxu1 %v5347_v43  ;;  %v2201_v47 = vld [vmem:[%s5024_s20 + $0x10] sm:$0xc] }
  0xe1   : > { %1835 = vmatprep.mubr.bf16.mxu0 %v6727_v2  ;;  %2124 = vmatprep.mubr.bf16.mxu1 %v6727_v2 }
  0xe8   : > { %1836 = vmatmul.mubr.bf16.gmra.mxu0 %v5369_v32  ;;  %2125 = vmatmul.mubr.bf16.gmra.mxu1 %v5365_v60  ;;  %v5672_v32 = vld [vmem:[%s5024_s20 + $0x14] sm:$0xf] }
  0xe9   : > { %1845 = vmatprep.mubr.bf16.mxu0 %v6727_v2  ;;  %2134 = vmatprep.mubr.bf16.mxu1 %v6727_v2  ;;  %v4183_v22 = vcombine.low %v2201_v47, %v5672_v32 }
  0xeb   : > { %v2575_v46 = vshrl.u32 %v4183_v22, 16  ;;  %v2578_v15 = vshll.u32 %v4183_v22, 16  ;;  %v2285_v56 = vrot.slane %v4183_v22, 2  ;;  %v2601_v22 = vshrl.u32 %v5723_v5, 16 }
  0xed   : > { %v2577_v37 = vrot.slane %v2575_v46, 2  ;;  %v2580_v58 = vrot.slane %v2578_v15, 3 }
  0xef   : > { %v2581_v45 = vor.u32 %v2580_v58, %v2577_v37 }
  0xf0   : > { %v612_v3 = vpop.f32.mrf.mxu0  ;;  %v824_v29 = vpop.f32.mrf.mxu1  ;;  %1846 = vmatmul.mubr.bf16.gmra.mxu0 %v5380_v13  ;;  %2135 = vmatmul.mubr.bf16.gmra.mxu1 %v5386_v18  ;;  %v5680_v18 = vld [vmem:[%s5024_s20 + $0x18] sm:$0xff]  }
  0xf1   : > { %v5666_v43 = vadd.f32 %v824_v29, %v612_v3  ;;  %1855 = vmatprep.mubr.bf16.mxu0 %v6727_v2  ;;  %2144 = vmatprep.mubr.bf16.mxu1 %v6727_v2  ;;  %v2583_v17 = vshrl.u32 %v5680_v18, 16  ;;  %v2586_v52 = vshll.u32 %v5680_v18, 16  ;;  %v2286_v59 = vrot.slane %v5680_v18, 2 }
  0xf2   : > { %v614_v60 = vpop.f32.mrf.mxu0  ;;  %v826_v30 = vpop.f32.mrf.mxu1 }
  0xf3   : > { %v5674_v31 = vadd.f32 %v826_v30, %v614_v60  ;;  %v2585_v42 = vrot.slane %v2583_v17, 2  ;;  %v2588_v39 = vrot.slane %v2586_v52, 3  ;;  %v2287_v7 = vsel %vm1933_vm3, %v2285_v56, %v2286_v59 }
  0xf4   : > { %v616_v0 = vpop.f32.mrf.mxu0  ;;  %v828_v38 = vpop.f32.mrf.mxu1  ;;  %v2288_v60 = vrot.slane %v5701_v36, 2 }
  0xf5   : > { %v5677_v13 = vadd.f32 %v828_v38, %v616_v0  ;;  %v2589_v34 = vor.u32 %v2588_v39, %v2585_v42  ;;  %v4719_v0 = vld [vmem:[%s6721_s1 + $0x460] ss:$8 sps:$4 sm:$0xff]   ;;  %v2598_v38 = vor.u32 %v2597_v23, %v2594_v62  ;;  %v4729_v39 = vld [vmem:[%s6721_s1 + $0x444] ss:$8 sps:$4 sm:$0xff]  }
  0xf6   : > { %v618_v40 = vpop.f32.mrf.mxu0  ;;  %v830_v12 = vpop.f32.mrf.mxu1  ;;  %v2289_v17 = vsel %vm1933_vm3, %v2286_v59, %v2288_v60 }
  0xf7   : > { %v5682_v41 = vadd.f32 %v830_v12, %v618_v40  ;;  %v2590_v21 = vsel %vm2573_vm4, %v2581_v45, %v2589_v34  ;;  %v2604_v40 = vshll.u32 %v5723_v5, 16 }
  0xf8   : > { %v622_v53 = vpop.f32.mrf.mxu0  ;;  %v834_v44 = vpop.f32.mrf.mxu1  ;;  %1856 = vmatmul.mubr.bf16.gmra.mxu0 %v5405_v33  ;;  %2145 = vmatmul.mubr.bf16.gmra.mxu1 %v5425_v61 }
  0xf9   : > { %v5686_v48 = vadd.f32 %v834_v44, %v622_v53  ;;  %1865 = vmatprep.mubr.bf16.mxu0 %v6727_v2  ;;  %2154 = vmatprep.mubr.bf16.mxu1 %v6727_v2  ;;  %v4725_v44 = vld [vmem:[%s6721_s1 + $0x454] ss:$8 sps:$4 sm:$0xff]  }
  0xfa   : > { %v624_v51 = vpop.f32.mrf.mxu0  ;;  %v836_v24 = vpop.f32.mrf.mxu1 }
  0xfb   : > { %v5693_v33 = vadd.f32 %v836_v24, %v624_v51  ;;  %v2599_v51 = vsel %vm2573_vm4, %v2589_v34, %v2598_v38  ;;  %v2603_v24 = vrot.slane %v2601_v22, 2 }
  0xfc   : > { %v626_v61 = vpop.f32.mrf.mxu0  ;;  %v838_v54 = vpop.f32.mrf.mxu1 }
  0xfd   : > { %v5695_v49 = vadd.f32 %v838_v54, %v626_v61  ;;  %v2606_v61 = vrot.slane %v2604_v40, 3  ;;  %v5750_v54 = vld [vmem:[%s5024_s20 + $0x30] sm:$0xff]  }
  0xfe   : > { %v628_v1 = vpop.f32.mrf.mxu0  ;;  %v840_v11 = vpop.f32.mrf.mxu1  ;;  %v2610_v59 = vshrl.u32 %v5750_v54, 16  ;;  %v2613_v45 = vshll.u32 %v5750_v54, 16  ;;  %v2292_v22 = vrot.slane %v5750_v54, 2 }
  0xff   : > { %v5703_v63 = vadd.f32 %v840_v11, %v628_v1  ;;  %v2607_v56 = vor.u32 %v2606_v61, %v2603_v24  ;;  %v4741_v24 = vld [vmem:[%s6721_s1 + $0x414] ss:$8 sps:$4 sm:$0xff]  }
 0x100   : > { %v632_v4 = vpop.f32.mrf.mxu0  ;;  %v844_v6 = vpop.f32.mrf.mxu1  ;;  %1866 = vmatmul.mubr.bf16.gmra.mxu0 %v5448_v35  ;;  %2155 = vmatmul.mubr.bf16.gmra.mxu1 %v1952_v28  ;;  %v4723_v28 = vld [vmem:[%s6721_s1 + $0x450] ss:$8 sps:$4 sm:$0xff]   ;;  %v2612_v62 = vrot.slane %v2610_v59, 2  ;;  %v2615_v23 = vrot.slane %v2613_v45, 3  ;;  %v5810_v59 = vld [vmem:[%s5024_s20 + $0x40] sm:$0xff]  }
 0x101   : > { %v5707_v50 = vadd.f32 %v844_v6, %v632_v4  ;;  %2425 = vmatprep.mubr.bf16.mxu0 %v6727_v2  ;;  %2784 = vmatprep.mubr.bf16.mxu1 %v6727_v2  ;;  %v2290_v4 = vrot.slane %v5723_v5, 2 }
 0x102   : > { %v634_v55 = vpop.f32.mrf.mxu0  ;;  %v846_v16 = vpop.f32.mrf.mxu1 }
 0x103   : > { %v5713_v35 = vadd.f32 %v846_v16, %v634_v55  ;;  %v4733_v16 = vld [vmem:[%s6721_s1 + $0x434] ss:$8 sps:$4 sm:$0xff]  }
 0x104   : > { %v636_v19 = vpop.f32.mrf.mxu0  ;;  %v848_v20 = vpop.f32.mrf.mxu1 }
 0x105   : > { %v5716_v8 = vadd.f32 %v848_v20, %v636_v19 }
 0x106   : > { %v638_v57 = vpop.f32.mrf.mxu0  ;;  %v850_v14 = vpop.f32.mrf.mxu1 }
 0x107   : > { %v5728_v3 = vadd.f32 %v850_v14, %v638_v57  ;;  %v5780_v57 = vld [vmem:[%s5024_s20 + $0x38] sm:$0xff]  }
 0x108   : > { %v642_v29 = vpop.f32.mrf.mxu0  ;;  %v854_v47 = vpop.f32.mrf.mxu1  ;;  %2426 = vmatmul.mubr.bf16.vlgmr.msra.gmra.mxu0 %v2287_v7  ;;  %2785 = vmatmul.mubr.bf16.vlgmr.msra.gmra.mxu1 %v2590_v21  ;;  %v2291_v7 = vsel %vm1933_vm3, %v2288_v60, %v2290_v4  ;;  %v2608_v21 = vsel %vm2573_vm4, %v2598_v38, %v2607_v56  ;;  %v4737_v60 = vld [vmem:[%s6721_s1 + $0x424] ss:$8 sps:$4 sm:$0xff]  }
 0x109   : > { %v5731_v30 = vadd.f32 %v854_v47, %v642_v29  ;;  %3042 = vmatpush1.bf16.msra.mxu0 %v4715_v25  ;;  %2435 = vmatprep.mubr.bf16.mxu0 %v6727_v2  ;;  %v4731_v29 = vld [vmem:[%s6721_s1 + $0x430] ss:$8 sps:$4 sm:$0xff]  }
 0x10a   : > { %v644_v12 = vpop.f32.mrf.mxu0  ;;  %v856_v53 = vpop.f32.mrf.mxu1  ;;  %2794 = vmatprep.mubr.bf16.mxu1 %v6727_v2  ;;  %3043 = vmatprep.subr.bf16.mxu0 %v4721_v27 }
 0x10b   : > { %v5743_v46 = vadd.f32 %v856_v53, %v644_v12  ;;  %v2616_v12 = vor.u32 %v2615_v23, %v2612_v62  ;;  %v2619_v53 = vshrl.u32 %v5780_v57, 16  ;;  %v2631_v62 = vshll.u32 %v5810_v59, 16 }
 0x10c   : > { %v646_v15 = vpop.f32.mrf.mxu0  ;;  %v858_v26 = vpop.f32.mrf.mxu1 }
 0x10d   : > { %v5746_v52 = vadd.f32 %v858_v26, %v646_v15  ;;  %3044 = vmatpush1.bf16.msra.mxu0 %v4719_v0 }
 0x10e   : > { %v648_v37 = vpop.f32.mrf.mxu0  ;;  %v860_v58 = vpop.f32.mrf.mxu1  ;;  %3045 = vmatprep.subr.bf16.mxu0 %v4725_v44  ;;  %v2622_v44 = vshll.u32 %v5780_v57, 16 }
 0x10f   : > { %v5755_v42 = vadd.f32 %v860_v58, %v648_v37  ;;  %v2293_v58 = vsel %vm1933_vm3, %v2290_v4, %v2292_v22  ;;  %v4745_v4 = vld [vmem:[%s6721_s1 + $0x404] ss:$8 sps:$4 sm:$0xff]  }
 0x110   : > { %v652_v1 = vpop.f32.mrf.mxu0  ;;  %v864_v11 = vpop.f32.mrf.mxu1  ;;  %2436 = vmatmul.mubr.bf16.gmra.mxu0 %v2289_v17  ;;  %2795 = vmatmul.mubr.bf16.gmra.mxu1 %v2599_v51  ;;  %v4735_v17 = vld [vmem:[%s6721_s1 + $0x420] ss:$8 sps:$4 sm:$0xff]  }
 0x111   : > { %v5761_v6 = vadd.f32 %v864_v11, %v652_v1  ;;  %2445 = vmatprep.mubr.bf16.mxu0 %v6727_v2  ;;  %2804 = vmatprep.mubr.bf16.mxu1 %v6727_v2  ;;  %v2621_v1 = vrot.slane %v2619_v53, 2  ;;  %v2624_v11 = vrot.slane %v2622_v44, 3 }
 0x112   : > { %v654_v34 = vpop.f32.mrf.mxu0  ;;  %v866_v9 = vpop.f32.mrf.mxu1  ;;  %3046 = vmatpush1.bf16.msra.mxu0 %v4723_v28 }
 0x113   : > { %v5770_v55 = vadd.f32 %v866_v9, %v654_v34  ;;  %3047 = vmatprep.subr.bf16.mxu0 %v4729_v39  ;;  %v2617_v39 = vsel %vm2573_vm4, %v2607_v56, %v2616_v12  ;;  %v4739_v9 = vld [vmem:[%s6721_s1 + $0x410] ss:$8 sps:$4 sm:$0xff]  }
 0x114   : > { %v656_v19 = vpop.f32.mrf.mxu0  ;;  %v868_v20 = vpop.f32.mrf.mxu1 }
 0x115   : > { %v5776_v25 = vadd.f32 %v868_v20, %v656_v19  ;;  %v2294_v19 = vrot.slane %v5780_v57, 2 }
 0x116   : > { %v658_v14 = vpop.f32.mrf.mxu0  ;;  %v870_v27 = vpop.f32.mrf.mxu1  ;;  %3048 = vmatpush1.bf16.msra.mxu0 %v4727_v10 }
 0x117   : > { %v5785_v47 = vadd.f32 %v870_v27, %v658_v14  ;;  %3049 = vmatprep.subr.bf16.mxu0 %v4733_v16  ;;  %v4743_v27 = vld [vmem:[%s6721_s1 + $0x400] ss:$8 sps:$4 sm:$0xff]  }
 0x118   : > { %v662_v0 = vpop.f32.mrf.mxu0  ;;  %v874_v38 = vpop.f32.mrf.mxu1  ;;  %2446 = vmatmul.mubr.bf16.gmra.mxu0 %v2291_v7  ;;  %2805 = vmatmul.mubr.bf16.gmra.mxu1 %v2608_v21  ;;  %v2625_v7 = vor.u32 %v2624_v11, %v2621_v1  ;;  %v2628_v21 = vshrl.u32 %v5810_v59, 16 }
 0x119   : > { %v5791_v40 = vadd.f32 %v874_v38, %v662_v0  ;;  %2455 = vmatprep.mubr.bf16.mxu0 %v6727_v2  ;;  %2814 = vmatprep.mubr.bf16.mxu1 %v6727_v2  ;;  %v2295_v38 = vsel %vm1933_vm3, %v2292_v22, %v2294_v19  ;;  %v2296_v22 = vrot.slane %v5810_v59, 2 }
 0x11a   : > { %v664_v15 = vpop.f32.mrf.mxu0  ;;  %v876_v26 = vpop.f32.mrf.mxu1  ;;  %3050 = vmatpush1.bf16.msra.mxu0 %v4731_v29  ;;  %v2626_v44 = vsel %vm2573_vm4, %v2616_v12, %v2625_v7 }
 0x11b   : > { %v5800_v51 = vadd.f32 %v876_v26, %v664_v15  ;;  %3051 = vmatprep.subr.bf16.mxu0 %v4737_v60  ;;  %v2630_v15 = vrot.slane %v2628_v21, 2  ;;  %v2633_v26 = vrot.slane %v2631_v62, 3  ;;  %v2297_v21 = vsel %vm1933_vm3, %v2294_v19, %v2296_v22  ;;  %v5852_v62 = vld [vmem:[%s5024_s20 + $0x50] sm:$0xff]  }
 0x11c   : > { %v666_v61 = vpop.f32.mrf.mxu0  ;;  %v878_v37 = vpop.f32.mrf.mxu1  ;;  %6731 = vst [vmem:[#allocation2_spill] sm:$0xff] %v5852_v62  ;;  %v2649_v19 = vshll.u32 %v5852_v62, 16 }
 0x11d   : > { %v5806_v28 = vadd.f32 %v878_v37, %v666_v61  ;;  %v2634_v12 = vor.u32 %v2633_v26, %v2630_v15 }
 0x11e   : > { %v668_v45 = vpop.f32.mrf.mxu0  ;;  %v880_v34 = vpop.f32.mrf.mxu1  ;;  %3052 = vmatpush1.bf16.msra.mxu0 %v4735_v17  ;;  %v5837_v17 = vld [vmem:[%s5024_s20 + $0x48] sm:$0xff]  }
 0x11f   : > { %v5815_v10 = vadd.f32 %v880_v34, %v668_v45  ;;  %3053 = vmatprep.subr.bf16.mxu0 %v4741_v24  ;;  %v2637_v11 = vshrl.u32 %v5837_v17, 16  ;;  %v2640_v45 = vshll.u32 %v5837_v17, 16 }
 0x120   : > { %v672_v16 = vpop.f32.mrf.mxu0  ;;  %v884_v56 = vpop.f32.mrf.mxu1  ;;  %2456 = vmatmul.mubr.bf16.gmra.mxu0 %v2293_v58  ;;  %2815 = vmatmul.mubr.bf16.gmra.mxu1 %v2617_v39 }
 0x121   : > { %v5821_v20 = vadd.f32 %v884_v56, %v672_v16  ;;  %2465 = vmatprep.mubr.bf16.mxu0 %v6727_v2  ;;  %2824 = vmatprep.mubr.bf16.mxu1 %v6727_v2 }
 0x122   : > { %v674_v23 = vpop.f32.mrf.mxu0  ;;  %v886_v14 = vpop.f32.mrf.mxu1  ;;  %3054 = vmatpush1.bf16.msra.mxu0 %v4739_v9 }
 0x123   : > { %v5830_v29 = vadd.f32 %v886_v14, %v674_v23  ;;  %3055 = vmatprep.subr.bf16.mxu0 %v4745_v4  ;;  %v2635_v14 = vsel %vm2573_vm4, %v2625_v7, %v2634_v12  ;;  %v2298_v7 = vrot.slane %v5837_v17, 2 }
 0x124   : > { %v676_v60 = vpop.f32.mrf.mxu0  ;;  %v888_v0 = vpop.f32.mrf.mxu1 }
 0x125   : > { %v5833_v53 = vadd.f32 %v888_v0, %v676_v60  ;;  %v2642_v60 = vrot.slane %v2640_v45, 3 }
 0x126   : > { %v678_v24 = vpop.f32.mrf.mxu0  ;;  %v890_v61 = vpop.f32.mrf.mxu1  ;;  %3056 = vmatpush1.bf16.msra.mxu0 %v4743_v27  ;;  %v2639_v27 = vrot.slane %v2637_v11, 2 }
 0x127   : > { %v5839_v37 = vadd.f32 %v890_v61, %v678_v24  ;;  %v2646_v24 = vshrl.u32 %v5852_v62, 16 }
 0x128   : > { %v682_v58 = vpop.f32.mrf.mxu0  ;;  %v894_v39 = vpop.f32.mrf.mxu1  ;;  %2466 = vmatmul.mubr.bf16.gmra.mxu0 %v2295_v38  ;;  %2825 = vmatmul.mubr.bf16.gmra.mxu1 %v2626_v44 }
 0x129   : > { %v5842_v1 = vadd.f32 %v894_v39, %v682_v58  ;;  %2475 = vmatprep.mubr.bf16.mxu0 %v6727_v2  ;;  %2834 = vmatprep.mubr.bf16.mxu1 %v6727_v2  ;;  %v2643_v58 = vor.u32 %v2642_v60, %v2639_v27 }
 0x12a   : > { %v684_v34 = vpop.f32.mrf.mxu0  ;;  %v896_v9 = vpop.f32.mrf.mxu1 }
 0x12b   : > { %v5848_v4 = vadd.f32 %v896_v9, %v684_v34 }
 0x12c   : > { %v686_v16 = vpop.f32.mrf.mxu0  ;;  %v898_v56 = vpop.f32.mrf.mxu1 }
 0x12d   : > { %v5854_v23 = vadd.f32 %v898_v56, %v686_v16  ;;  %v2648_v16 = vrot.slane %v2646_v24, 2  ;;  %v2651_v56 = vrot.slane %v2649_v19, 3  ;;  %v2300_v24 = vrot.slane %v5852_v62, 2 }
 0x12e   : > { %v688_v0 = vpop.f32.mrf.mxu0  ;;  %v900_v38 = vpop.f32.mrf.mxu1 }
 0x12f   : > { %v5857_v44 = vadd.f32 %v900_v38, %v688_v0  ;;  %v2644_v0 = vsel %vm2573_vm4, %v2634_v12, %v2643_v58  ;;  %v5873_v38 = vld [vmem:[%s5024_s20 + $0x58] ss:$0 sps:$4 sm:$0x77]   ;;  %v2652_v19 = vor.u32 %v2651_v56, %v2648_v16  ;;  %v2301_v16 = vsel %vm1933_vm3, %v2298_v7, %v2300_v24 }
 0x130   : > { %v692_v15 = vpop.f32.mrf.mxu0  ;;  %v904_v26 = vpop.f32.mrf.mxu1  ;;  %2476 = vmatmul.mubr.bf16.gmra.mxu0 %v2297_v21  ;;  %2835 = vmatmul.mubr.bf16.gmra.mxu1 %v2635_v14  ;;  %v2299_v14 = vsel %vm1933_vm3, %v2296_v22, %v2298_v7  ;;  %6733 = vst [vmem:[#allocation4_spill] sm:$0xff] %v5873_v38  ;;  %v2655_v22 = vshrl.u32 %v5873_v38, 16  ;;  %v2658_v12 = vshll.u32 %v5873_v38, 16  ;;  %v4746_v56 = vld [vmem:[%s5024_s20 + $0x58] ss:$0 sps:$4 sm:$0x33]  }
 0x131   : > { %v5861_v61 = vadd.f32 %v904_v26, %v692_v15  ;;  %2485 = vmatprep.mubr.bf16.mxu0 %v6727_v2  ;;  %2844 = vmatprep.mubr.bf16.mxu1 %v6727_v2 }
 0x132   : > { %v694_v39 = vpop.f32.mrf.mxu0  ;;  %v906_v11 = vpop.f32.mrf.mxu1  ;;  %v2657_v62 = vrot.slane %v2655_v22, 2 }
 0x133   : > { %v5866_v45 = vadd.f32 %v906_v11, %v694_v39 }
 0x134   : > { %v696_v34 = vpop.f32.mrf.mxu0  ;;  %v908_v9 = vpop.f32.mrf.mxu1 }
 0x135   : > { %v5868_v21 = vadd.f32 %v908_v9, %v696_v34 }
 0x136   : > { %v5875_v15 = vpop.f32.mrf.mxu0  ;;  %v5877_v26 = vpop.f32.mrf.mxu1 }
 0x137   : > { %6732 = vst [vmem:[#allocation3_spill] sm:$0xff] %v5868_v21  ;;  %6734 = vst [vmem:[#allocation5_spill] sm:$0xff] %v5875_v15 }
 0x138   : > { %6735 = vst [vmem:[#allocation6_spill] sm:$0xff] %v5877_v26  ;;  %v1077_v27 = vpop.f32.mrf.mxu0  ;;  %2486 = vmatmul.mubr.bf16.gmra.mxu0 %v2299_v14  ;;  %v1428_v60 = vpop.f32.mrf.mxu1  ;;  %2845 = vmatmul.mubr.bf16.gmra.mxu1 %v2644_v0  ;;  %v2660_v26 = vrot.slane %v2658_v12, 3 }
 0x139   : > { %v1166_v39 = vadd.f32 %v1077_v27, %v5666_v43  ;;  %2495 = vmatprep.mubr.bf16.mxu0 %v6727_v2  ;;  %2854 = vmatprep.mubr.bf16.mxu1 %v6727_v2  ;;  %v2653_v43 = vsel %vm2573_vm4, %v2643_v58, %v2652_v19  ;;  %v2302_v58 = vrot.slane %v4746_v56, 2 }
 0x13a   : > { %v1079_v11 = vpop.f32.mrf.mxu0  ;;  %v1430_v34 = vpop.f32.mrf.mxu1  ;;  %v2661_v22 = vor.u32 %v2660_v26, %v2657_v62 }
 0x13b   : > { %v1167_v9 = vadd.f32 %v1079_v11, %v5674_v31  ;;  %v5886_v14 = vadd.f32 %v1428_v60, %v1166_v39  ;;  %v6736_v11 = vmov 0  }
 0x13c   : > { %v1081_v0 = vpop.f32.mrf.mxu0  ;;  %v1432_v21 = vpop.f32.mrf.mxu1 }
 0x13d   : > { %v1168_v27 = vadd.f32 %v1081_v0, %v5677_v13  ;;  %v5892_v2 = vadd.f32 %v1430_v34, %v1167_v9  ;;  %v2911_v9 = vld [vmem:[%s5024_s20 + $0x10] sm:$0x8]  ;;  %s4455_s20 = smul.u32 18, %s6769_s21 }
 0x13e   : > { %v1083_v38 = vpop.f32.mrf.mxu0  ;;  %v5894_v15 = vpop.f32.mrf.mxu1 }
 0x13f   : > { %v5897_v31 = vadd.f32 %v1083_v38, %v5682_v41  ;;  %v5899_v60 = vadd.f32 %v1432_v21, %v1168_v27  ;;  %v4258_v27 = vcombine.low %v2911_v9, %v5672_v32  ;;  %s6479_s10 = sadd.s32 %s4456_s9, %s4455_s20 }
 0x140   : > { %v1087_v39 = vpop.f32.mrf.mxu0  ;;  %2496 = vmatmul.mubr.bf16.gmra.mxu0 %v2301_v16  ;;  %v1438_v7 = vpop.f32.mrf.mxu1  ;;  %2855 = vmatmul.mubr.bf16.gmra.mxu1 %v2653_v43  ;;  %v2303_v16 = vsel %vm1933_vm3, %v2300_v24, %v2302_v58  ;;  %s3966_s11 = sshll.u32 %s6479_s10, 3  ;;  %s3967_s21 = sshll.u32 %s6479_s10, 2 }
 0x141   : > { %v1170_v13 = vadd.f32 %v1087_v39, %v5686_v48  ;;  %2505 = vmatprep.mubr.bf16.mxu0 %v6736_v11  ;;  %2864 = vmatprep.mubr.bf16.mxu1 %v6736_v11  ;;  %v2662_v48 = vsel %vm2573_vm4, %v2652_v19, %v2661_v22  ;;  %v2933_v24 = vrot.slane %v4258_v27, 3  ;;  %v2934_v19 = vrot.slane %v5680_v18, 3  ;;  %s6490_s17 = scalar_lea.vmem %s6725_s5, %s3966_s11  ;;  %s6678_s14 = scalar_lea.vmem %s6726_s6, %s3967_s21 }
 0x142   : > { %v1089_v12 = vpop.f32.mrf.mxu0  ;;  %v1440_v34 = vpop.f32.mrf.mxu1 }
 0x143   : > { %v1171_v41 = vadd.f32 %v1089_v12, %v5693_v33  ;;  %v5906_v38 = vadd.f32 %v1438_v7, %v1170_v13 }
 0x144   : > { %v1091_v21 = vpop.f32.mrf.mxu0  ;;  %v1442_v0 = vpop.f32.mrf.mxu1 }
 0x145   : > { %v1172_v43 = vadd.f32 %v1091_v21, %v5695_v49  ;;  %v5910_v56 = vadd.f32 %v1440_v34, %v1171_v41 }
 0x146   : > { %v1093_v62 = vpop.f32.mrf.mxu0  ;;  %v5914_v26 = vpop.f32.mrf.mxu1 }
 0x147   : > { %v5917_v39 = vadd.f32 %v1093_v62, %v5703_v63  ;;  %v5919_v33 = vadd.f32 %v1442_v0, %v1172_v43 }
 0x148   : > { %v1097_v7 = vpop.f32.mrf.mxu0  ;;  %2506 = vmatmul.mubr.bf16.gmra.mxu0 %v2303_v16  ;;  %v1448_v13 = vpop.f32.mrf.mxu1  ;;  %2865 = vmatmul.mubr.bf16.gmra.mxu1 %v2662_v48 }
 0x149   : > { %v1174_v49 = vadd.f32 %v1097_v7, %v5707_v50  ;;  %3073 = vmatprep.mubr.bf16.mxu0 %v6736_v11  ;;  %v2935_v50 = vsel %vm2932_vm5, %v2933_v24, %v2934_v19 }
 0x14a   : > { %v1099_v32 = vpop.f32.mrf.mxu0  ;;  %v1450_v58 = vpop.f32.mrf.mxu1 }
 0x14b   : > { %v1175_v22 = vadd.f32 %v1099_v32, %v5713_v35  ;;  %v5925_v63 = vadd.f32 %v1448_v13, %v1174_v49 }
 0x14c   : > { %v1101_v12 = vpop.f32.mrf.mxu0  ;;  %v1452_v34 = vpop.f32.mrf.mxu1 }
 0x14d   : > { %v1176_v9 = vadd.f32 %v1101_v12, %v5716_v8  ;;  %v5928_v41 = vadd.f32 %v1450_v58, %v1175_v22  ;;  %v2936_v8 = vrot.slane %v5701_v36, 3 }
 0x14e   : > { %v1103_v21 = vpop.f32.mrf.mxu0  ;;  %v5931_v0 = vpop.f32.mrf.mxu1 }
 0x14f   : > { %v5934_v18 = vadd.f32 %v1103_v21, %v5728_v3  ;;  %v5936_v16 = vadd.f32 %v1452_v34, %v1176_v9  ;;  %v2937_v58 = vsel %vm2932_vm5, %v2934_v19, %v2936_v8  ;;  %v4749_v19 = vld [vmem:[%s6723_s3 + $0x78] sm:$0xff]  }
 0x150   : > { %v1107_v43 = vpop.f32.mrf.mxu0  ;;  %3074 = vmatmul.mubr.bf16.vlgmr.msra.gmra.mxu0 %v2935_v50  ;;  %v1458_v35 = vpop.f32.mrf.mxu1  ;;  %4383 = vmatprep.subr.bf16.mxu1 %v4749_v19  ;;  %v4752_v19 = vld [vmem:[%s6723_s3 + $0x30] sm:$0xff]  }
 0x151   : > { %v1178_v48 = vadd.f32 %v1107_v43, %v5731_v30  ;;  %3083 = vmatprep.mubr.bf16.mxu0 %v6736_v11 }
 0x152   : > { %v1109_v27 = vpop.f32.mrf.mxu0  ;;  %v1460_v62 = vpop.f32.mrf.mxu1 }
 0x153   : > { %v1179_v7 = vadd.f32 %v1109_v27, %v5743_v46  ;;  %v5942_v13 = vadd.f32 %v1458_v35, %v1178_v48 }
 0x154   : > { %v1111_v49 = vpop.f32.mrf.mxu0  ;;  %v1462_v3 = vpop.f32.mrf.mxu1 }
 0x155   : > { %v1180_v24 = vadd.f32 %v1111_v49, %v5746_v52  ;;  %v5945_v32 = vadd.f32 %v1460_v62, %v1179_v7  ;;  %v2938_v52 = vrot.slane %v5723_v5, 3 }
 0x156   : > { %v1113_v22 = vpop.f32.mrf.mxu0  ;;  %v5948_v30 = vpop.f32.mrf.mxu1 }
 0x157   : > { %v5951_v12 = vadd.f32 %v1113_v22, %v5755_v42  ;;  %v5953_v36 = vadd.f32 %v1462_v3, %v1180_v24  ;;  %v4750_v42 = vld [vmem:[%s6723_s3 + $0x38] sm:$0xff]   ;;  %v2939_v62 = vsel %vm2932_vm5, %v2936_v8, %v2938_v52  ;;  %v4751_v8 = vld [vmem:[%s6723_s3 + $0x70] sm:$0xff]  }
 0x158   : > { %v1117_v34 = vpop.f32.mrf.mxu0  ;;  %3084 = vmatmul.mubr.bf16.gmra.mxu0 %v2937_v58  ;;  %v1468_v46 = vpop.f32.mrf.mxu1  ;;  %4384 = vmatpush3.bf16.msra.mxu1 %v4750_v42 }
 0x159   : > { %v1182_v9 = vadd.f32 %v1117_v34, %v5761_v6  ;;  %3093 = vmatprep.mubr.bf16.mxu0 %v6736_v11  ;;  %4385 = vmatprep.subr.bf16.mxu1 %v4751_v8  ;;  %v4754_v8 = vld [vmem:[%s6723_s3 + $0x28] sm:$0xff]  }
 0x15a   : > { %v1119_v50 = vpop.f32.mrf.mxu0  ;;  %v1470_v21 = vpop.f32.mrf.mxu1 }
 0x15b   : > { %v1183_v43 = vadd.f32 %v1119_v50, %v5770_v55  ;;  %v5965_v35 = vadd.f32 %v1468_v46, %v1182_v9 }
 0x15c   : > { %v1121_v6 = vpop.f32.mrf.mxu0  ;;  %v1472_v48 = vpop.f32.mrf.mxu1  ;;  %4386 = vmatpush3.bf16.msra.mxu1 %v4752_v19 }
 0x15d   : > { %v1184_v5 = vadd.f32 %v1121_v6, %v5776_v25  ;;  %v5968_v27 = vadd.f32 %v1470_v21, %v1183_v43  ;;  %v2940_v25 = vrot.slane %v5750_v54, 3 }
 0x15e   : > { %v1123_v7 = vpop.f32.mrf.mxu0  ;;  %v5971_v49 = vpop.f32.mrf.mxu1 }
 0x15f   : > { %v5974_v3 = vadd.f32 %v1123_v7, %v5785_v47  ;;  %v5976_v24 = vadd.f32 %v1472_v48, %v1184_v5  ;;  %v2941_v21 = vsel %vm2932_vm5, %v2938_v52, %v2940_v25 }
 0x160   : > { %v1127_v55 = vpop.f32.mrf.mxu0  ;;  %3094 = vmatmul.mubr.bf16.gmra.mxu0 %v2939_v62  ;;  %v1478_v58 = vpop.f32.mrf.mxu1 }
 0x161   : > { %v1186_v22 = vadd.f32 %v1127_v55, %v5791_v40  ;;  %3103 = vmatprep.mubr.bf16.mxu0 %v6736_v11 }
 0x162   : > { %v1129_v34 = vpop.f32.mrf.mxu0  ;;  %v1480_v46 = vpop.f32.mrf.mxu1 }
 0x163   : > { %v1187_v47 = vadd.f32 %v1129_v34, %v5800_v51  ;;  %v5985_v9 = vadd.f32 %v1478_v58, %v1186_v22 }
 0x164   : > { %v1131_v40 = vpop.f32.mrf.mxu0  ;;  %v1482_v42 = vpop.f32.mrf.mxu1 }
 0x165   : > { %v1188_v50 = vadd.f32 %v1131_v40, %v5806_v28  ;;  %v5991_v54 = vadd.f32 %v1480_v46, %v1187_v47  ;;  %v2942_v28 = vrot.slane %v5780_v57, 3 }
 0x166   : > { %v1133_v43 = vpop.f32.mrf.mxu0  ;;  %v5994_v6 = vpop.f32.mrf.mxu1 }
 0x167   : > { %v5997_v51 = vadd.f32 %v1133_v43, %v5815_v10  ;;  %v5999_v48 = vadd.f32 %v1482_v42, %v1188_v50  ;;  %v4753_v10 = vld [vmem:[%s6723_s3 + $0x68] sm:$0xff]   ;;  %v2943_v57 = vsel %vm2932_vm5, %v2940_v25, %v2942_v28 }
 0x168   : > { %v1137_v5 = vpop.f32.mrf.mxu0  ;;  %3104 = vmatmul.mubr.bf16.gmra.mxu0 %v2941_v21  ;;  %v1488_v62 = vpop.f32.mrf.mxu1  ;;  %4387 = vmatprep.subr.bf16.mxu1 %v4753_v10 }
 0x169   : > { %v1190_v7 = vadd.f32 %v1137_v5, %v5821_v20  ;;  %3113 = vmatprep.mubr.bf16.mxu0 %v6736_v11  ;;  %4388 = vmatpush3.bf16.msra.mxu1 %v4754_v8 }
 0x16a   : > { %v1139_v55 = vpop.f32.mrf.mxu0  ;;  %v1490_v52 = vpop.f32.mrf.mxu1 }
 0x16b   : > { %v1191_v58 = vadd.f32 %v1139_v55, %v5830_v29  ;;  %v6005_v22 = vadd.f32 %v1488_v62, %v1190_v7 }
 0x16c   : > { %v1141_v34 = vpop.f32.mrf.mxu0  ;;  %v1492_v20 = vpop.f32.mrf.mxu1 }
 0x16d   : > { %v1192_v46 = vadd.f32 %v1141_v34, %v5833_v53  ;;  %v6014_v47 = vadd.f32 %v1490_v52, %v1191_v58  ;;  %v2944_v53 = vrot.slane %v5810_v59, 3  ;;  %v4756_v59 = vld [vmem:[%s6723_s3 + $0x20] sm:$0xff]  }
 0x16e   : > { %v1143_v29 = vpop.f32.mrf.mxu0  ;;  %v6017_v19 = vpop.f32.mrf.mxu1 }
 0x16f   : > { %v6020_v40 = vadd.f32 %v1143_v29, %v5839_v37  ;;  %v6022_v42 = vadd.f32 %v1492_v20, %v1192_v46  ;;  %v4755_v37 = vld [vmem:[%s6723_s3 + $0x60] sm:$0xff]  }
 0x170   : > { %v1147_v50 = vpop.f32.mrf.mxu0  ;;  %3114 = vmatmul.mubr.bf16.gmra.mxu0 %v2943_v57  ;;  %v1498_v21 = vpop.f32.mrf.mxu1  ;;  %4389 = vmatprep.subr.bf16.mxu1 %v4755_v37 }
 0x171   : > { %v1194_v43 = vadd.f32 %v1147_v50, %v5842_v1  ;;  %3123 = vmatprep.mubr.bf16.mxu0 %v6736_v11  ;;  %v2945_v1 = vsel %vm2932_vm5, %v2942_v28, %v2944_v53  ;;  %4390 = vmatpush3.bf16.msra.mxu1 %v4756_v59  ;;  %v2946_v28 = vrot.slane %v5837_v17, 3  ;;  %v4757_v17 = vld [vmem:[%s6723_s3 + $0x58] sm:$0xff]  }
 0x172   : > { %v1149_v25 = vpop.f32.mrf.mxu0  ;;  %v1500_v5 = vpop.f32.mrf.mxu1  ;;  %4391 = vmatprep.subr.bf16.mxu1 %v4757_v17 }
 0x173   : > { %v1195_v62 = vadd.f32 %v1149_v25, %v5848_v4  ;;  %v6028_v7 = vadd.f32 %v1498_v21, %v1194_v43 }
 0x174   : > { %v1151_v55 = vpop.f32.mrf.mxu0  ;;  %v1502_v52 = vpop.f32.mrf.mxu1 }
 0x175   : > { %v1196_v58 = vadd.f32 %v1151_v55, %v5854_v23  ;;  %v6034_v10 = vadd.f32 %v1500_v5, %v1195_v62  ;;  %v6737_v5 = vld [vmem:[#allocation5_spill] sm:$0xff]  ;;  %v6738_v62 = vld [vmem:[#allocation6_spill] sm:$0xff]  ;;  %v6739_v55 = vld [vmem:[#allocation3_spill] sm:$0xff] }
 0x176   : > { %v1153_v4 = vpop.f32.mrf.mxu0  ;;  %v6040_v8 = vpop.f32.mrf.mxu1  ;;  %v911_v37 = vadd.f32 %v6738_v62, %v6737_v5 }
 0x177   : > { %v6043_v34 = vadd.f32 %v1153_v4, %v5857_v44  ;;  %v6045_v20 = vadd.f32 %v1502_v52, %v1196_v58 }
 0x178   : > { %v1157_v46 = vpop.f32.mrf.mxu0  ;;  %3124 = vmatmul.mubr.bf16.gmra.mxu0 %v2945_v1  ;;  %v1508_v23 = vpop.f32.mrf.mxu1 }
 0x179   : > { %v1198_v57 = vadd.f32 %v1157_v46, %v5861_v61  ;;  %3133 = vmatprep.mubr.bf16.mxu0 %v6736_v11  ;;  %v2947_v61 = vsel %vm2932_vm5, %v2944_v53, %v2946_v28 }
 0x17a   : > { %v1159_v29 = vpop.f32.mrf.mxu0  ;;  %v1510_v50 = vpop.f32.mrf.mxu1 }
 0x17b   : > { %v1199_v21 = vadd.f32 %v1159_v29, %v5866_v45  ;;  %v6051_v43 = vadd.f32 %v1508_v23, %v1198_v57  ;;  %v4758_v45 = vld [vmem:[%s6723_s3 + $0x18] sm:$0xff]  }
 0x17c   : > { %v1161_v44 = vpop.f32.mrf.mxu0  ;;  %v1512_v25 = vpop.f32.mrf.mxu1  ;;  %4392 = vmatpush3.bf16.msra.mxu1 %v4758_v45  ;;  %v4759_v45 = vld [vmem:[%s6723_s3 + $0x50] sm:$0xff]  }
 0x17d   : > { %v1200_v52 = vadd.f32 %v1161_v44, %v6739_v55  ;;  %v6056_v58 = vadd.f32 %v1510_v50, %v1199_v21  ;;  %v6740_v50 = vld [vmem:[#allocation2_spill] sm:$0xff]  ;;  %4393 = vmatprep.subr.bf16.mxu1 %v4759_v45 }
 0x17e   : > { %v1163_v1 = vpop.f32.mrf.mxu0  ;;  %v1514_v59 = vpop.f32.mrf.mxu1  ;;  %v2948_v21 = vrot.slane %v6740_v50, 3 }
 0x17f   : > { %v1201_v4 = vadd.f32 %v1163_v1, %v911_v37  ;;  %v6065_v46 = vadd.f32 %v1512_v25, %v1200_v52  ;;  %v1520_v52 = vadd.f32 %v5894_v15, %v5897_v31  ;;  %v4760_v15 = vld [vmem:[%s6723_s3 + $0x10] sm:$0xff]  }
 0x180   : > { %v1787_v23 = vpop.f32.mrf.mxu0  ;;  %3134 = vmatmul.mubr.bf16.gmra.mxu0 %v2947_v61  ;;  %v2076_v57 = vpop.f32.mrf.mxu1  ;;  %4394 = vmatpush3.bf16.msra.mxu1 %v4760_v15 }
 0x181   : > { %v6067_v29 = vadd.f32 %v1514_v59, %v1201_v4  ;;  %v1876_v53 = vadd.f32 %v1787_v23, %v5886_v14  ;;  %3143 = vmatprep.mubr.bf16.mxu0 %v6736_v11  ;;  %v2949_v14 = vsel %vm2932_vm5, %v2946_v28, %v2948_v21 }
 0x182   : > { %v1789_v44 = vpop.f32.mrf.mxu0  ;;  %v2078_v5 = vpop.f32.mrf.mxu1 }
 0x183   : > { %v1877_v62 = vadd.f32 %v1789_v44, %v5892_v2  ;;  %v6073_v37 = vadd.f32 %v2076_v57, %v1876_v53  ;;  %v6741_v57 = vld [vmem:[#allocation4_spill] sm:$0xff] }
 0x184   : > { %v1791_v25 = vpop.f32.mrf.mxu0  ;;  %v2080_v55 = vpop.f32.mrf.mxu1  ;;  %v2950_v53 = vrot.slane %v6741_v57, 3 }
 0x185   : > { %v1878_v61 = vadd.f32 %v1791_v25, %v5899_v60  ;;  %v6078_v17 = vadd.f32 %v2078_v5, %v1877_v62 }
 0x186   : > { %v1793_v1 = vpop.f32.mrf.mxu0  ;;  %v2082_v59 = vpop.f32.mrf.mxu1 }
 0x187   : > { %v1879_v2 = vadd.f32 %v1793_v1, %v1520_v52  ;;  %v6084_v4 = vadd.f32 %v2080_v55, %v1878_v61  ;;  %v1524_v52 = vadd.f32 %v5914_v26, %v5917_v39 }
 0x188   : > { %v1797_v31 = vpop.f32.mrf.mxu0  ;;  %3144 = vmatmul.mubr.bf16.gmra.mxu0 %v2949_v14  ;;  %v2086_v60 = vpop.f32.mrf.mxu1 }
 0x189   : > { %v1880_v23 = vadd.f32 %v1797_v31, %v5906_v38  ;;  %v6090_v28 = vadd.f32 %v2082_v59, %v1879_v2  ;;  %3153 = vmatprep.mubr.bf16.mxu0 %v6736_v11  ;;  %v2951_v11 = vsel %vm2932_vm5, %v2948_v21, %v2950_v53  ;;  %v4762_v2 = vld [vmem:[%s6723_s3 + $0x8] sm:$0xff]  }
 0x18a   : > { %v1799_v50 = vpop.f32.mrf.mxu0  ;;  %v2088_v44 = vpop.f32.mrf.mxu1 }
 0x18b   : > { %v1881_v5 = vadd.f32 %v1799_v50, %v5910_v56  ;;  %v6095_v62 = vadd.f32 %v2086_v60, %v1880_v23  ;;  %v4761_v56 = vld [vmem:[%s6723_s3 + $0x48] sm:$0xff]   ;;  %v1528_v50 = vadd.f32 %v5931_v0, %v5934_v18  ;;  %v4763_v0 = vld [vmem:[%s6723_s3 + $0x40] sm:$0xff]  }
 0x18c   : > { %v1801_v25 = vpop.f32.mrf.mxu0  ;;  %v2090_v55 = vpop.f32.mrf.mxu1  ;;  %4395 = vmatprep.subr.bf16.mxu1 %v4761_v56  ;;  %v4764_v56 = vld [vmem:[%s6723_s3] sm:$0xff]  }
 0x18d   : > { %v1882_v38 = vadd.f32 %v1801_v25, %v5919_v33  ;;  %v6100_v61 = vadd.f32 %v2088_v44, %v1881_v5  ;;  %4396 = vmatpush3.bf16.msra.mxu1 %v4762_v2 }
 0x18e   : > { %v1803_v14 = vpop.f32.mrf.mxu0  ;;  %v2092_v45 = vpop.f32.mrf.mxu1  ;;  %4397 = vmatprep.subr.bf16.mxu1 %v4763_v0 }
 0x18f   : > { %v1883_v1 = vadd.f32 %v1803_v14, %v1524_v52  ;;  %v6103_v59 = vadd.f32 %v2090_v55, %v1882_v38 }
 0x190   : > { %v1807_v26 = vpop.f32.mrf.mxu0  ;;  %3154 = vmatmul.mubr.bf16.gmra.mxu0 %v2951_v11  ;;  %v2096_v39 = vpop.f32.mrf.mxu1 }
 0x191   : > { %v1884_v33 = vadd.f32 %v1807_v26, %v5925_v63  ;;  %v6112_v15 = vadd.f32 %v2092_v45, %v1883_v1  ;;  %4398 = vmatpush3.bf16.msra.mxu1 %v4764_v56 }
 0x192   : > { %v1809_v21 = vpop.f32.mrf.mxu0  ;;  %v2098_v31 = vpop.f32.mrf.mxu1 }
 0x193   : > { %v1885_v60 = vadd.f32 %v1809_v21, %v5928_v41  ;;  %v6115_v23 = vadd.f32 %v2096_v39, %v1884_v33 }
 0x194   : > { %v1811_v57 = vpop.f32.mrf.mxu0  ;;  %v2100_v53 = vpop.f32.mrf.mxu1 }
 0x195   : > { %v1886_v44 = vadd.f32 %v1811_v57, %v5936_v16  ;;  %v6120_v5 = vadd.f32 %v2098_v31, %v1885_v60 }
 0x196   : > { %v1813_v63 = vpop.f32.mrf.mxu0  ;;  %v2102_v25 = vpop.f32.mrf.mxu1 }
 0x197   : > { %v1887_v55 = vadd.f32 %v1813_v63, %v1528_v50  ;;  %v6122_v52 = vadd.f32 %v2100_v53, %v1886_v44 }
 0x198   : > { %v1817_v38 = vpop.f32.mrf.mxu0  ;;  %v2106_v11 = vpop.f32.mrf.mxu1 }
 0x199   : > { %v1888_v41 = vadd.f32 %v1817_v38, %v5942_v13  ;;  %v6125_v14 = vadd.f32 %v2102_v25, %v1887_v55  ;;  %v1532_v13 = vadd.f32 %v5948_v30, %v5951_v12  ;;  %v1536_v38 = vadd.f32 %v5971_v49, %v5974_v3 }
 0x19a   : > { %v1819_v45 = vpop.f32.mrf.mxu0  ;;  %v2108_v1 = vpop.f32.mrf.mxu1 }
 0x19b   : > { %v1889_v18 = vadd.f32 %v1819_v45, %v5945_v32  ;;  %v6131_v16 = vadd.f32 %v2106_v11, %v1888_v41 }
 0x19c   : > { %v1821_v2 = vpop.f32.mrf.mxu0  ;;  %v2110_v26 = vpop.f32.mrf.mxu1 }
 0x19d   : > { %v1890_v39 = vadd.f32 %v1821_v2, %v5953_v36  ;;  %v6139_v33 = vadd.f32 %v2108_v1, %v1889_v18 }
 0x19e   : > { %v1823_v21 = vpop.f32.mrf.mxu0  ;;  %v2112_v31 = vpop.f32.mrf.mxu1 }
 0x19f   : > { %v1891_v32 = vadd.f32 %v1823_v21, %v1532_v13  ;;  %v6141_v60 = vadd.f32 %v2110_v26, %v1890_v39  ;;  %v1540_v21 = vadd.f32 %v5994_v6, %v5997_v51 }
 0x1a0   : > { %v1827_v57 = vpop.f32.mrf.mxu0  ;;  %v2116_v53 = vpop.f32.mrf.mxu1 }
 0x1a1   : > { %v1892_v50 = vadd.f32 %v1827_v57, %v5965_v35  ;;  %v6144_v44 = vadd.f32 %v2112_v31, %v1891_v32 }
 0x1a2   : > { %v1829_v63 = vpop.f32.mrf.mxu0  ;;  %v2118_v25 = vpop.f32.mrf.mxu1 }
 0x1a3   : > { %v1893_v30 = vadd.f32 %v1829_v63, %v5968_v27  ;;  %v6147_v12 = vadd.f32 %v2116_v53, %v1892_v50 }
 0x1a4   : > { %v1831_v36 = vpop.f32.mrf.mxu0  ;;  %v2120_v55 = vpop.f32.mrf.mxu1 }
 0x1a5   : > { %v1894_v11 = vadd.f32 %v1831_v36, %v5976_v24  ;;  %v6152_v41 = vadd.f32 %v2118_v25, %v1893_v30 }
 0x1a6   : > { %v1833_v45 = vpop.f32.mrf.mxu0  ;;  %v2122_v1 = vpop.f32.mrf.mxu1 }
 0x1a7   : > { %v1895_v35 = vadd.f32 %v1833_v45, %v1536_v38  ;;  %v6154_v0 = vadd.f32 %v2120_v55, %v1894_v11  ;;  %v1544_v11 = vadd.f32 %v6017_v19, %v6020_v40 }
 0x1a8   : > { %v1837_v18 = vpop.f32.mrf.mxu0  ;;  %v2126_v56 = vpop.f32.mrf.mxu1 }
 0x1a9   : > { %v1896_v27 = vadd.f32 %v1837_v18, %v5985_v9  ;;  %v6157_v2 = vadd.f32 %v2122_v1, %v1895_v35 }
 0x1aa   : > { %v1839_v26 = vpop.f32.mrf.mxu0  ;;  %v2128_v13 = vpop.f32.mrf.mxu1 }
 0x1ab   : > { %v1897_v39 = vadd.f32 %v1839_v26, %v5991_v54  ;;  %v6160_v49 = vadd.f32 %v2126_v56, %v1896_v27 }
 0x1ac   : > { %v1841_v3 = vpop.f32.mrf.mxu0  ;;  %v2130_v24 = vpop.f32.mrf.mxu1 }
 0x1ad   : > { %v1898_v31 = vadd.f32 %v1841_v3, %v5999_v48  ;;  %v6165_v32 = vadd.f32 %v2128_v13, %v1897_v39 }
 0x1ae   : > { %v1843_v57 = vpop.f32.mrf.mxu0  ;;  %v2132_v53 = vpop.f32.mrf.mxu1 }
 0x1af   : > { %v1899_v9 = vadd.f32 %v1843_v57, %v1540_v21  ;;  %v6167_v50 = vadd.f32 %v2130_v24, %v1898_v31  ;;  %v1548_v21 = vadd.f32 %v6040_v8, %v6043_v34 }
 0x1b0   : > { %v1847_v63 = vpop.f32.mrf.mxu0  ;;  %v2136_v25 = vpop.f32.mrf.mxu1 }
 0x1b1   : > { %v1900_v54 = vadd.f32 %v1847_v63, %v6005_v22  ;;  %v6170_v30 = vadd.f32 %v2132_v53, %v1899_v9 }
 0x1b2   : > { %v1849_v36 = vpop.f32.mrf.mxu0  ;;  %v2138_v55 = vpop.f32.mrf.mxu1 }
 0x1b3   : > { %v1901_v38 = vadd.f32 %v1849_v36, %v6014_v47  ;;  %v6173_v6 = vadd.f32 %v2136_v25, %v1900_v54 }
 0x1b4   : > { %v1851_v51 = vpop.f32.mrf.mxu0  ;;  %v2140_v48 = vpop.f32.mrf.mxu1 }
 0x1b5   : > { %v1902_v45 = vadd.f32 %v1851_v51, %v6022_v42  ;;  %v6178_v1 = vadd.f32 %v2138_v55, %v1901_v38 }
 0x1b6   : > { %v1853_v35 = vpop.f32.mrf.mxu0  ;;  %v2142_v18 = vpop.f32.mrf.mxu1 }
 0x1b7   : > { %v1903_v22 = vadd.f32 %v1853_v35, %v1544_v11  ;;  %v6180_v56 = vadd.f32 %v2140_v48, %v1902_v45 }
 0x1b8   : > { %v1857_v27 = vpop.f32.mrf.mxu0  ;;  %v2146_v26 = vpop.f32.mrf.mxu1 }
 0x1b9   : > { %v1904_v47 = vadd.f32 %v1857_v27, %v6028_v7  ;;  %v6183_v13 = vadd.f32 %v2142_v18, %v1903_v22 }
 0x1ba   : > { %v1859_v39 = vpop.f32.mrf.mxu0  ;;  %v2148_v3 = vpop.f32.mrf.mxu1 }
 0x1bb   : > { %v1905_v24 = vadd.f32 %v1859_v39, %v6034_v10  ;;  %v6186_v19 = vadd.f32 %v2146_v26, %v1904_v47 }
 0x1bc   : > { %v1861_v40 = vpop.f32.mrf.mxu0  ;;  %v2150_v42 = vpop.f32.mrf.mxu1 }
 0x1bd   : > { %v1906_v31 = vadd.f32 %v1861_v40, %v6045_v20  ;;  %v6191_v57 = vadd.f32 %v2148_v3, %v1905_v24 }
 0x1be   : > { %v1863_v53 = vpop.f32.mrf.mxu0  ;;  %v2152_v9 = vpop.f32.mrf.mxu1 }
 0x1bf   : > { %v1907_v7 = vadd.f32 %v1863_v53, %v1548_v21  ;;  %v6193_v63 = vadd.f32 %v2150_v42, %v1906_v31 }
 0x1c0   : > { %v1867_v25 = vpop.f32.mrf.mxu0  ;;  %v2156_v54 = vpop.f32.mrf.mxu1 }
 0x1c1   : > { %v1908_v10 = vadd.f32 %v1867_v25, %v6051_v43  ;;  %v6196_v36 = vadd.f32 %v2152_v9, %v1907_v7 }
 0x1c2   : > { %v1869_v55 = vpop.f32.mrf.mxu0  ;;  %v2158_v38 = vpop.f32.mrf.mxu1 }
 0x1c3   : > { %v1909_v51 = vadd.f32 %v1869_v55, %v6056_v58  ;;  %v6199_v8 = vadd.f32 %v2156_v54, %v1908_v10 }
 0x1c4   : > { %v1871_v34 = vpop.f32.mrf.mxu0  ;;  %v2160_v20 = vpop.f32.mrf.mxu1 }
 0x1c5   : > { %v1910_v48 = vadd.f32 %v1871_v34, %v6065_v46  ;;  %v6202_v11 = vadd.f32 %v2158_v38, %v1909_v51 }
 0x1c6   : > { %v1873_v45 = vpop.f32.mrf.mxu0  ;;  %v2162_v35 = vpop.f32.mrf.mxu1 }
 0x1c7   : > { %v1911_v18 = vadd.f32 %v1873_v45, %v6067_v29  ;;  %v6205_v22 = vadd.f32 %v2160_v20, %v1910_v48 }
 0x1c8   : > { %v2427_v43 = vpop.f32.mrf.mxu0  ;;  %v6207_v27 = vpop.f32.mrf.mxu1 }
 0x1c9   : > { %v6209_v26 = vadd.f32 %v2162_v35, %v1911_v18  ;;  %v6212_v58 = vadd.f32 %v2427_v43, %v6073_v37 }
 0x1ca   : > { %v2429_v47 = vpop.f32.mrf.mxu0  ;;  %v6214_v39 = vpop.f32.mrf.mxu1 }
 0x1cb   : > { %v6217_v46 = vadd.f32 %v2429_v47, %v6078_v17 }
 0x1cc   : > { %v2431_v3 = vpop.f32.mrf.mxu0  ;;  %v6222_v40 = vpop.f32.mrf.mxu1 }
 0x1cd   : > { %v6220_v24 = vadd.f32 %v2431_v3, %v6084_v4 }
 0x1ce   : > { %v2433_v29 = vpop.f32.mrf.mxu0  ;;  %v6230_v31 = vpop.f32.mrf.mxu1 }
 0x1cf   : > { %v6225_v42 = vadd.f32 %v2433_v29, %v6090_v28 }
 0x1d0   : > { %v2437_v21 = vpop.f32.mrf.mxu0  ;;  %v6238_v7 = vpop.f32.mrf.mxu1 }
 0x1d1   : > { %v6228_v37 = vadd.f32 %v2437_v21, %v6095_v62 }
 0x1d2   : > { %v2439_v53 = vpop.f32.mrf.mxu0  ;;  %v6246_v10 = vpop.f32.mrf.mxu1 }
 0x1d3   : > { %v6233_v17 = vadd.f32 %v2439_v53, %v6100_v61 }
 0x1d4   : > { %v2441_v9 = vpop.f32.mrf.mxu0  ;;  %v6254_v51 = vpop.f32.mrf.mxu1 }
 0x1d5   : > { %v6236_v4 = vadd.f32 %v2441_v9, %v6103_v59 }
 0x1d6   : > { %v2443_v25 = vpop.f32.mrf.mxu0  ;;  %v6262_v48 = vpop.f32.mrf.mxu1 }
 0x1d7   : > { %v6241_v28 = vadd.f32 %v2443_v25, %v6112_v15 }
 0x1d8   : > { %v2447_v54 = vpop.f32.mrf.mxu0  ;;  %v6270_v18 = vpop.f32.mrf.mxu1 }
 0x1d9   : > { %v6244_v62 = vadd.f32 %v2447_v54, %v6115_v23 }
 0x1da   : > { %v2449_v55 = vpop.f32.mrf.mxu0  ;;  %v6278_v3 = vpop.f32.mrf.mxu1 }
 0x1db   : > { %v6249_v61 = vadd.f32 %v2449_v55, %v6120_v5 }
 0x1dc   : > { %v2451_v38 = vpop.f32.mrf.mxu0  ;;  %v6286_v53 = vpop.f32.mrf.mxu1 }
 0x1dd   : > { %v6252_v59 = vadd.f32 %v2451_v38, %v6122_v52 }
 0x1de   : > { %v2453_v34 = vpop.f32.mrf.mxu0  ;;  %v6294_v54 = vpop.f32.mrf.mxu1 }
 0x1df   : > { %v6257_v15 = vadd.f32 %v2453_v34, %v6125_v14 }
 0x1e0   : > { %v2457_v20 = vpop.f32.mrf.mxu0  ;;  %v6302_v34 = vpop.f32.mrf.mxu1 }
 0x1e1   : > { %v6260_v23 = vadd.f32 %v2457_v20, %v6131_v16 }
 0x1e2   : > { %v2459_v45 = vpop.f32.mrf.mxu0 }
 0x1e3   : > { %v6265_v5 = vadd.f32 %v2459_v45, %v6139_v33 }
 0x1e4   : > { %v2461_v35 = vpop.f32.mrf.mxu0 }
 0x1e5   : > { %v6268_v52 = vadd.f32 %v2461_v35, %v6141_v60  ;;  %v6310_v35 = vpop.f32.mrf.mxu1 }
 0x1e6   : > { %v2463_v43 = vpop.f32.mrf.mxu0 }
 0x1e7   : > { %v6273_v14 = vadd.f32 %v2463_v43, %v6144_v44 }
 0x1e8   : > { %v2467_v47 = vpop.f32.mrf.mxu0 }
 0x1e9   : > { %v6276_v16 = vadd.f32 %v2467_v47, %v6147_v12 }
 0x1ea   : > { %v2469_v29 = vpop.f32.mrf.mxu0 }
 0x1eb   : > { %v6281_v33 = vadd.f32 %v2469_v29, %v6152_v41  ;;  %v6318_v29 = vpop.f32.mrf.mxu1 }
 0x1ec   : > { %v2471_v21 = vpop.f32.mrf.mxu0 }
 0x1ed   : > { %v6284_v60 = vadd.f32 %v2471_v21, %v6154_v0 }
 0x1ee   : > { %v2473_v9 = vpop.f32.mrf.mxu0 }
 0x1ef   : > { %v6289_v44 = vadd.f32 %v2473_v9, %v6157_v2 }
 0x1f0   : > { %v2477_v25 = vpop.f32.mrf.mxu0 }
 0x1f1   : > { %v6292_v12 = vadd.f32 %v2477_v25, %v6160_v49  ;;  %v6326_v25 = vpop.f32.mrf.mxu1 }
 0x1f2   : > { %v2479_v55 = vpop.f32.mrf.mxu0 }
 0x1f3   : > { %v6297_v41 = vadd.f32 %v2479_v55, %v6165_v32 }
 0x1f4   : > { %v2481_v38 = vpop.f32.mrf.mxu0 }
 0x1f5   : > { %v6300_v0 = vadd.f32 %v2481_v38, %v6167_v50 }
 0x1f6   : > { %v2483_v20 = vpop.f32.mrf.mxu0 }
 0x1f7   : > { %v6305_v2 = vadd.f32 %v2483_v20, %v6170_v30  ;;  %v3202_v20 = vlaneseq }
 0x1f8   : > { %v2487_v45 = vpop.f32.mrf.mxu0 }
 0x1f9   : > { %v6308_v49 = vadd.f32 %v2487_v45, %v6173_v6  ;;  %v6334_v45 = vpop.f32.mrf.mxu1 }
 0x1fa   : > { %v2489_v43 = vpop.f32.mrf.mxu0 }
 0x1fb   : > { %v6313_v32 = vadd.f32 %v2489_v43, %v6178_v1 }
 0x1fc   : > { %v2491_v47 = vpop.f32.mrf.mxu0 }
 0x1fd   : > { %v6316_v50 = vadd.f32 %v2491_v47, %v6180_v56 }
 0x1fe   : > { %v2493_v21 = vpop.f32.mrf.mxu0 }
 0x1ff   : > { %v6321_v30 = vadd.f32 %v2493_v21, %v6183_v13  ;;  %v3203_v21 = vshrl.u32 %v3202_v20, 7  ;;  %v2875_v20 = vadd.f32 %v6207_v27, %v6212_v58 }
 0x200   : > { %v2497_v9 = vpop.f32.mrf.mxu0 }
 0x201   : > { %v6324_v6 = vadd.f32 %v2497_v9, %v6186_v19  ;;  %v6342_v9 = vpop.f32.mrf.mxu1 }
 0x202   : > { %v2499_v55 = vpop.f32.mrf.mxu0 }
 0x203   : > { %6742 = vst [vmem:[#allocation5_spill] sm:$0xff] %v6324_v6  ;;  %v6329_v1 = vadd.f32 %v2499_v55, %v6191_v57 }
 0x204   : > { %v2501_v38 = vpop.f32.mrf.mxu0 }
 0x205   : > { %6743 = vst [vmem:[#allocation6_spill] sm:$0xff] %v6329_v1  ;;  %v6332_v56 = vadd.f32 %v2501_v38, %v6193_v63  ;;  %v6350_v1 = vpop.f32.mrf.mxu1 }
 0x206   : > { %v2503_v43 = vpop.f32.mrf.mxu0 }
 0x207   : > { %6744 = vst [vmem:[#allocation3_spill] sm:$0xff] %v6332_v56  ;;  %v6337_v13 = vadd.f32 %v2503_v43, %v6196_v36  ;;  %v3204_v56 = vsub.s32 0, %v3203_v21 }
 0x208   : > { %v2507_v47 = vpop.f32.mrf.mxu0 }
 0x209   : > { %6745 = vst [vmem:[#allocation2_spill] sm:$0xff] %v6337_v13  ;;  %v6340_v19 = vadd.f32 %v2507_v47, %v6199_v8  ;;  %v3200_v8 = vld [vmem:[%s6722_s2] sm:$0x3] }
 0x20a   : > { %v2509_v57 = vpop.f32.mrf.mxu0 }
 0x20b   : > { %6746 = vst [vmem:[#allocation4_spill] sm:$0xff] %v6340_v19  ;;  %v6345_v55 = vadd.f32 %v2509_v57, %v6202_v11  ;;  %v3208_v11 = vsub.s32 1, %v3203_v21  ;;  %v2877_v19 = vadd.f32 %v6222_v40, %v6220_v24 }
 0x20c   : > { %v2511_v63 = vpop.f32.mrf.mxu0 }
 0x20d   : > { %6747 = vst [vmem:[#allocation7_spill] sm:$0xff] %v6345_v55  ;;  %v6348_v38 = vadd.f32 %v2511_v63, %v6205_v22  ;;  %v2876_v22 = vadd.f32 %v6214_v39, %v6217_v46  ;;  %v6362_v63 = vrot.slane %v3200_v8, %v3204_v56  ;;  %v6368_v6 = vrot.slane %v3200_v8, %v3208_v11 }
 0x20e   : > { %v2513_v36 = vpop.f32.mrf.mxu0  ;;  %v2879_v56 = vadd.f32 %v6238_v7, %v6228_v37  ;;  %v2881_v11 = vadd.f32 %v6254_v51, %v6236_v4  ;;  %v2883_v4 = vadd.f32 %v6270_v18, %v6244_v62 }
 0x20f   : > { %6748 = vst [vmem:[#allocation8_spill] sm:$0xff] %v6348_v38  ;;  %v6358_v43 = vadd.f32 %v2513_v36, %v6209_v26  ;;  %v6364_v38 = vpop.f32.mrf.mxu1  ;;  %v2878_v26 = vadd.f32 %v6230_v31, %v6225_v42 }
 0x210   : > { %v3075_v47 = vpop.f32.mrf.mxu0 }
 0x211   : > { %v3164_v57 = vadd.f32 %v3075_v47, %v2875_v20  ;;  %v6373_v39 = vpop.f32.mrf.mxu1 }
 0x212   : > { %v3077_v55 = vpop.f32.mrf.mxu0 }
 0x213   : > { %v3165_v13 = vadd.f32 %v3077_v55, %v2876_v22  ;;  %v3212_v58 = vadd.f32 %v6362_v63, %v3164_v57  ;;  %v2880_v55 = vadd.f32 %v6246_v10, %v6233_v17  ;;  %v6384_v47 = vpop.f32.mrf.mxu1  ;;  %v2882_v17 = vadd.f32 %v6262_v48, %v6241_v28 }
 0x214   : > { %v3079_v27 = vpop.f32.mrf.mxu0 }
 0x215   : > { %v3166_v21 = vadd.f32 %v3079_v27, %v2877_v19  ;;  %v3213_v36 = vadd.f32 %v6368_v6, %v3165_v13  ;;  %v3248_v20 = vmax.f32 %v3212_v58, 0.0 }
 0x216   : > { %v3081_v46 = vpop.f32.mrf.mxu0 }
 0x217   : > { %v3214_v24 = vadd.f32 %v6362_v63, %v3166_v21  ;;  %v3167_v40 = vadd.f32 %v3081_v46, %v2878_v26  ;;  %v3249_v7 = vmax.f32 %v3213_v36, 0.0  ;;  %v6389_v21 = vpop.f32.mrf.mxu1 }
 0x218   : > { %v3085_v8 = vpop.f32.mrf.mxu0 }
 0x219   : > { %v3250_v42 = vmax.f32 %v3214_v24, 0.0  ;;  %v3215_v31 = vadd.f32 %v6368_v6, %v3167_v40  ;;  %v3168_v19 = vadd.f32 %v3085_v8, %v2879_v56  ;;  %v2884_v24 = vadd.f32 %v6278_v3, %v6249_v61  ;;  %v6400_v62 = vpop.f32.mrf.mxu1 }
 0x21a   : > { %v3087_v37 = vpop.f32.mrf.mxu0  ;;  %v2886_v61 = vadd.f32 %v6294_v54, %v6257_v15 }
 0x21b   : > { %v3284_v13 = vpack.c.bf16 %v3250_v42, %v3248_v20  ;;  %v3251_v22 = vmax.f32 %v3215_v31, 0.0  ;;  %v3169_v57 = vadd.f32 %v3087_v37, %v2880_v55  ;;  %v3216_v10 = vadd.f32 %v6362_v63, %v3168_v19 }
 0x21c   : > { %v3089_v27 = vpop.f32.mrf.mxu0  ;;  %v2885_v20 = vadd.f32 %v6286_v53, %v6252_v59  ;;  %v2887_v59 = vadd.f32 %v6302_v34, %v6260_v23 }
 0x21d   : > { %v3170_v26 = vadd.f32 %v3089_v27, %v2881_v11  ;;  %v3285_v58 = vpack.c.bf16 %v3251_v22, %v3249_v7  ;;  %v3217_v51 = vadd.f32 %v6368_v6, %v3169_v57  ;;  %v3252_v48 = vmax.f32 %v3216_v10, 0.0  ;;  %v6405_v22 = vpop.f32.mrf.mxu1 }
 0x21e   : > { %v3091_v46 = vpop.f32.mrf.mxu0  ;;  %v2888_v10 = vadd.f32 %v6310_v35, %v6265_v5  ;;  %v2890_v5 = vadd.f32 %v6326_v25, %v6273_v14 }
 0x21f   : > { %v3218_v56 = vadd.f32 %v6362_v63, %v3170_v26  ;;  %v3171_v36 = vadd.f32 %v3091_v46, %v2882_v17  ;;  %3469 = vmatprep.mubr.bf16.mxu1 %v3285_v58  ;;  %v3253_v42 = vmax.f32 %v3217_v51, 0.0  ;;  %v6416_v23 = vpop.f32.mrf.mxu1 }
 0x220   : > { %v3095_v28 = vpop.f32.mrf.mxu0  ;;  %3470 = vmatmul.mubr.bf16.vlgmr.msra.gmra.mxu1 %v3284_v13 }
 0x221   : > { %v3254_v40 = vmax.f32 %v3218_v56, 0.0  ;;  %v3219_v55 = vadd.f32 %v6368_v6, %v3171_v36  ;;  %v3172_v8 = vadd.f32 %v3095_v28, %v2883_v4  ;;  %v2889_v4 = vadd.f32 %v6318_v29, %v6268_v52 }
 0x222   : > { %v3097_v18 = vpop.f32.mrf.mxu0  ;;  %v2891_v52 = vadd.f32 %v6334_v45, %v6276_v16 }
 0x223   : > { %v3286_v31 = vpack.c.bf16 %v3254_v40, %v3252_v48  ;;  %v3255_v19 = vmax.f32 %v3219_v55, 0.0  ;;  %v3173_v11 = vadd.f32 %v3097_v18, %v2884_v24  ;;  %v3220_v3 = vadd.f32 %v6362_v63, %v3172_v8  ;;  %v6421_v55 = vpop.f32.mrf.mxu1 }
 0x224   : > { %v3099_v37 = vpop.f32.mrf.mxu0 }
 0x225   : > { %v3174_v7 = vadd.f32 %v3099_v37, %v2885_v20  ;;  %v3287_v13 = vpack.c.bf16 %v3255_v19, %v3253_v42  ;;  %v3221_v53 = vadd.f32 %v6368_v6, %v3173_v11  ;;  %v3256_v54 = vmax.f32 %v3220_v3, 0.0  ;;  %v2852_v16 = vpop.f32.mrf.mxu1 }
 0x226   : > { %v3101_v57 = vpop.f32.mrf.mxu0  ;;  %v2892_v42 = vadd.f32 %v6342_v9, %v6281_v33  ;;  %v2893_v37 = vadd.f32 %v6350_v1, %v6284_v60  ;;  %v2894_v33 = vadd.f32 %v6364_v38, %v6289_v44 }
 0x227   : > { %v3222_v27 = vadd.f32 %v6362_v63, %v3174_v7  ;;  %v3175_v17 = vadd.f32 %v3101_v57, %v2886_v61  ;;  %3477 = vmatprep.mubr.bf16.mxu1 %v3287_v13  ;;  %v3257_v51 = vmax.f32 %v3221_v53, 0.0 }
 0x228   : > { %v3105_v15 = vpop.f32.mrf.mxu0  ;;  %3478 = vmatmul.mubr.bf16.gmra.mxu1 %v3286_v31 }
 0x229   : > { %v3258_v26 = vmax.f32 %v3222_v27, 0.0  ;;  %v3223_v58 = vadd.f32 %v6368_v6, %v3175_v17  ;;  %v3176_v46 = vadd.f32 %v3105_v15, %v2887_v59  ;;  %v2856_v27 = vpop.f32.mrf.mxu1 }
 0x22a   : > { %v3107_v34 = vpop.f32.mrf.mxu0 }
 0x22b   : > { %v3288_v56 = vpack.c.bf16 %v3258_v26, %v3256_v54  ;;  %v3259_v36 = vmax.f32 %v3223_v58, 0.0  ;;  %v3177_v24 = vadd.f32 %v3107_v34, %v2888_v10  ;;  %v3224_v35 = vadd.f32 %v6362_v63, %v3176_v46 }
 0x22c   : > { %v3109_v28 = vpop.f32.mrf.mxu0  ;;  %v2895_v10 = vadd.f32 %v6373_v39, %v6292_v12  ;;  %v2896_v54 = vadd.f32 %v6384_v47, %v6297_v41  ;;  %v2858_v12 = vpop.f32.mrf.mxu1  ;;  %v2898_v41 = vadd.f32 %v6400_v62, %v6305_v2 }
 0x22d   : > { %v3178_v48 = vadd.f32 %v3109_v28, %v2889_v4  ;;  %v3289_v40 = vpack.c.bf16 %v3259_v36, %v3257_v51  ;;  %v3225_v29 = vadd.f32 %v6368_v6, %v3177_v24  ;;  %v3260_v25 = vmax.f32 %v3224_v35, 0.0 }
 0x22e   : > { %v3111_v8 = vpop.f32.mrf.mxu0  ;;  %v2897_v4 = vadd.f32 %v6389_v21, %v6300_v0  ;;  %v2860_v35 = vpop.f32.mrf.mxu1 }
 0x22f   : > { %v3226_v20 = vadd.f32 %v6362_v63, %v3178_v48  ;;  %v3179_v18 = vadd.f32 %v3111_v8, %v2890_v5  ;;  %3485 = vmatprep.mubr.bf16.mxu1 %v3289_v40  ;;  %v3261_v61 = vmax.f32 %v3225_v29, 0.0  ;;  %v2899_v40 = vadd.f32 %v6405_v22, %v6308_v49 }
 0x230   : > { %v3115_v14 = vpop.f32.mrf.mxu0  ;;  %3486 = vmatmul.mubr.bf16.gmra.mxu1 %v3288_v56  ;;  %v2862_v49 = vpop.f32.mrf.mxu1 }
 0x231   : > { %v3262_v31 = vmax.f32 %v3226_v20, 0.0  ;;  %v3227_v19 = vadd.f32 %v6368_v6, %v3179_v18  ;;  %v3180_v11 = vadd.f32 %v3115_v14, %v2891_v52  ;;  %v2900_v52 = vadd.f32 %v6416_v23, %v6313_v32 }
 0x232   : > { %v3117_v45 = vpop.f32.mrf.mxu0 }
 0x233   : > { %v3290_v3 = vpack.c.bf16 %v3262_v31, %v3260_v25  ;;  %v3263_v7 = vmax.f32 %v3227_v19, 0.0  ;;  %v3181_v13 = vadd.f32 %v3117_v45, %v2892_v42  ;;  %v3228_v9 = vadd.f32 %v6362_v63, %v3180_v11 }
 0x234   : > { %v3119_v57 = vpop.f32.mrf.mxu0  ;;  %v2901_v42 = vadd.f32 %v6421_v55, %v6316_v50 }
 0x235   : > { %v3182_v59 = vadd.f32 %v3119_v57, %v2893_v37  ;;  %v3291_v53 = vpack.c.bf16 %v3263_v7, %v3261_v61  ;;  %v3229_v60 = vadd.f32 %v6368_v6, %v3181_v13  ;;  %v3264_v44 = vmax.f32 %v3228_v9, 0.0  ;;  %v2866_v61 = vpop.f32.mrf.mxu1  ;;  %v6749_v7 = vld [vmem:[#allocation5_spill] sm:$0xff] }
 0x236   : > { %v3121_v17 = vpop.f32.mrf.mxu0  ;;  %v2902_v37 = vadd.f32 %v2852_v16, %v6321_v30  ;;  %v2903_v13 = vadd.f32 %v2856_v27, %v6749_v7 }
 0x237   : > { %v3230_v1 = vadd.f32 %v6362_v63, %v3182_v59  ;;  %v3183_v15 = vadd.f32 %v3121_v17, %v2894_v33  ;;  %3493 = vmatprep.mubr.bf16.mxu1 %v3291_v53  ;;  %v3265_v34 = vmax.f32 %v3229_v60, 0.0  ;;  %v6750_v33 = vld [vmem:[#allocation6_spill] sm:$0xff] }
 0x238   : > { %v3125_v26 = vpop.f32.mrf.mxu0  ;;  %3494 = vmatmul.mubr.bf16.gmra.mxu1 %v3290_v3  ;;  %v2904_v9 = vadd.f32 %v2858_v12, %v6750_v33 }
 0x239   : > { %v3266_v38 = vmax.f32 %v3230_v1, 0.0  ;;  %v3231_v58 = vadd.f32 %v6368_v6, %v3183_v15  ;;  %v3184_v46 = vadd.f32 %v3125_v26, %v2895_v10  ;;  %v6751_v10 = vld [vmem:[#allocation3_spill] sm:$0xff]  ;;  %v2868_v1 = vpop.f32.mrf.mxu1 }
 0x23a   : > { %v3127_v39 = vpop.f32.mrf.mxu0  ;;  %v2905_v60 = vadd.f32 %v2860_v35, %v6751_v10 }
 0x23b   : > { %v3292_v51 = vpack.c.bf16 %v3266_v38, %v3264_v44  ;;  %v3267_v56 = vmax.f32 %v3231_v58, 0.0  ;;  %v3185_v36 = vadd.f32 %v3127_v39, %v2896_v54  ;;  %v3232_v47 = vadd.f32 %v6362_v63, %v3184_v46  ;;  %v6752_v58 = vld [vmem:[#allocation2_spill] sm:$0xff] }
 0x23c   : > { %v3129_v24 = vpop.f32.mrf.mxu0  ;;  %v2906_v46 = vadd.f32 %v2862_v49, %v6752_v58 }
 0x23d   : > { %v3186_v28 = vadd.f32 %v3129_v24, %v2897_v4  ;;  %v3293_v5 = vpack.c.bf16 %v3267_v56, %v3265_v34  ;;  %v3233_v0 = vadd.f32 %v6368_v6, %v3185_v36  ;;  %v3268_v2 = vmax.f32 %v3232_v47, 0.0  ;;  %v2870_v34 = vpop.f32.mrf.mxu1  ;;  %v6753_v36 = vld [vmem:[#allocation4_spill] sm:$0xff] }
 0x23e   : > { %v3131_v48 = vpop.f32.mrf.mxu0  ;;  %v2907_v24 = vadd.f32 %v2866_v61, %v6753_v36 }
 0x23f   : > { %v3234_v21 = vadd.f32 %v6362_v63, %v3186_v28  ;;  %v3187_v8 = vadd.f32 %v3131_v48, %v2898_v41  ;;  %3501 = vmatprep.mubr.bf16.mxu1 %v3293_v5  ;;  %v3269_v14 = vmax.f32 %v3233_v0, 0.0  ;;  %v6754_v28 = vld [vmem:[#allocation7_spill] sm:$0xff] }
 0x240   : > { %v3135_v29 = vpop.f32.mrf.mxu0  ;;  %3502 = vmatmul.mubr.bf16.gmra.mxu1 %v3292_v51  ;;  %v2908_v5 = vadd.f32 %v2868_v1, %v6754_v28 }
 0x241   : > { %v3270_v62 = vmax.f32 %v3234_v21, 0.0  ;;  %v3235_v20 = vadd.f32 %v6368_v6, %v3187_v8  ;;  %v3188_v18 = vadd.f32 %v3135_v29, %v2899_v40  ;;  %v6755_v8 = vld [vmem:[#allocation8_spill] sm:$0xff]  ;;  %v2872_v29 = vpop.f32.mrf.mxu1 }
 0x242   : > { %v3137_v22 = vpop.f32.mrf.mxu0 }
 0x243   : > { %v3294_v25 = vpack.c.bf16 %v3270_v62, %v3268_v2  ;;  %v3271_v31 = vmax.f32 %v3235_v20, 0.0  ;;  %v3189_v19 = vadd.f32 %v3137_v22, %v2900_v52  ;;  %v3236_v32 = vadd.f32 %v6362_v63, %v3188_v18 }
 0x244   : > { %v3139_v11 = vpop.f32.mrf.mxu0  ;;  %v2909_v52 = vadd.f32 %v2870_v34, %v6755_v8 }
 0x245   : > { %v3190_v23 = vadd.f32 %v3139_v11, %v2901_v42  ;;  %v3295_v45 = vpack.c.bf16 %v3271_v31, %v3269_v14  ;;  %v3237_v57 = vadd.f32 %v6368_v6, %v3189_v19  ;;  %v3272_v53 = vmax.f32 %v3236_v32, 0.0 }
 0x246   : > { %v3141_v3 = vpop.f32.mrf.mxu0  ;;  %v2910_v14 = vadd.f32 %v2872_v29, %v6358_v43 }
 0x247   : > { %v3238_v50 = vadd.f32 %v6362_v63, %v3190_v23  ;;  %v3191_v55 = vadd.f32 %v3141_v3, %v2902_v37  ;;  %3509 = vmatprep.mubr.bf16.mxu1 %v3295_v45  ;;  %v3273_v27 = vmax.f32 %v3237_v57, 0.0 }
 0x248   : > { %v3145_v59 = vpop.f32.mrf.mxu0  ;;  %3510 = vmatmul.mubr.bf16.gmra.mxu1 %v3294_v25 }
 0x249   : > { %v3274_v30 = vmax.f32 %v3238_v50, 0.0  ;;  %v3239_v16 = vadd.f32 %v6368_v6, %v3191_v55  ;;  %v3192_v17 = vadd.f32 %v3145_v59, %v2903_v13 }
 0x24a   : > { %v3147_v15 = vpop.f32.mrf.mxu0 }
 0x24b   : > { %v3296_v54 = vpack.c.bf16 %v3274_v30, %v3272_v53  ;;  %v3275_v26 = vmax.f32 %v3239_v16, 0.0  ;;  %v3193_v44 = vadd.f32 %v3147_v15, %v2904_v9  ;;  %v3240_v4 = vadd.f32 %v6362_v63, %v3192_v17 }
 0x24c   : > { %v3149_v38 = vpop.f32.mrf.mxu0 }
 0x24d   : > { %v3194_v12 = vadd.f32 %v3149_v38, %v2905_v60  ;;  %v3297_v39 = vpack.c.bf16 %v3275_v26, %v3273_v27  ;;  %v3241_v51 = vadd.f32 %v6368_v6, %v3193_v44  ;;  %v3276_v48 = vmax.f32 %v3240_v4, 0.0 }
 0x24e   : > { %v3151_v56 = vpop.f32.mrf.mxu0 }
 0x24f   : > { %v3242_v41 = vadd.f32 %v6362_v63, %v3194_v12  ;;  %v3195_v47 = vadd.f32 %v3151_v56, %v2906_v46  ;;  %3517 = vmatprep.mubr.bf16.mxu1 %v3297_v39  ;;  %v3277_v2 = vmax.f32 %v3241_v51, 0.0 }
 0x250   : > { %v3155_v35 = vpop.f32.mrf.mxu0  ;;  %3518 = vmatmul.mubr.bf16.gmra.mxu1 %v3296_v54 }
 0x251   : > { %v3278_v40 = vmax.f32 %v3242_v41, 0.0  ;;  %v3243_v0 = vadd.f32 %v6368_v6, %v3195_v47  ;;  %v3196_v21 = vadd.f32 %v3155_v35, %v2907_v24 }
 0x252   : > { %v3157_v62 = vpop.f32.mrf.mxu0 }
 0x253   : > { %v3298_v20 = vpack.c.bf16 %v3278_v40, %v3276_v48  ;;  %v3279_v18 = vmax.f32 %v3243_v0, 0.0  ;;  %v3244_v42 = vadd.f32 %v6362_v63, %v3196_v21  ;;  %v3197_v49 = vadd.f32 %v3157_v62, %v2908_v5 }
 0x254   : > { %v3159_v22 = vpop.f32.mrf.mxu0 }
 0x255   : > { %v3245_v25 = vadd.f32 %v6368_v6, %v3197_v49  ;;  %v3198_v31 = vadd.f32 %v3159_v22, %v2909_v52  ;;  %v3299_v19 = vpack.c.bf16 %v3279_v18, %v3277_v2  ;;  %v3280_v23 = vmax.f32 %v3244_v42, 0.0 }
 0x256   : > { %v3161_v11 = vpop.f32.mrf.mxu0 }
 0x257   : > { %v3246_v37 = vadd.f32 %v6362_v63, %v3198_v31  ;;  %v3199_v32 = vadd.f32 %v3161_v11, %v2910_v14  ;;  %3525 = vmatprep.mubr.bf16.mxu1 %v3299_v19  ;;  %v3281_v3 = vmax.f32 %v3245_v25, 0.0  ;;  %v6485_v63 = vld [vmem:[%s6724_s4] ss:$0 sm:$0xff] }
 0x258   : > { %3526 = vmatmul.mubr.bf16.gmra.mxu1 %v3298_v20 }
 0x259   : > { %v3282_v45 = vmax.f32 %v3246_v37, 0.0  ;;  %v3247_v61 = vadd.f32 %v6368_v6, %v3199_v32 }
 0x25b   : > { %v3300_v7 = vpack.c.bf16 %v3282_v45, %v3280_v23  ;;  %v3283_v13 = vmax.f32 %v3247_v61, 0.0 }
 0x25d   : > { %v3301_v43 = vpack.c.bf16 %v3283_v13, %v3281_v3 }
 0x25f   : > { %3533 = vmatprep.mubr.bf16.mxu1 %v3301_v43 }
 0x260   : > { %3534 = vmatmul.mubr.bf16.gmra.mxu1 %v3300_v7 }
 0x2e0   : > { %v4399_v57 = vpop.f32.mrf.mxu1 }
 0x2e2   : > { %v4400_v50 = vpop.f32.mrf.mxu1 }
 0x2e3   : > { %v4401_v6 = vadd.f32 %v4400_v50, %v4399_v57 }
 0x2e4   : > { %v4402_v55 = vpop.f32.mrf.mxu1 }
 0x2e5   : > { %v6493_v33 = vadd.f32 %v4401_v6, %v6485_v63 }
 0x2e6   : > { %v4403_v9 = vpop.f32.mrf.mxu1 }
 0x2e7   : > { %3704 = vst [vmem:[%s6490_s17] sm:$0xff] %v6493_v33  ;;  %v4404_v59 = vadd.f32 %v4403_v9, %v4402_v55  ;;  %3542 = vmax.xlane.f32.xlu0 %v6493_v33 }
 0x2e8   : > { %v4405_v53 = vpop.f32.mrf.mxu1 }
 0x2e9   : > { %v6499_v30 = vadd.f32 %v4404_v59, %v6485_v63 }
 0x2ea   : > { %v4406_v16 = vpop.f32.mrf.mxu1 }
 0x2eb   : > { %3705 = vst [vmem:[%s6490_s17 + $0x8] sm:$0xff] %v6499_v30  ;;  %v4407_v17 = vadd.f32 %v4406_v16, %v4405_v53  ;;  %3544 = vmax.xlane.f32.xlu0 %v6499_v30 }
 0x2ec   : > { %v4408_v10 = vpop.f32.mrf.mxu1 }
 0x2ed   : > { %v6505_v60 = vadd.f32 %v4407_v17, %v6485_v63 }
 0x2ee   : > { %v4409_v1 = vpop.f32.mrf.mxu1 }
 0x2ef   : > { %3706 = vst [vmem:[%s6490_s17 + $0x10] sm:$0xff] %v6505_v60  ;;  %v4410_v15 = vadd.f32 %v4409_v1, %v4408_v10  ;;  %3546 = vmax.xlane.f32.xlu1 %v6505_v60 }
 0x2f0   : > { %v4411_v27 = vpop.f32.mrf.mxu1 }
 0x2f1   : > { %v6511_v54 = vadd.f32 %v4410_v15, %v6485_v63 }
 0x2f2   : > { %v4412_v26 = vpop.f32.mrf.mxu1 }
 0x2f3   : > { %3707 = vst [vmem:[%s6490_s17 + $0x18] sm:$0xff] %v6511_v54  ;;  %v4413_v44 = vadd.f32 %v4412_v26, %v4411_v27  ;;  %3548 = vmax.xlane.f32.xlu1 %v6511_v54 }
 0x2f4   : > { %v4414_v38 = vpop.f32.mrf.mxu1 }
 0x2f5   : > { %v6517_v58 = vadd.f32 %v4413_v44, %v6485_v63 }
 0x2f6   : > { %v4415_v46 = vpop.f32.mrf.mxu1 }
 0x2f7   : > { %3708 = vst [vmem:[%s6490_s17 + $0x20] sm:$0xff] %v6517_v58  ;;  %v4416_v4 = vadd.f32 %v4415_v46, %v4414_v38  ;;  %3550 = vmax.xlane.f32.xlu0 %v6517_v58 }
 0x2f8   : > { %v4417_v12 = vpop.f32.mrf.mxu1 }
 0x2f9   : > { %v6523_v39 = vadd.f32 %v4416_v4, %v6485_v63 }
 0x2fa   : > { %v4418_v34 = vpop.f32.mrf.mxu1 }
 0x2fb   : > { %3709 = vst [vmem:[%s6490_s17 + $0x28] sm:$0xff] %v6523_v39  ;;  %v4419_v51 = vadd.f32 %v4418_v34, %v4417_v12  ;;  %3552 = vmax.xlane.f32.xlu1 %v6523_v39 }
 0x2fc   : > { %v4420_v56 = vpop.f32.mrf.mxu1 }
 0x2fd   : > { %v6529_v36 = vadd.f32 %v4419_v51, %v6485_v63 }
 0x2fe   : > { %v4421_v24 = vpop.f32.mrf.mxu1 }
 0x2ff   : > { %3710 = vst [vmem:[%s6490_s17 + $0x30] sm:$0xff] %v6529_v36  ;;  %v4422_v41 = vadd.f32 %v4421_v24, %v4420_v56  ;;  %3554 = vmax.xlane.f32.xlu0 %v6529_v36 }
 0x300   : > { %v4423_v47 = vpop.f32.mrf.mxu1 }
 0x301   : > { %v6535_v28 = vadd.f32 %v4422_v41, %v6485_v63 }
 0x302   : > { %v4424_v5 = vpop.f32.mrf.mxu1 }
 0x303   : > { %3711 = vst [vmem:[%s6490_s17 + $0x38] sm:$0xff] %v6535_v28  ;;  %v4425_v35 = vadd.f32 %v4424_v5, %v4423_v47  ;;  %3556 = vmax.xlane.f32.xlu1 %v6535_v28 }
 0x304   : > { %v4426_v48 = vpop.f32.mrf.mxu1 }
 0x305   : > { %v6541_v40 = vadd.f32 %v4425_v35, %v6485_v63 }
 0x306   : > { %v4427_v0 = vpop.f32.mrf.mxu1 }
 0x307   : > { %3712 = vst [vmem:[%s6490_s17 + $0x40] sm:$0xff] %v6541_v40  ;;  %v4428_v21 = vadd.f32 %v4427_v0, %v4426_v48  ;;  %3558 = vmax.xlane.f32.xlu0 %v6541_v40 }
 0x308   : > { %v4429_v8 = vpop.f32.mrf.mxu1 }
 0x309   : > { %v6547_v52 = vadd.f32 %v4428_v21, %v6485_v63 }
 0x30a   : > { %v4430_v29 = vpop.f32.mrf.mxu1 }
 0x30b   : > { %3713 = vst [vmem:[%s6490_s17 + $0x48] sm:$0xff] %v6547_v52  ;;  %v4431_v2 = vadd.f32 %v4430_v29, %v4429_v8  ;;  %3560 = vmax.xlane.f32.xlu1 %v6547_v52 }
 0x30c   : > { %v4432_v62 = vpop.f32.mrf.mxu1 }
 0x30d   : > { %v6553_v20 = vadd.f32 %v4431_v2, %v6485_v63 }
 0x30e   : > { %v4433_v18 = vpop.f32.mrf.mxu1 }
 0x30f   : > { %3714 = vst [vmem:[%s6490_s17 + $0x50] sm:$0xff] %v6553_v20  ;;  %v4434_v42 = vadd.f32 %v4433_v18, %v4432_v62  ;;  %3562 = vmax.xlane.f32.xlu0 %v6553_v20 }
 0x310   : > { %v4435_v49 = vpop.f32.mrf.mxu1 }
 0x311   : > { %v6559_v22 = vadd.f32 %v4434_v42, %v6485_v63 }
 0x312   : > { %v4436_v14 = vpop.f32.mrf.mxu1 }
 0x313   : > { %3715 = vst [vmem:[%s6490_s17 + $0x58] sm:$0xff] %v6559_v22  ;;  %v4437_v25 = vadd.f32 %v4436_v14, %v4435_v49  ;;  %3564 = vmax.xlane.f32.xlu1 %v6559_v22 }
 0x314   : > { %v4438_v31 = vpop.f32.mrf.mxu1 }
 0x315   : > { %v6565_v19 = vadd.f32 %v4437_v25, %v6485_v63 }
 0x316   : > { %v4439_v11 = vpop.f32.mrf.mxu1 }
 0x317   : > { %3716 = vst [vmem:[%s6490_s17 + $0x60] sm:$0xff] %v6565_v19  ;;  %v4440_v37 = vadd.f32 %v4439_v11, %v4438_v31  ;;  %3566 = vmax.xlane.f32.xlu0 %v6565_v19 }
 0x318   : > { %v4441_v32 = vpop.f32.mrf.mxu1 }
 0x319   : > { %v6571_v23 = vadd.f32 %v4440_v37, %v6485_v63 }
 0x31a   : > { %v4442_v45 = vpop.f32.mrf.mxu1 }
 0x31b   : > { %3717 = vst [vmem:[%s6490_s17 + $0x68] sm:$0xff] %v6571_v23  ;;  %v4443_v61 = vadd.f32 %v4442_v45, %v4441_v32  ;;  %3568 = vmax.xlane.f32.xlu1 %v6571_v23 }
 0x31c   : > { %v4444_v3 = vpop.f32.mrf.mxu1 }
 0x31d   : > { %v6577_v7 = vadd.f32 %v4443_v61, %v6485_v63 }
 0x31e   : > { %v4445_v13 = vpop.f32.mrf.mxu1 }
 0x31f   : > { %3718 = vst [vmem:[%s6490_s17 + $0x70] sm:$0xff] %v6577_v7  ;;  %v4446_v43 = vadd.f32 %v4445_v13, %v4444_v3  ;;  %3570 = vmax.xlane.f32.xlu0 %v6577_v7 }
 0x320   : > { %v4447_v57 = vpop.f32.mrf.mxu1 }
 0x321   : > { %v6583_v50 = vadd.f32 %v4446_v43, %v6485_v63 }
 0x322   : > { %v4448_v6 = vpop.f32.mrf.mxu1 }
 0x323   : > { %3719 = vst [vmem:[%s6490_s17 + $0x78] sm:$0xff] %v6583_v50  ;;  %v4449_v55 = vadd.f32 %v4448_v6, %v4447_v57  ;;  %3572 = vmax.xlane.f32.xlu1 %v6583_v50 }
 0x324   : > { %v4450_v9 = vpop.f32.mrf.mxu1 }
 0x325   : > { %v6589_v59 = vadd.f32 %v4449_v55, %v6485_v63 }
 0x326   : > { %v4451_v53 = vpop.f32.mrf.mxu1 }
 0x327   : > { %3720 = vst [vmem:[%s6490_s17 + $0x80] sm:$0xff] %v6589_v59  ;;  %v4452_v16 = vadd.f32 %v4451_v53, %v4450_v9  ;;  %3574 = vmax.xlane.f32.xlu0 %v6589_v59 }
 0x329   : > { %v6595_v17 = vadd.f32 %v4452_v16, %v6485_v63 }
 0x32b   : > { %3721 = vst [vmem:[%s6490_s17 + $0x88] sm:$0xff] %v6595_v17  ;;  %3576 = vmax.xlane.f32.xlu1 %v6595_v17 }
 0x370   : > { %v3543_v10 = vpop.xlane.xlu0 %3542 }
 0x371   : > { %v3578_v1 = vsub.f32 %v6493_v33, %v3543_v10 }
 0x373   : > { %v3596_v15 = vmul.f32 1.442695, %v3578_v1 }
 0x374   : > { %v3545_v27 = vpop.xlane.xlu0 %3544 }
 0x375   : > { %4765 = vpow2.f32 %v3596_v15  ;;  %v3579_v26 = vsub.f32 %v6499_v30, %v3545_v27 }
 0x377   : > { %v3598_v44 = vmul.f32 1.442695, %v3579_v26 }
 0x378   : > { %v3547_v38 = vpop.xlane.xlu1 %3546 }
 0x379   : > { %4767 = vpow2.f32 %v3598_v44  ;;  %v3580_v46 = vsub.f32 %v6505_v60, %v3547_v38 }
 0x37b   : > { %v3600_v4 = vmul.f32 1.442695, %v3580_v46 }
 0x37c   : > { %v3549_v63 = vpop.xlane.xlu1 %3548 }
 0x37d   : > { %4769 = vpow2.f32 %v3600_v4  ;;  %v3581_v12 = vsub.f32 %v6511_v54, %v3549_v63 }
 0x37f   : > { %v3602_v34 = vmul.f32 1.442695, %v3581_v12 }
 0x380   : > { %v3551_v51 = vpop.xlane.xlu0 %3550 }
 0x381   : > { %4771 = vpow2.f32 %v3602_v34  ;;  %v3582_v33 = vsub.f32 %v6517_v58, %v3551_v51 }
 0x382   : > { %v6605_v56 = vpop.eup %4765 }
 0x383   : > { %v3604_v24 = vmul.f32 1.442695, %v3582_v33  ;;  %3632 = vadd.xlane.f32.xlu0 %v6605_v56 }
 0x384   : > { %v3553_v30 = vpop.xlane.xlu1 %3552 }
 0x385   : > { %4773 = vpow2.f32 %v3604_v24  ;;  %v3583_v41 = vsub.f32 %v6523_v39, %v3553_v30 }
 0x386   : > { %v6609_v60 = vpop.eup %4767 }
 0x387   : > { %v3606_v47 = vmul.f32 1.442695, %v3583_v41  ;;  %3634 = vadd.xlane.f32.xlu1 %v6609_v60 }
 0x388   : > { %v3555_v54 = vpop.xlane.xlu0 %3554 }
 0x389   : > { %4775 = vpow2.f32 %v3606_v47  ;;  %v3584_v5 = vsub.f32 %v6529_v36, %v3555_v54 }
 0x38a   : > { %v6613_v35 = vpop.eup %4769 }
 0x38b   : > { %v3608_v58 = vmul.f32 1.442695, %v3584_v5  ;;  %3636 = vadd.xlane.f32.xlu0 %v6613_v35 }
 0x38c   : > { %v3557_v48 = vpop.xlane.xlu1 %3556 }
 0x38d   : > { %4777 = vpow2.f32 %v3608_v58  ;;  %v3585_v0 = vsub.f32 %v6535_v28, %v3557_v48 }
 0x38e   : > { %v6617_v21 = vpop.eup %4771 }
 0x38f   : > { %v3610_v39 = vmul.f32 1.442695, %v3585_v0  ;;  %3638 = vadd.xlane.f32.xlu1 %v6617_v21 }
 0x390   : > { %v3559_v8 = vpop.xlane.xlu0 %3558 }
 0x391   : > { %4779 = vpow2.f32 %v3610_v39  ;;  %v3586_v29 = vsub.f32 %v6541_v40, %v3559_v8 }
 0x392   : > { %v6621_v2 = vpop.eup %4773 }
 0x393   : > { %v3612_v36 = vmul.f32 1.442695, %v3586_v29  ;;  %3640 = vadd.xlane.f32.xlu0 %v6621_v2 }
 0x394   : > { %v3561_v62 = vpop.xlane.xlu1 %3560 }
 0x395   : > { %4781 = vpow2.f32 %v3612_v36  ;;  %v3587_v18 = vsub.f32 %v6547_v52, %v3561_v62 }
 0x396   : > { %v6625_v42 = vpop.eup %4775 }
 0x397   : > { %v3614_v28 = vmul.f32 1.442695, %v3587_v18  ;;  %3642 = vadd.xlane.f32.xlu1 %v6625_v42 }
 0x398   : > { %v3563_v49 = vpop.xlane.xlu0 %3562 }
 0x399   : > { %4783 = vpow2.f32 %v3614_v28  ;;  %v3588_v14 = vsub.f32 %v6553_v20, %v3563_v49 }
 0x39a   : > { %v6629_v25 = vpop.eup %4777 }
 0x39b   : > { %v3616_v40 = vmul.f32 1.442695, %v3588_v14  ;;  %3644 = vadd.xlane.f32.xlu0 %v6629_v25 }
 0x39c   : > { %v3565_v31 = vpop.xlane.xlu1 %3564 }
 0x39d   : > { %4785 = vpow2.f32 %v3616_v40  ;;  %v3589_v11 = vsub.f32 %v6559_v22, %v3565_v31 }
 0x39e   : > { %v6633_v37 = vpop.eup %4779 }
 0x39f   : > { %v3618_v52 = vmul.f32 1.442695, %v3589_v11  ;;  %3646 = vadd.xlane.f32.xlu1 %v6633_v37 }
 0x3a0   : > { %v3567_v32 = vpop.xlane.xlu0 %3566 }
 0x3a1   : > { %4787 = vpow2.f32 %v3618_v52  ;;  %v3590_v45 = vsub.f32 %v6565_v19, %v3567_v32 }
 0x3a2   : > { %v6637_v61 = vpop.eup %4781 }
 0x3a3   : > { %v3620_v20 = vmul.f32 1.442695, %v3590_v45  ;;  %3648 = vadd.xlane.f32.xlu0 %v6637_v61 }
 0x3a4   : > { %v3569_v3 = vpop.xlane.xlu1 %3568 }
 0x3a5   : > { %4789 = vpow2.f32 %v3620_v20  ;;  %v3591_v13 = vsub.f32 %v6571_v23, %v3569_v3 }
 0x3a6   : > { %v6641_v43 = vpop.eup %4783 }
 0x3a7   : > { %v3622_v22 = vmul.f32 1.442695, %v3591_v13  ;;  %3650 = vadd.xlane.f32.xlu1 %v6641_v43 }
 0x3a8   : > { %v3571_v57 = vpop.xlane.xlu0 %3570 }
 0x3a9   : > { %4791 = vpow2.f32 %v3622_v22  ;;  %v3592_v6 = vsub.f32 %v6577_v7, %v3571_v57 }
 0x3aa   : > { %v6645_v55 = vpop.eup %4785 }
 0x3ab   : > { %v3624_v19 = vmul.f32 1.442695, %v3592_v6  ;;  %3652 = vadd.xlane.f32.xlu0 %v6645_v55 }
 0x3ac   : > { %v3573_v9 = vpop.xlane.xlu1 %3572 }
 0x3ad   : > { %4793 = vpow2.f32 %v3624_v19  ;;  %v3593_v53 = vsub.f32 %v6583_v50, %v3573_v9 }
 0x3ae   : > { %v6649_v16 = vpop.eup %4787 }
 0x3af   : > { %v3626_v23 = vmul.f32 1.442695, %v3593_v53  ;;  %3654 = vadd.xlane.f32.xlu1 %v6649_v16 }
 0x3b0   : > { %v3575_v10 = vpop.xlane.xlu0 %3574 }
 0x3b1   : > { %4795 = vpow2.f32 %v3626_v23  ;;  %v3594_v1 = vsub.f32 %v6589_v59, %v3575_v10 }
 0x3b2   : > { %v6653_v15 = vpop.eup %4789 }
 0x3b3   : > { %v3628_v7 = vmul.f32 1.442695, %v3594_v1  ;;  %3656 = vadd.xlane.f32.xlu0 %v6653_v15 }
 0x3b4   : > { %v3577_v27 = vpop.xlane.xlu1 %3576 }
 0x3b5   : > { %4797 = vpow2.f32 %v3628_v7  ;;  %v3595_v26 = vsub.f32 %v6595_v17, %v3577_v27 }
 0x3b6   : > { %v6657_v44 = vpop.eup %4791 }
 0x3b7   : > { %v3630_v50 = vmul.f32 1.442695, %v3595_v26  ;;  %3658 = vadd.xlane.f32.xlu1 %v6657_v44 }
 0x3b9   : > { %4799 = vpow2.f32 %v3630_v50 }
 0x3ba   : > { %v6660_v38 = vpop.eup %4793 }
 0x3bb   : > { %3660 = vadd.xlane.f32.xlu0 %v6660_v38 }
 0x3be   : > { %v6663_v59 = vpop.eup %4795 }
 0x3bf   : > { %3662 = vadd.xlane.f32.xlu1 %v6663_v59 }
 0x3c2   : > { %v6666_v46 = vpop.eup %4797 }
 0x3c3   : > { %3664 = vadd.xlane.f32.xlu0 %v6666_v46 }
 0x3c6   : > { %v6669_v17 = vpop.eup %4799 }
 0x3c7   : > { %3666 = vadd.xlane.f32.xlu1 %v6669_v17 }
 0x40c   : > { %v3633_v4 = vpop.xlane.xlu0 %3632 }
 0x40d   : > { %4801 = vrcp.f32 %v3633_v4 }
 0x410   : > { %v3635_v63 = vpop.xlane.xlu1 %3634 }
 0x411   : > { %4803 = vrcp.f32 %v3635_v63 }
 0x414   : > { %v3637_v12 = vpop.xlane.xlu0 %3636 }
 0x415   : > { %4805 = vrcp.f32 %v3637_v12 }
 0x418   : > { %v3639_v34 = vpop.xlane.xlu1 %3638 }
 0x419   : > { %4807 = vrcp.f32 %v3639_v34 }
 0x41a   : > { %v4802_v51 = vpop.eup %4801 }
 0x41b   : > { %v3686_v30 = vmul.f32 %v4802_v51, %v6605_v56 }
 0x41c   : > { %v3641_v33 = vpop.xlane.xlu0 %3640 }
 0x41d   : > { %4809 = vrcp.f32 %v3641_v33 }
 0x41e   : > { %v4804_v24 = vpop.eup %4803 }
 0x41f   : > { %v3687_v41 = vmul.f32 %v4804_v24, %v6609_v60 }
 0x420   : > { %v3643_v47 = vpop.xlane.xlu1 %3642 }
 0x421   : > { %v4333_v54 = vpack.c.bf16 %v3687_v41, %v3686_v30  ;;  %4811 = vrcp.f32 %v3643_v47 }
 0x422   : > { %v4806_v5 = vpop.eup %4805 }
 0x423   : > { %4334 = vst [vmem:[%s6678_s14] sm:$0xff] %v4333_v54   ;;  %v3688_v0 = vmul.f32 %v4806_v5, %v6613_v35 }
 0x424   : > { %v3645_v58 = vpop.xlane.xlu0 %3644 }
 0x425   : > { %4813 = vrcp.f32 %v3645_v58 }
 0x426   : > { %v4808_v48 = vpop.eup %4807 }
 0x427   : > { %v3689_v56 = vmul.f32 %v4808_v48, %v6617_v21 }
 0x428   : > { %v3647_v60 = vpop.xlane.xlu1 %3646 }
 0x429   : > { %v4338_v39 = vpack.c.bf16 %v3689_v56, %v3688_v0  ;;  %4815 = vrcp.f32 %v3647_v60 }
 0x42a   : > { %v4810_v8 = vpop.eup %4809 }
 0x42b   : > { %4375 = vst [vmem:[%s6678_s14 + $0x8] sm:$0xff] %v4338_v39   ;;  %v3690_v62 = vmul.f32 %v4810_v8, %v6621_v2 }
 0x42c   : > { %v3649_v29 = vpop.xlane.xlu0 %3648 }
 0x42d   : > { %4817 = vrcp.f32 %v3649_v29 }
 0x42e   : > { %v4812_v36 = vpop.eup %4811 }
 0x42f   : > { %v3691_v18 = vmul.f32 %v4812_v36, %v6625_v42 }
 0x430   : > { %v3651_v28 = vpop.xlane.xlu1 %3650 }
 0x431   : > { %v4343_v49 = vpack.c.bf16 %v3691_v18, %v3690_v62  ;;  %4819 = vrcp.f32 %v3651_v28 }
 0x432   : > { %v4814_v35 = vpop.eup %4813 }
 0x433   : > { %4376 = vst [vmem:[%s6678_s14 + $0x10] sm:$0xff] %v4343_v49   ;;  %v3692_v40 = vmul.f32 %v4814_v35, %v6629_v25 }
 0x434   : > { %v3653_v21 = vpop.xlane.xlu0 %3652 }
 0x435   : > { %4821 = vrcp.f32 %v3653_v21 }
 0x436   : > { %v4816_v14 = vpop.eup %4815 }
 0x437   : > { %v3693_v31 = vmul.f32 %v4816_v14, %v6633_v37 }
 0x438   : > { %v3655_v11 = vpop.xlane.xlu1 %3654 }
 0x439   : > { %v4348_v52 = vpack.c.bf16 %v3693_v31, %v3692_v40  ;;  %4823 = vrcp.f32 %v3655_v11 }
 0x43a   : > { %v4818_v2 = vpop.eup %4817 }
 0x43b   : > { %4377 = vst [vmem:[%s6678_s14 + $0x18] sm:$0xff] %v4348_v52   ;;  %v3694_v45 = vmul.f32 %v4818_v2, %v6637_v61 }
 0x43c   : > { %v3657_v42 = vpop.xlane.xlu0 %3656 }
 0x43d   : > { %4825 = vrcp.f32 %v3657_v42 }
 0x43e   : > { %v4820_v32 = vpop.eup %4819 }
 0x43f   : > { %v3695_v20 = vmul.f32 %v4820_v32, %v6641_v43 }
 0x440   : > { %v3659_v3 = vpop.xlane.xlu1 %3658 }
 0x441   : > { %v4353_v13 = vpack.c.bf16 %v3695_v20, %v3694_v45  ;;  %4827 = vrcp.f32 %v3659_v3 }
 0x442   : > { %v4822_v25 = vpop.eup %4821 }
 0x443   : > { %4378 = vst [vmem:[%s6678_s14 + $0x20] sm:$0xff] %v4353_v13   ;;  %v3696_v57 = vmul.f32 %v4822_v25, %v6645_v55 }
 0x444   : > { %v3661_v37 = vpop.xlane.xlu0 %3660 }
 0x445   : > { %4829 = vrcp.f32 %v3661_v37 }
 0x446   : > { %v4824_v22 = vpop.eup %4823 }
 0x447   : > { %v3697_v6 = vmul.f32 %v4824_v22, %v6649_v16 }
 0x448   : > { %v3663_v19 = vpop.xlane.xlu1 %3662 }
 0x449   : > { %v4358_v9 = vpack.c.bf16 %v3697_v6, %v3696_v57  ;;  %4831 = vrcp.f32 %v3663_v19 }
 0x44a   : > { %v4826_v61 = vpop.eup %4825 }
 0x44b   : > { %4379 = vst [vmem:[%s6678_s14 + $0x28] sm:$0xff] %v4358_v9   ;;  %v3698_v23 = vmul.f32 %v4826_v61, %v6653_v15 }
 0x44c   : > { %v3665_v43 = vpop.xlane.xlu0 %3664 }
 0x44d   : > { %4833 = vrcp.f32 %v3665_v43 }
 0x44e   : > { %v4828_v53 = vpop.eup %4827 }
 0x44f   : > { %v3699_v10 = vmul.f32 %v4828_v53, %v6657_v44 }
 0x450   : > { %v3667_v1 = vpop.xlane.xlu1 %3666 }
 0x451   : > { %v4363_v55 = vpack.c.bf16 %v3699_v10, %v3698_v23  ;;  %4835 = vrcp.f32 %v3667_v1 }
 0x452   : > { %v4830_v16 = vpop.eup %4829 }
 0x453   : > { %4380 = vst [vmem:[%s6678_s14 + $0x30] sm:$0xff] %v4363_v55   ;;  %v3700_v27 = vmul.f32 %v4830_v16, %v6660_v38 }
 0x456   : > { %v4832_v7 = vpop.eup %4831 }
 0x457   : > { %v3701_v26 = vmul.f32 %v4832_v7, %v6663_v59 }
 0x459   : > { %v4368_v50 = vpack.c.bf16 %v3701_v26, %v3700_v27 }
 0x45a   : > { %v4834_v4 = vpop.eup %4833 }
 0x45b   : > { %4381 = vst [vmem:[%s6678_s14 + $0x38] sm:$0xff] %v4368_v50   ;;  %v3702_v15 = vmul.f32 %v4834_v4, %v6666_v46 }
 0x45e   : > { %v4836_v63 = vpop.eup %4835 }
 0x45f   : > { %v3703_v44 = vmul.f32 %v4836_v63, %v6669_v17 }
 0x461   : > { %v4373_v12 = vpack.c.bf16 %v3703_v44, %v3702_v15 }
 0x463   : > { %4382 = vst [vmem:[%s6678_s14 + $0x40] sm:$0xff] %v4373_v12  }
 0x464 PF: > { %s17_s25 = sadd.s32 1, %s4875_s25   ;;  %s6756_s21 = smov %s4867_s23 }
 0x465   : > { %p14_p7 = scmp.ge.s32.totalorder %s17_s25, 6   ;;  %s6757_s22 = smov %s4871_s24 }
 0x466   : > { %s6758_s23 = smov %s6761_s26  ;;  %s6759_s24 = smov %s6765_s27 }
 0x467   :  { %16 = sbr.rel (!%p14_p7) target bundleno = 3 (0x3), region = 90 }

</bundles_post_ra>
